<compile_context>
chip_gen: v7x
topology: tpu7x:2x2x1
jax: 0.10.0
libtpu: 0.0.40
codegen_flags: <defaults>
</compile_context>

<pallas_src>
import math

import jax
import jax.numpy as jnp
from jax import lax
from jax.experimental import pallas as pl
from jax.experimental.pallas import tpu as pltpu

NEG_SLOPE = 0.2
LN_EPS = 1e-5
CLAMP_MIN = 1e-5
_SMALL_N = 512       # below this, one (N, N) block (full-array block shapes, no padding)
_DEF_TILE = 256      # destination-row tile for large graphs
_DEF_CHUNK = 512     # source-node chunk for large graphs


def _vmem_limit_bytes():
    """Generation-aware scoped-VMEM budget (smaller on 64 MiB/TC v7x-class parts)."""
    cap = 128 * 1024 * 1024
    try:
        cap = int(getattr(pltpu.get_tpu_info(), "vmem_capacity_bytes", cap))
    except Exception:
        pass
    return (32 if cap <= 64 * 1024 * 1024 else 48) * 1024 * 1024


def _round_up(n, m):
    return ((n + m - 1) // m) * m


def _pick_tiles(n, tile, chunk):
    """(dest tile, source chunk, padded node count) obeying TPU block-shape rules."""
    if tile is None:
        tile = n if n <= _SMALL_N else _DEF_TILE
    if chunk is None:
        chunk = n if n <= _SMALL_N else _DEF_CHUNK
    if tile >= n and chunk >= n:
        return n, n, n                                  # single full-array block: always legal
    tile = max(32, (min(tile, n) // 32) * 32)           # int8 adj sublane tiling
    chunk = max(128, (min(chunk, n) // 128) * 128)      # lane dim must be a multiple of 128
    n_pad = _round_up(n, math.lcm(tile, chunk))         # ragged N handled by zero padding
    return tile, chunk, n_pad


def _attn_kernel(el_t_ref, er_ref, adj_ref, slab_ref, oh_dst_ref, present_ref,
                 inv_deg_ref, rnagg_ref, f1f2_ref, m_sc, l_sc, acc_sc):
    """Online (flash-style) masked edge softmax + fused neighbor / class aggregation."""
    H = er_ref.shape[1]
    C = oh_dst_ref.shape[1]
    DC = acc_sc.shape[1] // H
    D = DC - C
    k = pl.program_id(1)

    @pl.when(k == 0)
    def _init():
        m_sc[...] = jnp.full_like(m_sc, -jnp.inf)
        l_sc[...] = jnp.zeros_like(l_sc)
        acc_sc[...] = jnp.zeros_like(acc_sc)

    adj_f = adj_ref[...].astype(jnp.float32)             # (T, S) 0/1 mask (int8 in HBM)
    slab = slab_ref[...]                                  # (S, H*(D+C)) bf16, head-major

    for hd in range(H):                                   # small static H: unrolled
        lo = hd * DC
        el_h = el_t_ref[hd:hd + 1, :]                     # (1, S) source scores
        er_h = er_ref[:, hd:hd + 1]                       # (T, 1) dest scores
        e = el_h + er_h                                   # (T, S)
        e = jnp.where(e >= 0, e, NEG_SLOPE * e)           # leaky relu
        m_old = m_sc[:, hd:hd + 1]
        # rowmax over UNMASKED e (finite, so exp <= 1); masking folded into the 0/1 multiply.
        m_new = jnp.maximum(m_old, jnp.max(e, axis=1, keepdims=True))
        p = jnp.exp(e - m_new) * adj_f                    # masked exp weights, (T, S)
        corr = jnp.exp(m_old - m_new)                     # (T, 1), <= 1 (0 on first chunk)
        l_sc[:, hd:hd + 1] = corr * l_sc[:, hd:hd + 1] + jnp.sum(p, axis=1, keepdims=True)
        # One fused bf16 MXU pass: attention-weighted feats AND per-class counts.
        acc_sc[:, lo:lo + DC] = (
            corr * acc_sc[:, lo:lo + DC]
            + jnp.dot(p.astype(jnp.bfloat16), slab[:, lo:lo + DC],
                      preferred_element_type=jnp.float32))
        m_sc[:, hd:hd + 1] = m_new

    @pl.when(k == pl.num_programs(1) - 1)
    def _finalize():
        inv_deg = inv_deg_ref[...]                        # (T, 1)  == g.ndata['norm']
        oh_dst = oh_dst_ref[...]                          # (T, C)
        present = present_ref[...]                        # (1, C)
        rn_cols, f1_cols, f2_cols = [], [], []
        for hd in range(H):
            lo = hd * DC
            inv_l = pl.reciprocal(l_sc[:, hd:hd + 1], approx=True)   # softmax denominator
            agg = acc_sc[:, lo:lo + D] * inv_l                       # (T, D)
            cnts = acc_sc[:, lo + D:lo + DC] * inv_l * inv_deg       # (T, C)
            rn_cols.append(jnp.maximum(agg * inv_deg, 0.0))          # relu(agg / deg)
            f1_cols.append(jnp.sum(cnts * oh_dst, axis=-1, keepdims=True))
            cl = jnp.maximum(cnts, CLAMP_MIN)
            f2_cols.append(-jnp.sum(present * cl * jnp.log(cl), axis=-1, keepdims=True))
        rnagg_ref[...] = jnp.concatenate(rn_cols, axis=-1)           # lane-dense (T, H*D)
        f1f2_ref[...] = jnp.concatenate(f1_cols + f2_cols, axis=-1)  # packed    (T, 2*H)


def gated_attn_layer(h, logits, old_z, adj, w, attn_l, attn_r, tau_1, tau_2,
                     tile=None, chunk=None):
    N, F = h.shape
    H, _, D = w.shape
    C = logits.shape[1]
    HD, DC = H * D, D + C

    # ------------- XLA prologue: projection / per-node scalars, computed once -------------
    w_flat = jnp.transpose(w, (1, 0, 2)).reshape(F, HD)
    feat = jnp.dot(h, w_flat)                              # (N, H*D)
    feat_h = feat.reshape(N, H, D)
    el_t = jnp.einsum('nhd,hd->hn', feat_h, attn_l)        # (H, N) source-side scores
    er = jnp.einsum('nhd,hd->nh', feat_h, attn_r)          # (N, H) dest-side scores
    deg = jnp.sum(adj, axis=1, keepdims=True)              # in-degree
    # NOTE: isolated destination nodes (deg == 0) give inf/NaN, matching the torch reference.
    inv_deg = 1.0 / deg
    pred = jnp.argmax(logits, axis=-1)
    onehot = jax.nn.one_hot(pred, C, dtype=jnp.float32)    # (N, C)
    # classes present among message-source nodes (dense analogue of torch.unique(pred))
    # TODO(synk): DGL's unique() is per degree-bucket; a single whole-graph bucket is used here.
    has_out = (jnp.sum(adj, axis=0) > 0).astype(jnp.float32)
    present = jnp.max(onehot * has_out[:, None], axis=0, keepdims=True)    # (1, C)
    # head-major bf16 source slab [feat_h | onehot]: one fused MXU operand per head.
    slab = jnp.concatenate(
        [feat_h, jnp.broadcast_to(onehot[:, None, :], (N, H, C))], axis=-1)
    slab = slab.reshape(N, H * DC).astype(jnp.bfloat16)
    adj_i8 = adj.astype(jnp.int8)                          # 0/1 values: exact

    tile, chunk, n_pad = _pick_tiles(N, tile, chunk)
    if n_pad != N:                                         # padded rows/cols carry adj == 0
        pad = n_pad - N                                    # and are sliced off afterwards
        adj_i8 = jnp.pad(adj_i8, ((0, pad), (0, pad)))
        slab = jnp.pad(slab, ((0, pad), (0, 0)))
        el_t = jnp.pad(el_t, ((0, 0), (0, pad)))
        er = jnp.pad(er, ((0, pad), (0, 0)))
        oh_dst = jnp.pad(onehot, ((0, pad), (0, 0)))
        inv_deg_p = jnp.pad(inv_deg, ((0, pad), (0, 0)))
    else:
        oh_dst, inv_deg_p = onehot, inv_deg

    rows = lambda i, k: (i, 0)

    rnagg, f1f2 = pl.pallas_call(
        _attn_kernel,
        out_shape=(jax.ShapeDtypeStruct((n_pad, HD), jnp.float32),
                   jax.ShapeDtypeStruct((n_pad, 2 * H), jnp.float32)),
        grid=(n_pad // tile, n_pad // chunk),
        in_specs=[pl.BlockSpec((H, chunk), lambda i, k: (0, k)),      # el (source chunk)
                  pl.BlockSpec((tile, H), rows),                      # er (dest rows)
                  pl.BlockSpec((tile, chunk), lambda i, k: (i, k)),   # adj tile (int8)
                  pl.BlockSpec((chunk, H * DC), lambda i, k: (k, 0)), # [feat|onehot] sources
                  pl.BlockSpec((tile, C), rows),                      # onehot (dest rows)
                  pl.BlockSpec((1, C), lambda i, k: (0, 0)),          # present classes
                  pl.BlockSpec((tile, 1), rows)],                     # 1 / in-degree
        out_specs=(pl.BlockSpec((tile, HD), rows),
                   pl.BlockSpec((tile, 2 * H), rows)),
        scratch_shapes=[pltpu.VMEM((tile, H), jnp.float32),           # running max
                        pltpu.VMEM((tile, H), jnp.float32),           # running sum
                        pltpu.VMEM((tile, H * DC), jnp.float32)],     # running accumulator
        compiler_params=pltpu.CompilerParams(
            dimension_semantics=("parallel", "arbitrary"),
            vmem_limit_bytes=_vmem_limit_bytes()),
    )(el_t, er, adj_i8, slab, oh_dst, present, inv_deg_p)

    rnagg = rnagg[:N]
    f1 = f1f2[:N, :H]
    f2 = f1f2[:N, H:]

    # ----------- XLA epilogue: whole-(N, H) LayerNorm, gate, residual update -----------
    def _ln(x):
        m = jnp.mean(x)
        v = jnp.mean(jnp.square(x - m))
        return (x - m) * lax.rsqrt(v + LN_EPS)

    z = jax.nn.sigmoid(-(_ln(f1) - tau_1)) * jax.nn.sigmoid(-(_ln(f2) - tau_2))
    gate = jnp.minimum(old_z, z)                           # (N, H)
    new_h = feat_h + gate[:, :, None] * rnagg.reshape(N, H, D)
    return new_h, z


# --------------------- pure-JAX reference (mirrors torch semantics) ---------------------
def ref_forward(h, logits, old_z, adj, w, attn_l, attn_r, tau_1, tau_2):
    C = logits.shape[1]
    feat = jnp.einsum('nf,hfd->nhd', h, w)
    el = jnp.sum(feat * attn_l[None], axis=-1)
    er = jnp.sum(feat * attn_r[None], axis=-1)
    e = el[None, :, :] + er[:, None, :]                                      # (v, u, H)
    e = jnp.where(e >= 0, e, NEG_SLOPE * e)
    mask = adj[:, :, None] > 0
    e = jnp.where(mask, e, -jnp.inf)
    a = jax.nn.softmax(e, axis=1)
    a = jnp.where(mask, a, 0.0)
    deg = jnp.sum(adj, axis=1, keepdims=True)
    pred = jnp.argmax(logits, axis=-1)
    onehot = jax.nn.one_hot(pred, C)
    same = (pred[None, :] == pred[:, None]).astype(jnp.float32)
    f1 = jnp.sum(a * same[:, :, None], axis=1) / deg
    cnts = jnp.einsum('vuh,uc->vhc', a, onehot) / deg[:, :, None]
    clamped = jnp.maximum(cnts, CLAMP_MIN)
    has_out = (jnp.sum(adj, axis=0) > 0).astype(jnp.float32)
    present = jnp.max(onehot * has_out[:, None], axis=0)
    f2 = -jnp.sum(present[None, None, :] * clamped * jnp.log(clamped), axis=-1)
    agg = jnp.einsum('vuh,uhd->vhd', a, feat)

    def ln(x):
        m = jnp.mean(x)
        v = jnp.mean((x - m) ** 2)
        return (x - m) / jnp.sqrt(v + LN_EPS)

    z = jax.nn.sigmoid(-(ln(f1) - tau_1)) * jax.nn.sigmoid(-(ln(f2) - tau_2))
    gate = jnp.minimum(old_z, z)
    normagg = jnp.maximum(agg * (1.0 / deg)[:, None, :], 0.0)
    new_h = feat + gate[:, :, None] * normagg
    return new_h, z


if __name__ == "__main__":
    def _run_case(N, tile=None, chunk=None):
        F_IN, D_OUT, H, C = 8, 16, 4, 4
        key = jax.random.PRNGKey(0)
        k1, k2, k3, k4, k5, k6 = jax.random.split(key, 6)
        h = jax.random.normal(k1, (N, F_IN), jnp.float32)
        logits = jax.random.normal(k2, (N, C), jnp.float32)
        old_z = jax.random.uniform(k3, (N, H), jnp.float32)
        w = jax.random.normal(k4, (H, F_IN, D_OUT), jnp.float32) / jnp.sqrt(float(F_IN))
        attn_l = 0.1 * jax.random.normal(k5, (H, D_OUT), jnp.float32)
        attn_r = 0.1 * jax.random.normal(k6, (H, D_OUT), jnp.float32)

        # 4-regular circulant directed graph: edge u -> v for u = (v + off) % N
        offs = jnp.array([1, 2, 3, 5])
        src = (jnp.arange(N)[:, None] + offs[None, :]) % N
        adj = jnp.zeros((N, N), jnp.float32)
        adj = adj.at[jnp.repeat(jnp.arange(N), offs.size), src.reshape(-1)].set(1.0)

        tau = 0.5  # tau_1 = tau_2 = 1 / (lidx + 1), lidx = 1 (shared_tau=True)

        new_h, z = jax.block_until_ready(
            gated_attn_layer(h, logits, old_z, adj, w, attn_l, attn_r, tau, tau,
                             tile=tile, chunk=chunk))
        ref_new_h, ref_z = ref_forward(h, logits, old_z, adj, w, attn_l, attn_r, tau, tau)

        # bf16 MXU inputs + approx reciprocal + whole-tensor LayerNorm (1/std amplification)
        # justify a looser tolerance than pure-f32.
        assert jnp.allclose(new_h, ref_new_h, atol=1e-2, rtol=1e-2), f"new_h mismatch (N={N})"
        assert jnp.allclose(z, ref_z, atol=1e-2, rtol=1e-2), f"z mismatch (N={N})"

    _run_case(N=64)                          # single-block path (full-array block shapes)
    _run_case(N=256, tile=128, chunk=128)    # tiled path: 2x2 grid, online-softmax carries
    print("KERNEL_OK")
</pallas_src>

<mosaic_0001>
module attributes {stable_mosaic.version = 11 : i64} {
  func.func @_attn_kernel(%arg0: i32, %arg1: i32, %arg2: memref<4x64xf32, #tpu.memory_space<vmem>>, %arg3: memref<64x4xf32, #tpu.memory_space<vmem>>, %arg4: memref<64x64xi8, #tpu.memory_space<vmem>>, %arg5: memref<64x80xbf16, #tpu.memory_space<vmem>>, %arg6: memref<64x4xf32, #tpu.memory_space<vmem>>, %arg7: memref<1x4xf32, #tpu.memory_space<vmem>>, %arg8: memref<64x1xf32, #tpu.memory_space<vmem>>, %arg9: memref<64x64xf32, #tpu.memory_space<vmem>>, %arg10: memref<64x8xf32, #tpu.memory_space<vmem>>, %arg11: memref<64x4xf32, #tpu.memory_space<vmem>>, %arg12: memref<64x4xf32, #tpu.memory_space<vmem>>, %arg13: memref<64x80xf32, #tpu.memory_space<vmem>>) attributes {dimension_semantics = [#tpu.dimension_semantics<parallel>, #tpu.dimension_semantics<arbitrary>], iteration_bounds = array<i64: 1, 1>, scalar_prefetch = 0 : i64, scratch_operands = 3 : i64, tpu.core_type = #tpu.core_type<tc>, window_params = [{transform_indices = @transform_0, window_bounds = array<i64: 4, 64>}, {transform_indices = @transform_1, window_bounds = array<i64: 64, 4>}, {transform_indices = @transform_2, window_bounds = array<i64: 64, 64>}, {transform_indices = @transform_3, window_bounds = array<i64: 64, 80>}, {transform_indices = @transform_4, window_bounds = array<i64: 64, 4>}, {pipeline_mode = #tpu.pipeline_mode<synchronous>, transform_indices = @transform_5, window_bounds = array<i64: 1, 4>}, {transform_indices = @transform_6, window_bounds = array<i64: 64, 1>}, {transform_indices = @transform_7, window_bounds = array<i64: 64, 64>}, {transform_indices = @transform_8, window_bounds = array<i64: 64, 8>}]} {
    %c0_i32 = arith.constant 0 : i32
    %0 = arith.cmpi eq, %arg1, %c0_i32 : i32
    %1 = arith.extui %0 : i1 to i32
    %c0_i32_0 = arith.constant 0 : i32
    %2 = arith.cmpi ne, %1, %c0_i32_0 : i32
    scf.if %2 {
      %cst_83 = arith.constant 0xFF800000 : f32
      %149 = vector.broadcast %cst_83 : f32 to vector<64x4xf32>
      %c0_84 = arith.constant 0 : index
      %c0_85 = arith.constant 0 : index
      %150 = vector.load %arg11[%c0_84, %c0_85] : memref<64x4xf32, #tpu.memory_space<vmem>>, vector<64x4xf32>
      tpu.vector_store %arg11[%c0_84, %c0_85], %149 {strides = array<i32>} : memref<64x4xf32, #tpu.memory_space<vmem>>, vector<64x4xf32>,
      %cst_86 = arith.constant 0.000000e+00 : f32
      %151 = vector.broadcast %cst_86 : f32 to vector<64x4xf32>
      %c0_87 = arith.constant 0 : index
      %c0_88 = arith.constant 0 : index
      %152 = vector.load %arg12[%c0_87, %c0_88] : memref<64x4xf32, #tpu.memory_space<vmem>>, vector<64x4xf32>
      tpu.vector_store %arg12[%c0_87, %c0_88], %151 {strides = array<i32>} : memref<64x4xf32, #tpu.memory_space<vmem>>, vector<64x4xf32>,
      %cst_89 = arith.constant 0.000000e+00 : f32
      %153 = vector.broadcast %cst_89 : f32 to vector<64x80xf32>
      %c0_90 = arith.constant 0 : index
      %c0_91 = arith.constant 0 : index
      %154 = vector.load %arg13[%c0_90, %c0_91] : memref<64x80xf32, #tpu.memory_space<vmem>>, vector<64x80xf32>
      tpu.vector_store %arg13[%c0_90, %c0_91], %153 {strides = array<i32>} : memref<64x80xf32, #tpu.memory_space<vmem>>, vector<64x80xf32>,
    } else {
    }
    %c0 = arith.constant 0 : index
    %c0_1 = arith.constant 0 : index
    %3 = vector.load %arg4[%c0, %c0_1] : memref<64x64xi8, #tpu.memory_space<vmem>>, vector<64x64xi8>
    %4 = arith.sitofp %3 : vector<64x64xi8> to vector<64x64xf32>
    %c0_2 = arith.constant 0 : index
    %c0_3 = arith.constant 0 : index
    %5 = vector.load %arg5[%c0_2, %c0_3] : memref<64x80xbf16, #tpu.memory_space<vmem>>, vector<64x80xbf16>
    %c0_4 = arith.constant 0 : index
    %c0_5 = arith.constant 0 : index
    %6 = vector.load %arg2[%c0_4, %c0_5] : memref<4x64xf32, #tpu.memory_space<vmem>>, vector<1x64xf32>
    %c0_6 = arith.constant 0 : index
    %c0_7 = arith.constant 0 : index
    %7 = vector.load %arg3[%c0_6, %c0_7] : memref<64x4xf32, #tpu.memory_space<vmem>>, vector<64x1xf32>
    %8 = vector.broadcast %6 : vector<1x64xf32> to vector<64x64xf32>
    %9 = vector.broadcast %7 : vector<64x1xf32> to vector<64x64xf32>
    %10 = arith.addf %8, %9 : vector<64x64xf32>
    %cst = arith.constant 0.000000e+00 : f32
    %11 = vector.broadcast %cst : f32 to vector<64x64xf32>
    %12 = arith.cmpf oge, %10, %11 : vector<64x64xf32>
    %cst_8 = arith.constant 2.000000e-01 : f32
    %13 = vector.broadcast %cst_8 : f32 to vector<64x64xf32>
    %14 = arith.mulf %13, %10 : vector<64x64xf32>
    %15 = arith.select %12, %10, %14 : vector<64x64xi1>, vector<64x64xf32>
    %c0_9 = arith.constant 0 : index
    %c0_10 = arith.constant 0 : index
    %16 = vector.load %arg11[%c0_9, %c0_10] : memref<64x4xf32, #tpu.memory_space<vmem>>, vector<64x1xf32>
    %cst_11 = arith.constant dense<0xFF800000> : vector<64xf32>
    %17 = vector.multi_reduction <maximumf>, %15, %cst_11 [1] : vector<64x64xf32> to vector<64xf32>
    %18 = vector.shape_cast %17 : vector<64xf32> to vector<64x1xf32>
    %19 = arith.maximumf %16, %18 : vector<64x1xf32>
    %20 = vector.broadcast %19 : vector<64x1xf32> to vector<64x64xf32>
    %21 = arith.subf %15, %20 : vector<64x64xf32>
    %22 = math.exp %21 : vector<64x64xf32>
    %23 = arith.mulf %22, %4 : vector<64x64xf32>
    %24 = arith.subf %16, %19 : vector<64x1xf32>
    %25 = math.exp %24 : vector<64x1xf32>
    %c0_12 = arith.constant 0 : index
    %c0_13 = arith.constant 0 : index
    %26 = vector.load %arg12[%c0_12, %c0_13] : memref<64x4xf32, #tpu.memory_space<vmem>>, vector<64x1xf32>
    %27 = arith.mulf %25, %26 : vector<64x1xf32>
    %cst_14 = arith.constant dense<0.000000e+00> : vector<64xf32>
    %28 = vector.multi_reduction <add>, %23, %cst_14 [1] : vector<64x64xf32> to vector<64xf32>
    %29 = vector.shape_cast %28 : vector<64xf32> to vector<64x1xf32>
    %30 = arith.addf %27, %29 : vector<64x1xf32>
    %c0_15 = arith.constant 0 : index
    %c0_16 = arith.constant 0 : index
    %31 = vector.load %arg12[%c0_15, %c0_16] : memref<64x4xf32, #tpu.memory_space<vmem>>, vector<64x1xf32>
    tpu.vector_store %arg12[%c0_15, %c0_16], %30 {strides = array<i32>} : memref<64x4xf32, #tpu.memory_space<vmem>>, vector<64x1xf32>,
    %c0_17 = arith.constant 0 : index
    %c0_18 = arith.constant 0 : index
    %32 = vector.load %arg13[%c0_17, %c0_18] : memref<64x80xf32, #tpu.memory_space<vmem>>, vector<64x20xf32>
    %33 = vector.broadcast %25 : vector<64x1xf32> to vector<64x20xf32>
    %34 = arith.mulf %33, %32 : vector<64x20xf32>
    %35 = arith.truncf %23 : vector<64x64xf32> to vector<64x64xbf16>
    %36 = vector.extract_strided_slice %5 {offsets = [0, 0], sizes = [64, 20], strides = [1, 1]} : vector<64x80xbf16> to vector<64x20xbf16>
    %cst_19 = arith.constant dense<0.000000e+00> : vector<64x20xf32>
    %37 = tpu.matmul %35, %36, %cst_19 {dimension_numbers = #tpu.dot_dimension_numbers<[1], [0], [0], [1], [0, 0, 1, 1], [], []>} : vector<64x64xbf16>, vector<64x20xbf16>, vector<64x20xf32> -> vector<64x20xf32>
    %38 = arith.addf %34, %37 : vector<64x20xf32>
    %c0_20 = arith.constant 0 : index
    %c0_21 = arith.constant 0 : index
    %39 = vector.load %arg13[%c0_20, %c0_21] : memref<64x80xf32, #tpu.memory_space<vmem>>, vector<64x20xf32>
    tpu.vector_store %arg13[%c0_20, %c0_21], %38 {strides = array<i32>} : memref<64x80xf32, #tpu.memory_space<vmem>>, vector<64x20xf32>,
    %c0_22 = arith.constant 0 : index
    %c0_23 = arith.constant 0 : index
    %40 = vector.load %arg11[%c0_22, %c0_23] : memref<64x4xf32, #tpu.memory_space<vmem>>, vector<64x1xf32>
    tpu.vector_store %arg11[%c0_22, %c0_23], %19 {strides = array<i32>} : memref<64x4xf32, #tpu.memory_space<vmem>>, vector<64x1xf32>,
    %c1 = arith.constant 1 : index
    %c0_24 = arith.constant 0 : index
    %41 = vector.load %arg2[%c1, %c0_24] : memref<4x64xf32, #tpu.memory_space<vmem>>, vector<1x64xf32>
    %c0_25 = arith.constant 0 : index
    %c1_26 = arith.constant 1 : index
    %42 = vector.load %arg3[%c0_25, %c1_26] : memref<64x4xf32, #tpu.memory_space<vmem>>, vector<64x1xf32>
    %43 = vector.broadcast %41 : vector<1x64xf32> to vector<64x64xf32>
    %44 = vector.broadcast %42 : vector<64x1xf32> to vector<64x64xf32>
    %45 = arith.addf %43, %44 : vector<64x64xf32>
    %cst_27 = arith.constant 0.000000e+00 : f32
    %46 = vector.broadcast %cst_27 : f32 to vector<64x64xf32>
    %47 = arith.cmpf oge, %45, %46 : vector<64x64xf32>
    %cst_28 = arith.constant 2.000000e-01 : f32
    %48 = vector.broadcast %cst_28 : f32 to vector<64x64xf32>
    %49 = arith.mulf %48, %45 : vector<64x64xf32>
    %50 = arith.select %47, %45, %49 : vector<64x64xi1>, vector<64x64xf32>
    %c0_29 = arith.constant 0 : index
    %c1_30 = arith.constant 1 : index
    %51 = vector.load %arg11[%c0_29, %c1_30] : memref<64x4xf32, #tpu.memory_space<vmem>>, vector<64x1xf32>
    %cst_31 = arith.constant dense<0xFF800000> : vector<64xf32>
    %52 = vector.multi_reduction <maximumf>, %50, %cst_31 [1] : vector<64x64xf32> to vector<64xf32>
    %53 = vector.shape_cast %52 : vector<64xf32> to vector<64x1xf32>
    %54 = arith.maximumf %51, %53 : vector<64x1xf32>
    %55 = vector.broadcast %54 : vector<64x1xf32> to vector<64x64xf32>
    %56 = arith.subf %50, %55 : vector<64x64xf32>
    %57 = math.exp %56 : vector<64x64xf32>
    %58 = arith.mulf %57, %4 : vector<64x64xf32>
    %59 = arith.subf %51, %54 : vector<64x1xf32>
    %60 = math.exp %59 : vector<64x1xf32>
    %c0_32 = arith.constant 0 : index
    %c1_33 = arith.constant 1 : index
    %61 = vector.load %arg12[%c0_32, %c1_33] : memref<64x4xf32, #tpu.memory_space<vmem>>, vector<64x1xf32>
    %62 = arith.mulf %60, %61 : vector<64x1xf32>
    %cst_34 = arith.constant dense<0.000000e+00> : vector<64xf32>
    %63 = vector.multi_reduction <add>, %58, %cst_34 [1] : vector<64x64xf32> to vector<64xf32>
    %64 = vector.shape_cast %63 : vector<64xf32> to vector<64x1xf32>
    %65 = arith.addf %62, %64 : vector<64x1xf32>
    %c0_35 = arith.constant 0 : index
    %c1_36 = arith.constant 1 : index
    %66 = vector.load %arg12[%c0_35, %c1_36] : memref<64x4xf32, #tpu.memory_space<vmem>>, vector<64x1xf32>
    tpu.vector_store %arg12[%c0_35, %c1_36], %65 {strides = array<i32>} : memref<64x4xf32, #tpu.memory_space<vmem>>, vector<64x1xf32>,
    %c0_37 = arith.constant 0 : index
    %c20 = arith.constant 20 : index
    %67 = vector.load %arg13[%c0_37, %c20] : memref<64x80xf32, #tpu.memory_space<vmem>>, vector<64x20xf32>
    %68 = vector.broadcast %60 : vector<64x1xf32> to vector<64x20xf32>
    %69 = arith.mulf %68, %67 : vector<64x20xf32>
    %70 = arith.truncf %58 : vector<64x64xf32> to vector<64x64xbf16>
    %71 = vector.extract_strided_slice %5 {offsets = [0, 20], sizes = [64, 20], strides = [1, 1]} : vector<64x80xbf16> to vector<64x20xbf16>
    %cst_38 = arith.constant dense<0.000000e+00> : vector<64x20xf32>
    %72 = tpu.matmul %70, %71, %cst_38 {dimension_numbers = #tpu.dot_dimension_numbers<[1], [0], [0], [1], [0, 0, 1, 1], [], []>} : vector<64x64xbf16>, vector<64x20xbf16>, vector<64x20xf32> -> vector<64x20xf32>
    %73 = arith.addf %69, %72 : vector<64x20xf32>
    %c0_39 = arith.constant 0 : index
    %c20_40 = arith.constant 20 : index
    %74 = vector.load %arg13[%c0_39, %c20_40] : memref<64x80xf32, #tpu.memory_space<vmem>>, vector<64x20xf32>
    tpu.vector_store %arg13[%c0_39, %c20_40], %73 {strides = array<i32>} : memref<64x80xf32, #tpu.memory_space<vmem>>, vector<64x20xf32>,
    %c0_41 = arith.constant 0 : index
    %c1_42 = arith.constant 1 : index
    %75 = vector.load %arg11[%c0_41, %c1_42] : memref<64x4xf32, #tpu.memory_space<vmem>>, vector<64x1xf32>
    tpu.vector_store %arg11[%c0_41, %c1_42], %54 {strides = array<i32>} : memref<64x4xf32, #tpu.memory_space<vmem>>, vector<64x1xf32>,
    %c2 = arith.constant 2 : index
    %c0_43 = arith.constant 0 : index
    %76 = vector.load %arg2[%c2, %c0_43] : memref<4x64xf32, #tpu.memory_space<vmem>>, vector<1x64xf32>
    %c0_44 = arith.constant 0 : index
    %c2_45 = arith.constant 2 : index
    %77 = vector.load %arg3[%c0_44, %c2_45] : memref<64x4xf32, #tpu.memory_space<vmem>>, vector<64x1xf32>
    %78 = vector.broadcast %76 : vector<1x64xf32> to vector<64x64xf32>
    %79 = vector.broadcast %77 : vector<64x1xf32> to vector<64x64xf32>
    %80 = arith.addf %78, %79 : vector<64x64xf32>
    %cst_46 = arith.constant 0.000000e+00 : f32
    %81 = vector.broadcast %cst_46 : f32 to vector<64x64xf32>
    %82 = arith.cmpf oge, %80, %81 : vector<64x64xf32>
    %cst_47 = arith.constant 2.000000e-01 : f32
    %83 = vector.broadcast %cst_47 : f32 to vector<64x64xf32>
    %84 = arith.mulf %83, %80 : vector<64x64xf32>
    %85 = arith.select %82, %80, %84 : vector<64x64xi1>, vector<64x64xf32>
    %c0_48 = arith.constant 0 : index
    %c2_49 = arith.constant 2 : index
    %86 = vector.load %arg11[%c0_48, %c2_49] : memref<64x4xf32, #tpu.memory_space<vmem>>, vector<64x1xf32>
    %cst_50 = arith.constant dense<0xFF800000> : vector<64xf32>
    %87 = vector.multi_reduction <maximumf>, %85, %cst_50 [1] : vector<64x64xf32> to vector<64xf32>
    %88 = vector.shape_cast %87 : vector<64xf32> to vector<64x1xf32>
    %89 = arith.maximumf %86, %88 : vector<64x1xf32>
    %90 = vector.broadcast %89 : vector<64x1xf32> to vector<64x64xf32>
    %91 = arith.subf %85, %90 : vector<64x64xf32>
    %92 = math.exp %91 : vector<64x64xf32>
    %93 = arith.mulf %92, %4 : vector<64x64xf32>
    %94 = arith.subf %86, %89 : vector<64x1xf32>
    %95 = math.exp %94 : vector<64x1xf32>
    %c0_51 = arith.constant 0 : index
    %c2_52 = arith.constant 2 : index
    %96 = vector.load %arg12[%c0_51, %c2_52] : memref<64x4xf32, #tpu.memory_space<vmem>>, vector<64x1xf32>
    %97 = arith.mulf %95, %96 : vector<64x1xf32>
    %cst_53 = arith.constant dense<0.000000e+00> : vector<64xf32>
    %98 = vector.multi_reduction <add>, %93, %cst_53 [1] : vector<64x64xf32> to vector<64xf32>
    %99 = vector.shape_cast %98 : vector<64xf32> to vector<64x1xf32>
    %100 = arith.addf %97, %99 : vector<64x1xf32>
    %c0_54 = arith.constant 0 : index
    %c2_55 = arith.constant 2 : index
    %101 = vector.load %arg12[%c0_54, %c2_55] : memref<64x4xf32, #tpu.memory_space<vmem>>, vector<64x1xf32>
    tpu.vector_store %arg12[%c0_54, %c2_55], %100 {strides = array<i32>} : memref<64x4xf32, #tpu.memory_space<vmem>>, vector<64x1xf32>,
    %c0_56 = arith.constant 0 : index
    %c40 = arith.constant 40 : index
    %102 = vector.load %arg13[%c0_56, %c40] : memref<64x80xf32, #tpu.memory_space<vmem>>, vector<64x20xf32>
    %103 = vector.broadcast %95 : vector<64x1xf32> to vector<64x20xf32>
    %104 = arith.mulf %103, %102 : vector<64x20xf32>
    %105 = arith.truncf %93 : vector<64x64xf32> to vector<64x64xbf16>
    %106 = vector.extract_strided_slice %5 {offsets = [0, 40], sizes = [64, 20], strides = [1, 1]} : vector<64x80xbf16> to vector<64x20xbf16>
    %cst_57 = arith.constant dense<0.000000e+00> : vector<64x20xf32>
    %107 = tpu.matmul %105, %106, %cst_57 {dimension_numbers = #tpu.dot_dimension_numbers<[1], [0], [0], [1], [0, 0, 1, 1], [], []>} : vector<64x64xbf16>, vector<64x20xbf16>, vector<64x20xf32> -> vector<64x20xf32>
    %108 = arith.addf %104, %107 : vector<64x20xf32>
    %c0_58 = arith.constant 0 : index
    %c40_59 = arith.constant 40 : index
    %109 = vector.load %arg13[%c0_58, %c40_59] : memref<64x80xf32, #tpu.memory_space<vmem>>, vector<64x20xf32>
    tpu.vector_store %arg13[%c0_58, %c40_59], %108 {strides = array<i32>} : memref<64x80xf32, #tpu.memory_space<vmem>>, vector<64x20xf32>,
    %c0_60 = arith.constant 0 : index
    %c2_61 = arith.constant 2 : index
    %110 = vector.load %arg11[%c0_60, %c2_61] : memref<64x4xf32, #tpu.memory_space<vmem>>, vector<64x1xf32>
    tpu.vector_store %arg11[%c0_60, %c2_61], %89 {strides = array<i32>} : memref<64x4xf32, #tpu.memory_space<vmem>>, vector<64x1xf32>,
    %c3 = arith.constant 3 : index
    %c0_62 = arith.constant 0 : index
    %111 = vector.load %arg2[%c3, %c0_62] : memref<4x64xf32, #tpu.memory_space<vmem>>, vector<1x64xf32>
    %c0_63 = arith.constant 0 : index
    %c3_64 = arith.constant 3 : index
    %112 = vector.load %arg3[%c0_63, %c3_64] : memref<64x4xf32, #tpu.memory_space<vmem>>, vector<64x1xf32>
    %113 = vector.broadcast %111 : vector<1x64xf32> to vector<64x64xf32>
    %114 = vector.broadcast %112 : vector<64x1xf32> to vector<64x64xf32>
    %115 = arith.addf %113, %114 : vector<64x64xf32>
    %cst_65 = arith.constant 0.000000e+00 : f32
    %116 = vector.broadcast %cst_65 : f32 to vector<64x64xf32>
    %117 = arith.cmpf oge, %115, %116 : vector<64x64xf32>
    %cst_66 = arith.constant 2.000000e-01 : f32
    %118 = vector.broadcast %cst_66 : f32 to vector<64x64xf32>
    %119 = arith.mulf %118, %115 : vector<64x64xf32>
    %120 = arith.select %117, %115, %119 : vector<64x64xi1>, vector<64x64xf32>
    %c0_67 = arith.constant 0 : index
    %c3_68 = arith.constant 3 : index
    %121 = vector.load %arg11[%c0_67, %c3_68] : memref<64x4xf32, #tpu.memory_space<vmem>>, vector<64x1xf32>
    %cst_69 = arith.constant dense<0xFF800000> : vector<64xf32>
    %122 = vector.multi_reduction <maximumf>, %120, %cst_69 [1] : vector<64x64xf32> to vector<64xf32>
    %123 = vector.shape_cast %122 : vector<64xf32> to vector<64x1xf32>
    %124 = arith.maximumf %121, %123 : vector<64x1xf32>
    %125 = vector.broadcast %124 : vector<64x1xf32> to vector<64x64xf32>
    %126 = arith.subf %120, %125 : vector<64x64xf32>
    %127 = math.exp %126 : vector<64x64xf32>
    %128 = arith.mulf %127, %4 : vector<64x64xf32>
    %129 = arith.subf %121, %124 : vector<64x1xf32>
    %130 = math.exp %129 : vector<64x1xf32>
    %c0_70 = arith.constant 0 : index
    %c3_71 = arith.constant 3 : index
    %131 = vector.load %arg12[%c0_70, %c3_71] : memref<64x4xf32, #tpu.memory_space<vmem>>, vector<64x1xf32>
    %132 = arith.mulf %130, %131 : vector<64x1xf32>
    %cst_72 = arith.constant dense<0.000000e+00> : vector<64xf32>
    %133 = vector.multi_reduction <add>, %128, %cst_72 [1] : vector<64x64xf32> to vector<64xf32>
    %134 = vector.shape_cast %133 : vector<64xf32> to vector<64x1xf32>
    %135 = arith.addf %132, %134 : vector<64x1xf32>
    %c0_73 = arith.constant 0 : index
    %c3_74 = arith.constant 3 : index
    %136 = vector.load %arg12[%c0_73, %c3_74] : memref<64x4xf32, #tpu.memory_space<vmem>>, vector<64x1xf32>
    tpu.vector_store %arg12[%c0_73, %c3_74], %135 {strides = array<i32>} : memref<64x4xf32, #tpu.memory_space<vmem>>, vector<64x1xf32>,
    %c0_75 = arith.constant 0 : index
    %c60 = arith.constant 60 : index
    %137 = vector.load %arg13[%c0_75, %c60] : memref<64x80xf32, #tpu.memory_space<vmem>>, vector<64x20xf32>
    %138 = vector.broadcast %130 : vector<64x1xf32> to vector<64x20xf32>
    %139 = arith.mulf %138, %137 : vector<64x20xf32>
    %140 = arith.truncf %128 : vector<64x64xf32> to vector<64x64xbf16>
    %141 = vector.extract_strided_slice %5 {offsets = [0, 60], sizes = [64, 20], strides = [1, 1]} : vector<64x80xbf16> to vector<64x20xbf16>
    %cst_76 = arith.constant dense<0.000000e+00> : vector<64x20xf32>
    %142 = tpu.matmul %140, %141, %cst_76 {dimension_numbers = #tpu.dot_dimension_numbers<[1], [0], [0], [1], [0, 0, 1, 1], [], []>} : vector<64x64xbf16>, vector<64x20xbf16>, vector<64x20xf32> -> vector<64x20xf32>
    %143 = arith.addf %139, %142 : vector<64x20xf32>
    %c0_77 = arith.constant 0 : index
    %c60_78 = arith.constant 60 : index
    %144 = vector.load %arg13[%c0_77, %c60_78] : memref<64x80xf32, #tpu.memory_space<vmem>>, vector<64x20xf32>
    tpu.vector_store %arg13[%c0_77, %c60_78], %143 {strides = array<i32>} : memref<64x80xf32, #tpu.memory_space<vmem>>, vector<64x20xf32>,
    %c0_79 = arith.constant 0 : index
    %c3_80 = arith.constant 3 : index
    %145 = vector.load %arg11[%c0_79, %c3_80] : memref<64x4xf32, #tpu.memory_space<vmem>>, vector<64x1xf32>
    tpu.vector_store %arg11[%c0_79, %c3_80], %124 {strides = array<i32>} : memref<64x4xf32, #tpu.memory_space<vmem>>, vector<64x1xf32>,
    %c0_i32_81 = arith.constant 0 : i32
    %146 = arith.cmpi eq, %arg1, %c0_i32_81 : i32
    %147 = arith.extui %146 : i1 to i32
    %c0_i32_82 = arith.constant 0 : i32
    %148 = arith.cmpi ne, %147, %c0_i32_82 : i32
    scf.if %148 {
      %c0_83 = arith.constant 0 : index
      %c0_84 = arith.constant 0 : index
      %149 = vector.load %arg8[%c0_83, %c0_84] : memref<64x1xf32, #tpu.memory_space<vmem>>, vector<64x1xf32>
      %c0_85 = arith.constant 0 : index
      %c0_86 = arith.constant 0 : index
      %150 = vector.load %arg6[%c0_85, %c0_86] : memref<64x4xf32, #tpu.memory_space<vmem>>, vector<64x4xf32>
      %c0_87 = arith.constant 0 : index
      %c0_88 = arith.constant 0 : index
      %151 = vector.load %arg7[%c0_87, %c0_88] : memref<1x4xf32, #tpu.memory_space<vmem>>, vector<1x4xf32>
      %c0_89 = arith.constant 0 : index
      %c0_90 = arith.constant 0 : index
      %152 = vector.load %arg12[%c0_89, %c0_90] : memref<64x4xf32, #tpu.memory_space<vmem>>, vector<64x1xf32>
      %153 = tpu.reciprocal %152 {approx = true} : vector<64x1xf32> -> vector<64x1xf32>
      %c0_91 = arith.constant 0 : index
      %c0_92 = arith.constant 0 : index
      %154 = vector.load %arg13[%c0_91, %c0_92] : memref<64x80xf32, #tpu.memory_space<vmem>>, vector<64x16xf32>
      %155 = vector.broadcast %153 : vector<64x1xf32> to vector<64x16xf32>
      %156 = arith.mulf %154, %155 : vector<64x16xf32>
      %c0_93 = arith.constant 0 : index
      %c16 = arith.constant 16 : index
      %157 = vector.load %arg13[%c0_93, %c16] : memref<64x80xf32, #tpu.memory_space<vmem>>, vector<64x4xf32>
      %158 = vector.broadcast %153 : vector<64x1xf32> to vector<64x4xf32>
      %159 = arith.mulf %157, %158 : vector<64x4xf32>
      %160 = vector.broadcast %149 : vector<64x1xf32> to vector<64x4xf32>
      %161 = arith.mulf %159, %160 : vector<64x4xf32>
      %162 = vector.broadcast %149 : vector<64x1xf32> to vector<64x16xf32>
      %163 = arith.mulf %156, %162 : vector<64x16xf32>
      %cst_94 = arith.constant 0.000000e+00 : f32
      %164 = vector.broadcast %cst_94 : f32 to vector<64x16xf32>
      %165 = arith.maximumf %163, %164 : vector<64x16xf32>
      %166 = arith.mulf %161, %150 : vector<64x4xf32>
      %cst_95 = arith.constant dense<0.000000e+00> : vector<64xf32>
      %167 = vector.multi_reduction <add>, %166, %cst_95 [1] : vector<64x4xf32> to vector<64xf32>
      %168 = vector.shape_cast %167 : vector<64xf32> to vector<64x1xf32>
      %cst_96 = arith.constant 9.99999974E-6 : f32
      %169 = vector.broadcast %cst_96 : f32 to vector<64x4xf32>
      %170 = arith.maximumf %161, %169 : vector<64x4xf32>
      %171 = vector.broadcast %151 : vector<1x4xf32> to vector<64x4xf32>
      %172 = arith.mulf %171, %170 : vector<64x4xf32>
      %173 = math.log %170 : vector<64x4xf32>
      %174 = arith.mulf %172, %173 : vector<64x4xf32>
      %cst_97 = arith.constant dense<0.000000e+00> : vector<64xf32>
      %175 = vector.multi_reduction <add>, %174, %cst_97 [1] : vector<64x4xf32> to vector<64xf32>
      %176 = vector.shape_cast %175 : vector<64xf32> to vector<64x1xf32>
      %cst_98 = arith.constant 0.000000e+00 : f32
      %177 = vector.broadcast %cst_98 : f32 to vector<64x1xf32>
      %178 = arith.subf %177, %176 : vector<64x1xf32>
      %c0_99 = arith.constant 0 : index
      %c1_100 = arith.constant 1 : index
      %179 = vector.load %arg12[%c0_99, %c1_100] : memref<64x4xf32, #tpu.memory_space<vmem>>, vector<64x1xf32>
      %180 = tpu.reciprocal %179 {approx = true} : vector<64x1xf32> -> vector<64x1xf32>
      %c0_101 = arith.constant 0 : index
      %c20_102 = arith.constant 20 : index
      %181 = vector.load %arg13[%c0_101, %c20_102] : memref<64x80xf32, #tpu.memory_space<vmem>>, vector<64x16xf32>
      %182 = vector.broadcast %180 : vector<64x1xf32> to vector<64x16xf32>
      %183 = arith.mulf %181, %182 : vector<64x16xf32>
      %c0_103 = arith.constant 0 : index
      %c36 = arith.constant 36 : index
      %184 = vector.load %arg13[%c0_103, %c36] : memref<64x80xf32, #tpu.memory_space<vmem>>, vector<64x4xf32>
      %185 = vector.broadcast %180 : vector<64x1xf32> to vector<64x4xf32>
      %186 = arith.mulf %184, %185 : vector<64x4xf32>
      %187 = vector.broadcast %149 : vector<64x1xf32> to vector<64x4xf32>
      %188 = arith.mulf %186, %187 : vector<64x4xf32>
      %189 = vector.broadcast %149 : vector<64x1xf32> to vector<64x16xf32>
      %190 = arith.mulf %183, %189 : vector<64x16xf32>
      %cst_104 = arith.constant 0.000000e+00 : f32
      %191 = vector.broadcast %cst_104 : f32 to vector<64x16xf32>
      %192 = arith.maximumf %190, %191 : vector<64x16xf32>
      %193 = arith.mulf %188, %150 : vector<64x4xf32>
      %cst_105 = arith.constant dense<0.000000e+00> : vector<64xf32>
      %194 = vector.multi_reduction <add>, %193, %cst_105 [1] : vector<64x4xf32> to vector<64xf32>
      %195 = vector.shape_cast %194 : vector<64xf32> to vector<64x1xf32>
      %cst_106 = arith.constant 9.99999974E-6 : f32
      %196 = vector.broadcast %cst_106 : f32 to vector<64x4xf32>
      %197 = arith.maximumf %188, %196 : vector<64x4xf32>
      %198 = vector.broadcast %151 : vector<1x4xf32> to vector<64x4xf32>
      %199 = arith.mulf %198, %197 : vector<64x4xf32>
      %200 = math.log %197 : vector<64x4xf32>
      %201 = arith.mulf %199, %200 : vector<64x4xf32>
      %cst_107 = arith.constant dense<0.000000e+00> : vector<64xf32>
      %202 = vector.multi_reduction <add>, %201, %cst_107 [1] : vector<64x4xf32> to vector<64xf32>
      %203 = vector.shape_cast %202 : vector<64xf32> to vector<64x1xf32>
      %cst_108 = arith.constant 0.000000e+00 : f32
      %204 = vector.broadcast %cst_108 : f32 to vector<64x1xf32>
      %205 = arith.subf %204, %203 : vector<64x1xf32>
      %c0_109 = arith.constant 0 : index
      %c2_110 = arith.constant 2 : index
      %206 = vector.load %arg12[%c0_109, %c2_110] : memref<64x4xf32, #tpu.memory_space<vmem>>, vector<64x1xf32>
      %207 = tpu.reciprocal %206 {approx = true} : vector<64x1xf32> -> vector<64x1xf32>
      %c0_111 = arith.constant 0 : index
      %c40_112 = arith.constant 40 : index
      %208 = vector.load %arg13[%c0_111, %c40_112] : memref<64x80xf32, #tpu.memory_space<vmem>>, vector<64x16xf32>
      %209 = vector.broadcast %207 : vector<64x1xf32> to vector<64x16xf32>
      %210 = arith.mulf %208, %209 : vector<64x16xf32>
      %c0_113 = arith.constant 0 : index
      %c56 = arith.constant 56 : index
      %211 = vector.load %arg13[%c0_113, %c56] : memref<64x80xf32, #tpu.memory_space<vmem>>, vector<64x4xf32>
      %212 = vector.broadcast %207 : vector<64x1xf32> to vector<64x4xf32>
      %213 = arith.mulf %211, %212 : vector<64x4xf32>
      %214 = vector.broadcast %149 : vector<64x1xf32> to vector<64x4xf32>
      %215 = arith.mulf %213, %214 : vector<64x4xf32>
      %216 = vector.broadcast %149 : vector<64x1xf32> to vector<64x16xf32>
      %217 = arith.mulf %210, %216 : vector<64x16xf32>
      %cst_114 = arith.constant 0.000000e+00 : f32
      %218 = vector.broadcast %cst_114 : f32 to vector<64x16xf32>
      %219 = arith.maximumf %217, %218 : vector<64x16xf32>
      %220 = arith.mulf %215, %150 : vector<64x4xf32>
      %cst_115 = arith.constant dense<0.000000e+00> : vector<64xf32>
      %221 = vector.multi_reduction <add>, %220, %cst_115 [1] : vector<64x4xf32> to vector<64xf32>
      %222 = vector.shape_cast %221 : vector<64xf32> to vector<64x1xf32>
      %cst_116 = arith.constant 9.99999974E-6 : f32
      %223 = vector.broadcast %cst_116 : f32 to vector<64x4xf32>
      %224 = arith.maximumf %215, %223 : vector<64x4xf32>
      %225 = vector.broadcast %151 : vector<1x4xf32> to vector<64x4xf32>
      %226 = arith.mulf %225, %224 : vector<64x4xf32>
      %227 = math.log %224 : vector<64x4xf32>
      %228 = arith.mulf %226, %227 : vector<64x4xf32>
      %cst_117 = arith.constant dense<0.000000e+00> : vector<64xf32>
      %229 = vector.multi_reduction <add>, %228, %cst_117 [1] : vector<64x4xf32> to vector<64xf32>
      %230 = vector.shape_cast %229 : vector<64xf32> to vector<64x1xf32>
      %cst_118 = arith.constant 0.000000e+00 : f32
      %231 = vector.broadcast %cst_118 : f32 to vector<64x1xf32>
      %232 = arith.subf %231, %230 : vector<64x1xf32>
      %c0_119 = arith.constant 0 : index
      %c3_120 = arith.constant 3 : index
      %233 = vector.load %arg12[%c0_119, %c3_120] : memref<64x4xf32, #tpu.memory_space<vmem>>, vector<64x1xf32>
      %234 = tpu.reciprocal %233 {approx = true} : vector<64x1xf32> -> vector<64x1xf32>
      %c0_121 = arith.constant 0 : index
      %c60_122 = arith.constant 60 : index
      %235 = vector.load %arg13[%c0_121, %c60_122] : memref<64x80xf32, #tpu.memory_space<vmem>>, vector<64x16xf32>
      %236 = vector.broadcast %234 : vector<64x1xf32> to vector<64x16xf32>
      %237 = arith.mulf %235, %236 : vector<64x16xf32>
      %c0_123 = arith.constant 0 : index
      %c76 = arith.constant 76 : index
      %238 = vector.load %arg13[%c0_123, %c76] : memref<64x80xf32, #tpu.memory_space<vmem>>, vector<64x4xf32>
      %239 = vector.broadcast %234 : vector<64x1xf32> to vector<64x4xf32>
      %240 = arith.mulf %238, %239 : vector<64x4xf32>
      %241 = vector.broadcast %149 : vector<64x1xf32> to vector<64x4xf32>
      %242 = arith.mulf %240, %241 : vector<64x4xf32>
      %243 = vector.broadcast %149 : vector<64x1xf32> to vector<64x16xf32>
      %244 = arith.mulf %237, %243 : vector<64x16xf32>
      %cst_124 = arith.constant 0.000000e+00 : f32
      %245 = vector.broadcast %cst_124 : f32 to vector<64x16xf32>
      %246 = arith.maximumf %244, %245 : vector<64x16xf32>
      %247 = arith.mulf %242, %150 : vector<64x4xf32>
      %cst_125 = arith.constant dense<0.000000e+00> : vector<64xf32>
      %248 = vector.multi_reduction <add>, %247, %cst_125 [1] : vector<64x4xf32> to vector<64xf32>
      %249 = vector.shape_cast %248 : vector<64xf32> to vector<64x1xf32>
      %cst_126 = arith.constant 9.99999974E-6 : f32
      %250 = vector.broadcast %cst_126 : f32 to vector<64x4xf32>
      %251 = arith.maximumf %242, %250 : vector<64x4xf32>
      %252 = vector.broadcast %151 : vector<1x4xf32> to vector<64x4xf32>
      %253 = arith.mulf %252, %251 : vector<64x4xf32>
      %254 = math.log %251 : vector<64x4xf32>
      %255 = arith.mulf %253, %254 : vector<64x4xf32>
      %cst_127 = arith.constant dense<0.000000e+00> : vector<64xf32>
      %256 = vector.multi_reduction <add>, %255, %cst_127 [1] : vector<64x4xf32> to vector<64xf32>
      %257 = vector.shape_cast %256 : vector<64xf32> to vector<64x1xf32>
      %cst_128 = arith.constant 0.000000e+00 : f32
      %258 = vector.broadcast %cst_128 : f32 to vector<64x1xf32>
      %259 = arith.subf %258, %257 : vector<64x1xf32>
      %260 = tpu.concatenate %165, %192, %219, %246 in 1 : vector<64x16xf32>, vector<64x16xf32>, vector<64x16xf32>, vector<64x16xf32> -> vector<64x64xf32>
      %c0_129 = arith.constant 0 : index
      %c0_130 = arith.constant 0 : index
      %261 = vector.load %arg9[%c0_129, %c0_130] : memref<64x64xf32, #tpu.memory_space<vmem>>, vector<64x64xf32>
      tpu.vector_store %arg9[%c0_129, %c0_130], %260 {strides = array<i32>} : memref<64x64xf32, #tpu.memory_space<vmem>>, vector<64x64xf32>,
      %262 = tpu.concatenate %168, %195, %222, %249, %178, %205, %232, %259 in 1 : vector<64x1xf32>, vector<64x1xf32>, vector<64x1xf32>, vector<64x1xf32>, vector<64x1xf32>, vector<64x1xf32>, vector<64x1xf32>, vector<64x1xf32> -> vector<64x8xf32>
      %c0_131 = arith.constant 0 : index
      %c0_132 = arith.constant 0 : index
      %263 = vector.load %arg10[%c0_131, %c0_132] : memref<64x8xf32, #tpu.memory_space<vmem>>, vector<64x8xf32>
      tpu.vector_store %arg10[%c0_131, %c0_132], %262 {strides = array<i32>} : memref<64x8xf32, #tpu.memory_space<vmem>>, vector<64x8xf32>,
    } else {
    }
    return
  }
  func.func @transform_0(%arg0: i32, %arg1: i32) -> (i32, i32) {
    %c0_i32 = arith.constant 0 : i32
    %c0_i32_0 = arith.constant 0 : i32
    return %c0_i32, %arg1 : i32, i32
  }
  func.func @transform_1(%arg0: i32, %arg1: i32) -> (i32, i32) {
    %c0_i32 = arith.constant 0 : i32
    %c0_i32_0 = arith.constant 0 : i32
    return %arg0, %c0_i32 : i32, i32
  }
  func.func @transform_2(%arg0: i32, %arg1: i32) -> (i32, i32) {
    %c0_i32 = arith.constant 0 : i32
    return %arg0, %arg1 : i32, i32
  }
  func.func @transform_3(%arg0: i32, %arg1: i32) -> (i32, i32) {
    %c0_i32 = arith.constant 0 : i32
    %c0_i32_0 = arith.constant 0 : i32
    return %arg1, %c0_i32 : i32, i32
  }
  func.func @transform_4(%arg0: i32, %arg1: i32) -> (i32, i32) {
    %c0_i32 = arith.constant 0 : i32
    %c0_i32_0 = arith.constant 0 : i32
    return %arg0, %c0_i32 : i32, i32
  }
  func.func @transform_5(%arg0: i32, %arg1: i32) -> (i32, i32) {
    %c0_i32 = arith.constant 0 : i32
    %c0_i32_0 = arith.constant 0 : i32
    %c0_i32_1 = arith.constant 0 : i32
    return %c0_i32, %c0_i32_0 : i32, i32
  }
  func.func @transform_6(%arg0: i32, %arg1: i32) -> (i32, i32) {
    %c0_i32 = arith.constant 0 : i32
    %c0_i32_0 = arith.constant 0 : i32
    return %arg0, %c0_i32 : i32, i32
  }
  func.func @transform_7(%arg0: i32, %arg1: i32) -> (i32, i32) {
    %c0_i32 = arith.constant 0 : i32
    %c0_i32_0 = arith.constant 0 : i32
    return %arg0, %c0_i32 : i32, i32
  }
  func.func @transform_8(%arg0: i32, %arg1: i32) -> (i32, i32) {
    %c0_i32 = arith.constant 0 : i32
    %c0_i32_0 = arith.constant 0 : i32
    return %arg0, %c0_i32 : i32, i32
  }
}

</mosaic_0001>

<bundles_post_ra>
// kernel: tpu_custom_call.1
= control target key start
LH: loop header
LB: loop body
LE: loop exit
PB: predicated region body
PF: predicated region fallthrough
CT: control target
= control target key end

     0   :  { %v6202_v2 = vmov 0   ;;  %s6191_s0 = inlined_call_operand.vmem [shape: f32[4,64], index: 0, kind: input, shape index: {}]   ;;  %s6192_s1 = inlined_call_operand.vmem [shape: f32[64,4], index: 1, kind: input, shape index: {}]   ;;  %s6193_s2 = inlined_call_operand.vmem [shape: s8[64,64], index: 2, kind: input, shape index: {}]   ;;  %s6194_s3 = inlined_call_operand.vmem [shape: bf16[64,80], index: 3, kind: input, shape index: {}]   ;;  %s6195_s4 = inlined_call_operand.vmem [shape: f32[64,4], index: 4, kind: input, shape index: {}]   ;;  %s6196_s5 = inlined_call_operand.vmem [shape: f32[1,4], index: 5, kind: input, shape index: {}]   ;;  %s6197_s6 = inlined_call_operand.vmem [shape: f32[64,1], index: 6, kind: input, shape index: {}]   ;;  %s6198_s7 = inlined_call_operand.hbm [shape: f32[64,64], index: 7, kind: output, shape index: {0}]   ;;  %s6199_s8 = inlined_call_operand.vmem [shape: f32[64,8], index: 8, kind: output, shape index: {1}]  }
   0x1   :  { %v3953_v0 = vld [vmem:[%s6192_s1 + $0x10] sm:$0xff]  ;;  %v87_v1 = vld [vmem:[%s6192_s1] sm:$0xff]  ;;  %3599 = vset.pattern.permute.xlu1 %v6202_v2  ;;  %3598 = vset.pattern.permute.xlu0 %v6202_v2  ;;  %v3964_v3 = vld [vmem:[%s6192_s1 + $0x18] sm:$0xff] }
   0x2   :  { %111 = vperm.xlu1 %3599, %v3953_v0   ;;  %101 = vperm.xlu0 %3598, %v87_v1   ;;  %v3969_v4 = vld [vmem:[%s6192_s1 + $0x8] sm:$0xff]  ;;  %v3622_v5 = vld [vmem:[%s6194_s3] sm:$0xff]  }
   0x3   :  { %3508 = vmatprep.subr.bf16.mxu0 %v3622_v5  ;;  %v3624_v6 = vld [vmem:[%s6194_s3 + $0x8] sm:$0xff]   ;;  %v3987_v8 = vld [vmem:[%s6192_s1 + $0x20] sm:$0xff] }
   0x4   :  { %v3982_v7 = vld [vmem:[%s6192_s1 + $0x28] sm:$0xff]  ;;  %3509 = vmatpush3.bf16.msra.mxu0 %v3622_v5 }
   0x6   :  { %116 = vperm.xlu1 %3599, %v3964_v3   ;;  %106 = vperm.xlu0 %3598, %v3969_v4  }
   0x7   :  { %14 = vsyncpa [#allocation6], 0  ;;  %3510 = vmatprep.subr.bf16.mxu0 %v3624_v6  ;;  %v3623_v9 = vld [vmem:[%s6194_s3 + $0x10] sm:$0xff]   ;;  %v3997_v10 = vld [vmem:[%s6192_s1 + $0x38] sm:$0xff]  ;;  %v6206_v13 = vmov 1   ;;  %s3881_s29 = smov 108  }
   0x8   :  { %v4002_v11 = vld [vmem:[%s6192_s1 + $0x30] sm:$0xff]  ;;  %3511 = vmatpush3.bf16.msra.mxu0 %v3624_v6  ;;  %v3625_v12 = vld [vmem:[%s6194_s3 + $0x18] sm:$0xff]   ;;  %v6200_v14 = vmov 2   ;;  %v3451_v15 = vld [vmem:[%s6191_s0] ss:$0 sm:$0xff]  ;;  %vm179_vm1 = vcmask 523264  }
   0x9   :  { %3512 = vmatprep.subr.bf16.mxu0 %v3623_v9  ;;  %vm34_vm7 = vcmask 31744   ;;  %v3883_v46 = vmov -inf   ;;  %v4054_v49 = vld [vmem:[%s6191_s0 + $0x1] ss:$0 sm:$0xff]  ;;  %s3885_s19 = smov 88   ;;  %s3889_s20 = smov 68  }
   0xa   :  { %126 = vperm.xlu1 %3599, %v3982_v7   ;;  %121 = vperm.xlu0 %3598, %v3987_v8   ;;  %35 = vst.msk [vmem:[#allocation2] sm:$0xff] %vm34_vm7, %v3883_v46  ;;  %36 = vst.msk [vmem:[#allocation2 + $0x8] sm:$0xff] %vm34_vm7, %v3883_v46  ;;  %s3890_s21 = smov 60   ;;  %s3892_s28 = smov 112  }
   0xb   :  { %37 = vst.msk [vmem:[#allocation2 + $0x10] sm:$0xff] %vm34_vm7, %v3883_v46  ;;  %38 = vst.msk [vmem:[#allocation2 + $0x18] sm:$0xff] %vm34_vm7, %v3883_v46  ;;  %s3893_s9 = smov 36   ;;  %s3894_s10 = smov 92  }
   0xc   :  { %3513 = vmatpush3.bf16.msra.mxu0 %v3623_v9  ;;  %39 = vst.msk [vmem:[#allocation2 + $0x20] sm:$0xff] %vm34_vm7, %v3883_v46  ;;  %40 = vst.msk [vmem:[#allocation2 + $0x28] sm:$0xff] %vm34_vm7, %v3883_v46  ;;  %s3895_s11 = smov 56   ;;  %s3896_s12 = smov 72  }
   0xd   :  { %3514 = vmatprep.subr.bf16.mxu0 %v3625_v12  ;;  %41 = vst.msk [vmem:[#allocation2 + $0x30] sm:$0xff] %vm34_vm7, %v3883_v46  ;;  %42 = vst.msk [vmem:[#allocation2 + $0x38] sm:$0xff] %vm34_vm7, %v3883_v46  ;;  %s3897_s15 = smov 76   ;;  %s3900_s27 = smov 120  }
   0xe   :  { %136 = vperm.xlu1 %3599, %v3997_v10   ;;  %131 = vperm.xlu0 %3598, %v4002_v11  }
  0x10   :  { %3515 = vmatpush3.bf16.msra.mxu0 %v3625_v12 }
  0x12   :  { %3601 = vset.pattern.permute.xlu1 %v6206_v13  ;;  %3600 = vset.pattern.permute.xlu0 %v6206_v13 }
  0x13   :  { %571 = vperm.xlu1 %3601, %v3969_v4   ;;  %566 = vperm.xlu0 %3600, %v87_v1  }
  0x17   :  { %576 = vperm.xlu1 %3601, %v3953_v0   ;;  %581 = vperm.xlu0 %3600, %v3964_v3  }
  0x1b   :  { %586 = vperm.xlu1 %3601, %v3987_v8   ;;  %591 = vperm.xlu0 %3600, %v3982_v7  }
  0x1f   :  { %596 = vperm.xlu1 %3601, %v4002_v11   ;;  %601 = vperm.xlu0 %3600, %v3997_v10  }
  0x23   :  { %889 = vrot.lane.b32.xlu1 %v3622_v5, %s3881_s29  ;;  %891 = vrot.lane.b32.xlu0 %v3624_v6, %s3881_s29 }
  0x24   :  { %3602 = vset.pattern.permute.xlu1 %v6200_v14  ;;  %3603 = vset.pattern.permute.xlu0 %v6200_v14 }
  0x27   :  { %893 = vrot.lane.b32.xlu1 %v3623_v9, %s3881_s29  ;;  %895 = vrot.lane.b32.xlu0 %v3625_v12, %s3881_s29 }
  0x2b   :  { %1050 = vperm.xlu1 %3602, %v87_v1  }
  0x81   :  { %v112_v16 = vpop.permute.xlu1 %111  ;;  %v102_v17 = vpop.permute.xlu0 %101 }
  0x82   :  { %v141_v18 = vadd.f32 %v3451_v15, %v112_v16  ;;  %v139_v19 = vadd.f32 %v3451_v15, %v102_v17 }
  0x84   :  { %vm147_vm0 = vcmp.ge.f32.partialorder %v139_v19, 0.0  ;;  %v155_v20 = vmul.f32 0.2, %v139_v19  ;;  %v157_v21 = vmul.f32 0.2, %v141_v18  ;;  %vm149_vm2 = vcmp.ge.f32.partialorder %v141_v18, 0.0 }
  0x85   :  { %v117_v22 = vpop.permute.xlu1 %116  ;;  %v107_v23 = vpop.permute.xlu0 %106 }
  0x86   :  { %v142_v24 = vadd.f32 %v3451_v15, %v117_v22  ;;  %v140_v25 = vadd.f32 %v3451_v15, %v107_v23  ;;  %v4023_v26 = vsel %vm147_vm0, %v139_v19, %v155_v20  ;;  %v4027_v28 = vsel %vm149_vm2, %v141_v18, %v157_v21 }
  0x87   :  { %v180_v27 = vsel %vm179_vm1, %v4023_v26, -inf  ;;  %v186_v36 = vsel %vm179_vm1, %v4027_v28, -inf }
  0x88   :  { %181 = vmax.xlane.f32.xlu0 %v180_v27  ;;  %vm148_vm3 = vcmp.ge.f32.partialorder %v140_v25, 0.0  ;;  %v156_v29 = vmul.f32 0.2, %v140_v25  ;;  %v158_v30 = vmul.f32 0.2, %v142_v24  ;;  %vm150_vm4 = vcmp.ge.f32.partialorder %v142_v24, 0.0 }
  0x89   :  { %v127_v31 = vpop.permute.xlu1 %126  ;;  %v122_v32 = vpop.permute.xlu0 %121 }
  0x8a   :  { %v144_v33 = vadd.f32 %v3451_v15, %v127_v31  ;;  %v143_v34 = vadd.f32 %v3451_v15, %v122_v32  ;;  %v4029_v35 = vsel %vm148_vm3, %v140_v25, %v156_v29  ;;  %v4035_v38 = vsel %vm150_vm4, %v142_v24, %v158_v30 }
  0x8b   :  { %v183_v37 = vsel %vm179_vm1, %v4029_v35, -inf  ;;  %v189_v47 = vsel %vm179_vm1, %v4035_v38, -inf  ;;  %vm356_vm4 = vcmask 7168  }
  0x8c   :  { %187 = vmax.xlane.f32.xlu0 %v186_v36  ;;  %184 = vmax.xlane.f32.xlu1 %v183_v37  ;;  %vm151_vm5 = vcmp.ge.f32.partialorder %v143_v34, 0.0  ;;  %v159_v39 = vmul.f32 0.2, %v143_v34  ;;  %v160_v40 = vmul.f32 0.2, %v144_v33  ;;  %vm152_vm6 = vcmp.ge.f32.partialorder %v144_v33, 0.0 }
  0x8d   :  { %v137_v41 = vpop.permute.xlu1 %136  ;;  %v132_v42 = vpop.permute.xlu0 %131 }
  0x8e   :  { %v146_v43 = vadd.f32 %v3451_v15, %v137_v41  ;;  %v145_v44 = vadd.f32 %v3451_v15, %v132_v42  ;;  %v4037_v45 = vsel %vm151_vm5, %v143_v34, %v159_v39  ;;  %v4057_v50 = vsel %vm152_vm6, %v144_v33, %v160_v40 }
  0x8f   :  { %v192_v48 = vsel %vm179_vm1, %v4037_v45, -inf  ;;  %v195_v58 = vsel %vm179_vm1, %v4057_v50, -inf  ;;  %v6204_v41 = vmov 0.0   ;;  %vm820_vm5 = vcmask 15368  }
  0x90   :  { %190 = vmax.xlane.f32.xlu0 %v189_v47  ;;  %193 = vmax.xlane.f32.xlu1 %v192_v48  ;;  %vm153_vm8 = vcmp.ge.f32.partialorder %v145_v44, 0.0  ;;  %v161_v51 = vmul.f32 0.2, %v145_v44  ;;  %v162_v52 = vmul.f32 0.2, %v146_v43  ;;  %vm154_vm9 = vcmp.ge.f32.partialorder %v146_v43, 0.0 }
  0x91   :  { %43 = vst.msk [vmem:[#allocation3] sm:$0xff] %vm34_vm7, %v6204_v41  ;;  %44 = vst.msk [vmem:[#allocation3 + $0x8] sm:$0xff] %vm34_vm7, %v6204_v41 }
  0x92   :  { %v572_v53 = vpop.permute.xlu1 %571  ;;  %v567_v54 = vpop.permute.xlu0 %566  ;;  %v4059_v55 = vsel %vm153_vm8, %v145_v44, %v161_v51  ;;  %v4067_v60 = vsel %vm154_vm9, %v146_v43, %v162_v52  ;;  %45 = vst.msk [vmem:[#allocation3 + $0x10] sm:$0xff] %vm34_vm7, %v6204_v41  ;;  %46 = vst.msk [vmem:[#allocation3 + $0x18] sm:$0xff] %vm34_vm7, %v6204_v41 }
  0x93   :  { %v605_v56 = vadd.f32 %v4054_v49, %v572_v53  ;;  %v604_v57 = vadd.f32 %v4054_v49, %v567_v54  ;;  %v198_v59 = vsel %vm179_vm1, %v4059_v55, -inf  ;;  %v201_v9 = vsel %vm179_vm1, %v4067_v60, -inf  ;;  %47 = vst.msk [vmem:[#allocation3 + $0x20] sm:$0xff] %vm34_vm7, %v6204_v41  ;;  %48 = vst.msk [vmem:[#allocation3 + $0x28] sm:$0xff] %vm34_vm7, %v6204_v41 }
  0x94   :  { %196 = vmax.xlane.f32.xlu0 %v195_v58  ;;  %199 = vmax.xlane.f32.xlu1 %v198_v59  ;;  %49 = vst.msk [vmem:[#allocation3 + $0x30] sm:$0xff] %vm34_vm7, %v6204_v41  ;;  %50 = vst.msk [vmem:[#allocation3 + $0x38] sm:$0xff] %vm34_vm7, %v6204_v41  ;;  %v4144_v58 = vld [vmem:[#allocation2] sm:$0xff] }
  0x95   :  { %vm612_vm10 = vcmp.ge.f32.partialorder %v604_v57, 0.0  ;;  %v620_v61 = vmul.f32 0.2, %v604_v57  ;;  %vm613_vm11 = vcmp.ge.f32.partialorder %v605_v56, 0.0  ;;  %v621_v62 = vmul.f32 0.2, %v605_v56 }
  0x96   :  { %v577_v63 = vpop.permute.xlu1 %576  ;;  %v582_v1 = vpop.permute.xlu0 %581 }
  0x97   :  { %v606_v5 = vadd.f32 %v4054_v49, %v577_v63  ;;  %v607_v6 = vadd.f32 %v4054_v49, %v582_v1  ;;  %v4073_v12 = vsel %vm612_vm10, %v604_v57, %v620_v61  ;;  %v4077_v16 = vsel %vm613_vm11, %v605_v56, %v621_v62  ;;  %v4132_v56 = vld [vmem:[%s6191_s0 + $0x2] ss:$0 sm:$0xff]  ;;  %v4149_v62 = vld [vmem:[#allocation2 + $0x10] sm:$0xff]  ;;  %v4151_v63 = vld [vmem:[#allocation2 + $0x8] sm:$0xff] }
  0x98   :  { %202 = vmax.xlane.f32.xlu0 %v201_v9  ;;  %v644_v15 = vsel %vm179_vm1, %v4073_v12, -inf  ;;  %v647_v23 = vsel %vm179_vm1, %v4077_v16, -inf  ;;  %v4163_v9 = vld [vmem:[#allocation2 + $0x18] sm:$0xff]  ;;  %vm1304_vm10 = vcmask 23568   ;;  %vm51_vm11 = vcmask 654336  }
  0x99   :  { %645 = vmax.xlane.f32.xlu1 %v644_v15  ;;  %vm615_vm12 = vcmp.ge.f32.partialorder %v607_v6, 0.0  ;;  %v623_v17 = vmul.f32 0.2, %v607_v6  ;;  %vm614_vm13 = vcmp.ge.f32.partialorder %v606_v5, 0.0  ;;  %v622_v18 = vmul.f32 0.2, %v606_v5 }
  0x9a   :  { %v587_v19 = vpop.permute.xlu1 %586  ;;  %v592_v20 = vpop.permute.xlu0 %591  ;;  %v4165_v15 = vld [vmem:[#allocation2 + $0x20] sm:$0xff] }
  0x9b   :  { %v608_v21 = vadd.f32 %v4054_v49, %v587_v19  ;;  %v609_v22 = vadd.f32 %v4054_v49, %v592_v20  ;;  %v4083_v24 = vsel %vm615_vm12, %v607_v6, %v623_v17  ;;  %v4087_v27 = vsel %vm614_vm13, %v606_v5, %v622_v18 }
  0x9c   :  { %648 = vmax.xlane.f32.xlu0 %v647_v23  ;;  %v653_v25 = vsel %vm179_vm1, %v4083_v24, -inf  ;;  %v650_v34 = vsel %vm179_vm1, %v4087_v27, -inf  ;;  %v4181_v23 = vld [vmem:[#allocation2 + $0x30] sm:$0xff] }
  0x9d   :  { %654 = vmax.xlane.f32.xlu1 %v653_v25  ;;  %vm617_vm14 = vcmp.ge.f32.partialorder %v609_v22, 0.0  ;;  %v625_v29 = vmul.f32 0.2, %v609_v22  ;;  %vm616_vm15 = vcmp.ge.f32.partialorder %v608_v21, 0.0  ;;  %v624_v30 = vmul.f32 0.2, %v608_v21 }
  0x9e   :  { %v597_v31 = vpop.permute.xlu1 %596  ;;  %v602_v32 = vpop.permute.xlu0 %601 }
  0x9f   :  { %v610_v33 = vadd.f32 %v4054_v49, %v597_v31  ;;  %v4092_v36 = vsel %vm617_vm14, %v609_v22, %v625_v29  ;;  %v4096_v39 = vsel %vm616_vm15, %v608_v21, %v624_v30  ;;  %v611_v52 = vadd.f32 %v4054_v49, %v602_v32  ;;  %v4179_v22 = vld [vmem:[#allocation2 + $0x28] sm:$0xff] }
  0xa0   :  { %651 = vmax.xlane.f32.xlu0 %v650_v34  ;;  %v659_v37 = vsel %vm179_vm1, %v4092_v36, -inf  ;;  %v656_v44 = vsel %vm179_vm1, %v4096_v39, -inf }
  0xa1   :  { %660 = vmax.xlane.f32.xlu1 %v659_v37  ;;  %vm618_vm0 = vcmp.ge.f32.partialorder %v610_v33, 0.0  ;;  %v626_v40 = vmul.f32 0.2, %v610_v33  ;;  %v627_v53 = vmul.f32 0.2, %v611_v52  ;;  %vm619_vm2 = vcmp.ge.f32.partialorder %v611_v52, 0.0 }
  0xa2   :  { %v890_v42 = vpop.permute.xlu1 %889  ;;  %v892_v43 = vpop.permute.xlu0 %891 }
  0xa3   :  { %3524 = vmatprep.subr.bf16.mxu1 %v890_v42  ;;  %v4117_v46 = vsel %vm618_vm0, %v610_v33, %v626_v40  ;;  %v4127_v54 = vsel %vm619_vm2, %v611_v52, %v627_v53  ;;  %v4195_v33 = vld [vmem:[#allocation2 + $0x38] sm:$0xff]  ;;  %vm534_vm0 = vcmask 162816  }
  0xa4   :  { %657 = vmax.xlane.f32.xlu0 %v656_v44  ;;  %3525 = vmatpush3.bf16.msra.mxu1 %v890_v42  ;;  %v662_v48 = vsel %vm179_vm1, %v4117_v46, -inf }
  0xa5   :  { %3526 = vmatprep.subr.bf16.mxu1 %v892_v43 }
  0xa6   :  { %v894_v47 = vpop.permute.xlu1 %893  ;;  %v896_v51 = vpop.permute.xlu0 %895 }
  0xa8   :  { %663 = vmax.xlane.f32.xlu0 %v662_v48  ;;  %3527 = vmatpush3.bf16.msra.mxu1 %v892_v43 }
  0xa9   :  { %3528 = vmatprep.subr.bf16.mxu1 %v894_v47 }
  0xac   :  { %3529 = vmatpush3.bf16.msra.mxu1 %v894_v47 }
  0xad   :  { %3530 = vmatprep.subr.bf16.mxu1 %v896_v51 }
  0xb0   :  { %3531 = vmatpush3.bf16.msra.mxu1 %v896_v51 }
  0xb2   :  { %1060 = vperm.xlu1 %3602, %v3953_v0   ;;  %v1051_v0 = vpop.permute.xlu1 %1050 }
  0xbe   :  { %1055 = vperm.xlu0 %3603, %v3969_v4   ;;  %v665_v4 = vsel %vm179_vm1, %v4127_v54, -inf }
  0xc2   :  { %1070 = vperm.xlu0 %3603, %v3987_v8   ;;  %v1088_v8 = vadd.f32 %v4132_v56, %v1051_v0 }
  0xc4   :  { %vm1096_vm3 = vcmp.ge.f32.partialorder %v1088_v8, 0.0 }
  0xc6   :  { %1080 = vperm.xlu0 %3603, %v4002_v11   ;;  %v1104_v11 = vmul.f32 0.2, %v1088_v8 }
  0xc8   :  { %v4137_v49 = vsel %vm1096_vm3, %v1088_v8, %v1104_v11 }
  0xc9   :  { %v1128_v57 = vsel %vm179_vm1, %v4137_v49, -inf }
  0xca   :  { %3605 = vset.pattern.permute.xlu0 %v6202_v2 }
  0xd6   :  { %666 = vmax.xlane.f32.xlu1 %v665_v4 }
  0xe5   :  { %1129 = vmax.xlane.f32.xlu0 %v1128_v57 }
  0xe7   :  { %1065 = vperm.xlu1 %3602, %v3964_v3  }
  0xeb   :  { %1075 = vperm.xlu1 %3602, %v3982_v7  }
  0xef   :  { %3604 = vset.pattern.permute.xlu1 %v6202_v2 }
 0x115   :  { %v182_v59 = vpop.xlane.xlu0 %181 }
 0x116   :  { %v4147_v61 = vmax.f32 %v4144_v58, %v182_v59 }
 0x118   :  { %v284_v1 = vsub.f32 %v4144_v58, %v4147_v61  ;;  %543 = vst.msk [vmem:[#allocation2] sm:$0xff] %vm356_vm4, %v4147_v61 }
 0x119   :  { %v188_v3 = vpop.xlane.xlu0 %187  ;;  %v185_v7 = vpop.xlane.xlu1 %184 }
 0x11a   :  { %v4158_v5 = vmax.f32 %v4149_v62, %v188_v3  ;;  %v4161_v6 = vmax.f32 %v4151_v63, %v185_v7 }
 0x11c   :  { %v286_v17 = vsub.f32 %v4149_v62, %v4158_v5  ;;  %545 = vst.msk [vmem:[#allocation2 + $0x10] sm:$0xff] %vm356_vm4, %v4158_v5  ;;  %544 = vst.msk [vmem:[#allocation2 + $0x8] sm:$0xff] %vm356_vm4, %v4161_v6 }
 0x11d   :  { %v191_v18 = vpop.xlane.xlu0 %190  ;;  %v194_v19 = vpop.xlane.xlu1 %193 }
 0x11e   :  { %v4174_v20 = vmax.f32 %v4163_v9, %v191_v18  ;;  %v4177_v21 = vmax.f32 %v4165_v15, %v194_v19 }
 0x11f   :  { %v4206_v43 = vld [vmem:[#allocation2] sm:$0xff] }
 0x120   :  { %546 = vst.msk [vmem:[#allocation2 + $0x18] sm:$0xff] %vm356_vm4, %v4174_v20  ;;  %547 = vst.msk [vmem:[#allocation2 + $0x20] sm:$0xff] %vm356_vm4, %v4177_v21 }
 0x121   :  { %v197_v29 = vpop.xlane.xlu0 %196  ;;  %v200_v30 = vpop.xlane.xlu1 %199 }
 0x122   :  { %v4190_v31 = vmax.f32 %v4179_v22, %v197_v29  ;;  %v4193_v32 = vmax.f32 %v4181_v23, %v200_v30 }
 0x123   :  { %v4217_v51 = vld [vmem:[#allocation2 + $0x8] sm:$0xff]  ;;  %v4233_v57 = vld [vmem:[#allocation2 + $0x10] sm:$0xff] }
 0x124   :  { %548 = vst.msk [vmem:[#allocation2 + $0x28] sm:$0xff] %vm356_vm4, %v4190_v31  ;;  %549 = vst.msk [vmem:[#allocation2 + $0x30] sm:$0xff] %vm356_vm4, %v4193_v32 }
 0x125   :  { %v203_v37 = vpop.xlane.xlu0 %202 }
 0x126   :  { %v4204_v40 = vmax.f32 %v4195_v33, %v203_v37  ;;  %v646_v42 = vpop.xlane.xlu1 %645 }
 0x127   :  { %v4209_v44 = vmax.f32 %v4206_v43, %v646_v42  ;;  %v4222_v0 = vld [vmem:[#allocation2 + $0x18] sm:$0xff]  ;;  %v4249_v30 = vld [vmem:[#allocation2 + $0x20] sm:$0xff] }
 0x128   :  { %550 = vst.msk [vmem:[#allocation2 + $0x38] sm:$0xff] %vm356_vm4, %v4204_v40 }
 0x129   :  { %1027 = vst.msk [vmem:[#allocation2] sm:$0xff] %vm820_vm5, %v4209_v44  ;;  %v649_v48 = vpop.xlane.xlu0 %648 }
 0x12a   :  { %v4220_v52 = vmax.f32 %v4217_v51, %v649_v48  ;;  %v655_v53 = vpop.xlane.xlu1 %654 }
 0x12b   :  { %v4225_v4 = vmax.f32 %v4222_v0, %v655_v53  ;;  %v4238_v7 = vld [vmem:[#allocation2 + $0x28] sm:$0xff] }
 0x12c   :  { %1028 = vst.msk [vmem:[#allocation2 + $0x8] sm:$0xff] %vm820_vm5, %v4220_v52 }
 0x12d   :  { %1030 = vst.msk [vmem:[#allocation2 + $0x18] sm:$0xff] %vm820_vm5, %v4225_v4  ;;  %v652_v11 = vpop.xlane.xlu0 %651 }
 0x12e   :  { %v4236_v59 = vmax.f32 %v4233_v57, %v652_v11  ;;  %v661_v3 = vpop.xlane.xlu1 %660 }
 0x12f   :  { %v4241_v18 = vmax.f32 %v4238_v7, %v661_v3  ;;  %v4259_v3 = vld [vmem:[#allocation2 + $0x30] sm:$0xff] }
 0x130   :  { %1029 = vst.msk [vmem:[#allocation2 + $0x10] sm:$0xff] %vm820_vm5, %v4236_v59 }
 0x131   :  { %1032 = vst.msk [vmem:[#allocation2 + $0x28] sm:$0xff] %vm820_vm5, %v4241_v18  ;;  %v658_v29 = vpop.xlane.xlu0 %657 }
 0x132   :  { %v4252_v37 = vmax.f32 %v4249_v30, %v658_v29  ;;  %v1061_v42 = vpop.permute.xlu1 %1060  ;;  %v292_v29 = vmul.f32 1.442695, %v284_v1 }
 0x133   :  { %v1090_v48 = vadd.f32 %v4132_v56, %v1061_v42 }
 0x134   :  { %1031 = vst.msk [vmem:[#allocation2 + $0x20] sm:$0xff] %vm820_vm5, %v4252_v37  ;;  %3626 = vpow2.f32 %v292_v29  ;;  %v6249_v29 = vmov 0.0  }
 0x135   :  { %v664_v11 = vpop.xlane.xlu0 %663  ;;  %vm1098_vm6 = vcmp.ge.f32.partialorder %v1090_v48, 0.0  ;;  %v1106_v14 = vmul.f32 0.2, %v1090_v48  ;;  %52 = vst.msk [vmem:[#allocation4] sm:$0xff] %vm51_vm11, %v6249_v29  ;;  %53 = vst.msk [vmem:[#allocation4 + $0x8] sm:$0xff] %vm51_vm11, %v6249_v29 }
 0x136   :  { %v4262_v19 = vmax.f32 %v4259_v3, %v664_v11  ;;  %v4281_v11 = vld [vmem:[#allocation2 + $0x38] sm:$0xff]  ;;  %54 = vst.msk [vmem:[#allocation4 + $0x10] sm:$0xff] %vm51_vm11, %v6249_v29  ;;  %55 = vst.msk [vmem:[#allocation4 + $0x18] sm:$0xff] %vm51_vm11, %v6249_v29 }
 0x137   :  { %v4264_v8 = vsel %vm1098_vm6, %v1090_v48, %v1106_v14  ;;  %6245 = vst [vmem:[#allocation8_spill] sm:$0xff] %v4281_v11  ;;  %56 = vst.msk [vmem:[#allocation4 + $0x20] sm:$0xff] %vm51_vm11, %v6249_v29 }
 0x138   :  { %1033 = vst.msk [vmem:[#allocation2 + $0x30] sm:$0xff] %vm820_vm5, %v4262_v19  ;;  %v1134_v42 = vsel %vm179_vm1, %v4264_v8, -inf }
 0x139   :  { %1135 = vmax.xlane.f32.xlu0 %v1134_v42  ;;  %57 = vst.msk [vmem:[#allocation4 + $0x28] sm:$0xff] %vm51_vm11, %v6249_v29  ;;  %58 = vst.msk [vmem:[#allocation4 + $0x30] sm:$0xff] %vm51_vm11, %v6249_v29 }
 0x13a   :  { %59 = vst.msk [vmem:[#allocation4 + $0x38] sm:$0xff] %vm51_vm11, %v6249_v29  ;;  %vm1788_vm11 = vcmask 31768  }
 0x13d   :  { %v1056_v53 = vpop.permute.xlu0 %1055 }
 0x13e   :  { %v1089_v47 = vadd.f32 %v4132_v56, %v1056_v53 }
 0x140   :  { %vm1097_vm8 = vcmp.ge.f32.partialorder %v1089_v47, 0.0  ;;  %v1105_v2 = vmul.f32 0.2, %v1089_v47 }
 0x141   :  { %v4291_v42 = vpop.permute.xlu0 %1070 }
 0x142   :  { %v4273_v34 = vsel %vm1097_vm8, %v1089_v47, %v1105_v2 }
 0x143   :  { %v1131_v14 = vsel %vm179_vm1, %v4273_v34, -inf }
 0x144   :  { %1132 = vmax.xlane.f32.xlu1 %v1131_v14 }
 0x145   :  { %v4303_v25 = vpop.permute.xlu0 %1080 }
 0x155   :  { %214 = vperm.xlu1 %3604, %v4147_v61   ;;  %v6248_v61 = vsub.f32 %v4163_v9, %v4174_v20  ;;  %v6251_v9 = vmov 0  }
 0x157   :  { %v298_v1 = vmul.f32 1.442695, %v6248_v61 }
 0x159   :  { %224 = vperm.xlu1 %3604, %v4158_v5   ;;  %v4332_v5 = vpop.eup %3626 }
 0x15d   :  { %229 = vperm.xlu1 %3604, %v4174_v20  }
 0x161   :  { %239 = vperm.xlu1 %3604, %v4190_v31  }
 0x163   :  { %v667_v48 = vpop.xlane.xlu1 %666 }
 0x164   :  { %v4284_v53 = vmax.f32 %v4281_v11, %v667_v48  ;;  %v4309_v11 = vld [vmem:[#allocation2] sm:$0xff] }
 0x165   :  { %249 = vperm.xlu1 %3604, %v4204_v40   ;;  %6246 = vst [vmem:[#allocation9_spill] sm:$0xff] %v4309_v11 }
 0x166   :  { %1034 = vst.msk [vmem:[#allocation2 + $0x38] sm:$0xff] %vm820_vm5, %v4284_v53 }
 0x167   :  { %v1066_v47 = vpop.permute.xlu1 %1065 }
 0x168   :  { %v1091_v14 = vadd.f32 %v4132_v56, %v1066_v47  ;;  %v296_v47 = vmul.f32 1.442695, %v286_v17  ;;  %v6252_v17 = vsub.f32 %v4195_v33, %v4204_v40  ;;  %v6254_v33 = vsub.f32 %v4233_v57, %v4236_v59 }
 0x169   :  { %3607 = vset.pattern.permute.xlu1 %v6206_v13  ;;  %v6256_v57 = vsub.f32 %v4259_v3, %v4262_v19  ;;  %v6258_v3 = vmov 2  }
 0x16a   :  { %683 = vperm.xlu1 %3607, %v4220_v52   ;;  %vm1099_vm9 = vcmp.ge.f32.partialorder %v1091_v14, 0.0  ;;  %v1107_v48 = vmul.f32 0.2, %v1091_v14  ;;  %3628 = vpow2.f32 %v296_v47  ;;  %v306_v20 = vmul.f32 1.442695, %v6252_v17 }
 0x16b   :  { %3630 = vpow2.f32 %v298_v1  ;;  %v760_v40 = vmul.f32 1.442695, %v6254_v33  ;;  %v6257_v1 = vmov 1   ;;  %v1076_v29 = vpop.permute.xlu1 %1075 }
 0x16c   :  { %v4299_v41 = vsel %vm1099_vm9, %v1091_v14, %v1107_v48 }
 0x16d   :  { %v1137_v2 = vsel %vm179_vm1, %v4299_v41, -inf }
 0x16e   :  { %1138 = vmax.xlane.f32.xlu0 %v1137_v2  ;;  %688 = vperm.xlu1 %3607, %v4236_v59   ;;  %v768_v59 = vmul.f32 1.442695, %v6256_v57 }
 0x172   :  { %v1130_v13 = vpop.xlane.xlu0 %1129  ;;  %698 = vperm.xlu1 %3607, %v4252_v37  }
 0x173   :  { %v4313_v58 = vmax.f32 %v4309_v11, %v1130_v13  ;;  %v6250_v13 = vsub.f32 %v4179_v22, %v4190_v31  ;;  %v6253_v22 = vsub.f32 %v4217_v51, %v4220_v52  ;;  %v6255_v51 = vsub.f32 %v4249_v30, %v4252_v37 }
 0x174   :  { %v4339_v2 = vpop.eup %3628 }
 0x175   :  { %6247 = vst [vmem:[#allocation10_spill] sm:$0xff] %v4313_v58  ;;  %1511 = vst.msk [vmem:[#allocation2] sm:$0xff] %vm1304_vm10, %v4313_v58  ;;  %v302_v62 = vmul.f32 1.442695, %v6250_v13  ;;  %v758_v31 = vmul.f32 1.442695, %v6253_v22  ;;  %v4345_v14 = vpop.eup %3630  ;;  %v1093_v13 = vadd.f32 %v4132_v56, %v1076_v29 }
 0x176   :  { %708 = vperm.xlu1 %3607, %v4262_v19   ;;  %v764_v52 = vmul.f32 1.442695, %v6255_v51 }
 0x177   :  { %3632 = vpow2.f32 %v302_v62  ;;  %v1092_v62 = vadd.f32 %v4132_v56, %v4291_v42  ;;  %v1109_v17 = vmul.f32 0.2, %v1093_v13  ;;  %vm1101_vm12 = vcmp.ge.f32.partialorder %v1093_v13, 0.0 }
 0x178   :  { %3634 = vpow2.f32 %v306_v20  ;;  %v1094_v20 = vadd.f32 %v4132_v56, %v4303_v25 }
 0x179   :  { %3636 = vpow2.f32 %v758_v31  ;;  %v4391_v22 = vsel %vm1101_vm12, %v1093_v13, %v1109_v17  ;;  %v1108_v31 = vmul.f32 0.2, %v1092_v62  ;;  %vm1100_vm13 = vcmp.ge.f32.partialorder %v1092_v62, 0.0  ;;  %v4412_v17 = vld [vmem:[#allocation2 + $0x8] sm:$0xff]  ;;  %v4422_v13 = vld [vmem:[#allocation2 + $0x18] sm:$0xff] }
 0x17a   :  { %3608 = vset.pattern.permute.xlu1 %v6251_v9  ;;  %3638 = vpow2.f32 %v760_v40  ;;  %v1143_v33 = vsel %vm179_vm1, %v4391_v22, -inf  ;;  %v1110_v51 = vmul.f32 0.2, %v1094_v20  ;;  %vm1102_vm14 = vcmp.ge.f32.partialorder %v1094_v20, 0.0  ;;  %6262 = vst [vmem:[#allocation14_spill] sm:$0xff] %v4422_v13 }
 0x17b   :  { %375 = vperm.xlu1 %3608, %v4332_v5   ;;  %3640 = vpow2.f32 %v764_v52  ;;  %v4395_v40 = vsel %vm1100_vm13, %v1092_v62, %v1108_v31  ;;  %vm1018_vm13 = vcmask 326816  }
 0x17c   :  { %3642 = vpow2.f32 %v768_v59  ;;  %v1140_v42 = vsel %vm179_vm1, %v4395_v40, -inf  ;;  %v4399_v52 = vsel %vm1102_vm14, %v1094_v20, %v1110_v51  ;;  %v4403_v59 = vld [vmem:[#allocation2 + $0x10] sm:$0xff]  ;;  %vm1502_vm14 = vcmask 490816  }
 0x17d   :  { %6259 = vst [vmem:[#allocation11_spill] sm:$0xff] %v4399_v52  ;;  %v1146_v25 = vsel %vm179_vm1, %v4399_v52, -inf  ;;  %6260 = vst [vmem:[#allocation12_spill] sm:$0xff] %v4403_v59 }
 0x17f   :  { %385 = vperm.xlu1 %3608, %v4339_v2  }
 0x181   :  { %v4352_v48 = vpop.eup %3632 }
 0x182   :  { %v4359_v47 = vpop.eup %3634 }
 0x183   :  { %390 = vperm.xlu1 %3608, %v4345_v14   ;;  %v4366_v61 = vpop.eup %3636 }
 0x184   :  { %219 = vperm.xlu0 %3605, %v4161_v6   ;;  %v4372_v30 = vpop.eup %3638 }
 0x185   :  { %v4376_v37 = vpop.eup %3640 }
 0x186   :  { %v4380_v19 = vpop.eup %3642 }
 0x187   :  { %400 = vperm.xlu1 %3608, %v4352_v48  }
 0x188   :  { %234 = vperm.xlu0 %3605, %v4177_v21  }
 0x18b   :  { %410 = vperm.xlu1 %3608, %v4359_v47  }
 0x18c   :  { %244 = vperm.xlu0 %3605, %v4193_v32  }
 0x18f   :  { %3609 = vset.pattern.permute.xlu1 %v6257_v1 }
 0x190   :  { %3606 = vset.pattern.permute.xlu0 %v6257_v1  ;;  %844 = vperm.xlu1 %3609, %v4366_v61  }
 0x191   :  { %678 = vperm.xlu0 %3606, %v4209_v44  }
 0x194   :  { %849 = vperm.xlu1 %3609, %v4372_v30  }
 0x195   :  { %693 = vperm.xlu0 %3606, %v4225_v4  }
 0x198   :  { %859 = vperm.xlu1 %3609, %v4376_v37  }
 0x199   :  { %703 = vperm.xlu0 %3606, %v4241_v18  }
 0x19c   :  { %869 = vperm.xlu1 %3609, %v4380_v19  }
 0x19d   :  { %713 = vperm.xlu0 %3606, %v4284_v53  }
 0x1a0   :  { %3610 = vset.pattern.permute.xlu1 %v6258_v3 }
 0x1a1   :  { %3611 = vset.pattern.permute.xlu0 %v6258_v3 }
 0x1bc   :  { %1144 = vmax.xlane.f32.xlu0 %v1143_v33 }
 0x1c0   :  { %1141 = vmax.xlane.f32.xlu1 %v1140_v42 }
 0x1c4   :  { %1147 = vmax.xlane.f32.xlu1 %v1146_v25 }
 0x1c6   :  { %v1136_v57 = vpop.xlane.xlu0 %1135 }
 0x1c7   :  { %v4406_v29 = vmax.f32 %v4403_v59, %v1136_v57 }
 0x1c9   :  { %6261 = vst [vmem:[#allocation13_spill] sm:$0xff] %v4406_v29  ;;  %1513 = vst.msk [vmem:[#allocation2 + $0x10] sm:$0xff] %vm1304_vm10, %v4406_v29 }
 0x1d1   :  { %v1133_v62 = vpop.xlane.xlu1 %1132 }
 0x1d2   :  { %v4415_v20 = vmax.f32 %v4412_v17, %v1133_v62 }
 0x1d4   :  { %1512 = vst.msk [vmem:[#allocation2 + $0x8] sm:$0xff] %vm1304_vm10, %v4415_v20 }
 0x1d5   :  { %1085 = vperm.xlu1 %3610, %v3997_v10   ;;  %v215_v31 = vpop.permute.xlu1 %214 }
 0x1d6   :  { %v252_v62 = vsub.f32 %v4023_v26, %v215_v31 }
 0x1d9   :  { %1162 = vperm.xlu1 %3610, %v4313_v58   ;;  %v225_v33 = vpop.permute.xlu1 %224 }
 0x1da   :  { %v254_v9 = vsub.f32 %v4027_v28, %v225_v33  ;;  %v60_v28 = vld [vmem:[%s6193_s2] sm:$0xff] }
 0x1dc   :  { %v264_v31 = vmul.f32 1.442695, %v254_v9 }
 0x1dd   :  { %1172 = vperm.xlu1 %3610, %v4406_v29   ;;  %v230_v51 = vpop.permute.xlu1 %229  ;;  %v260_v29 = vmul.f32 1.442695, %v252_v62 }
 0x1de   :  { %v255_v1 = vsub.f32 %v4035_v38, %v230_v51 }
 0x1df   :  { %3644 = vpow2.f32 %v260_v29  ;;  %v62_v29 = vunpack.c.0.s8 %v60_v28 }
 0x1e0   :  { %v266_v59 = vmul.f32 1.442695, %v255_v1 }
 0x1e1   :  { %v240_v42 = vpop.permute.xlu1 %239 }
 0x1e2   :  { %v257_v11 = vsub.f32 %v4057_v50, %v240_v42  ;;  %3646 = vpow2.f32 %v266_v59  ;;  %v64_v42 = vunpack.c.2.s8 %v60_v28 }
 0x1e3   :  { %3648 = vpow2.f32 %v264_v31  ;;  %v4448_v31 = vcvt.s32.f32 %v62_v29 }
 0x1e4   :  { %v270_v51 = vmul.f32 1.442695, %v257_v11 }
 0x1e5   :  { %v250_v25 = vpop.permute.xlu1 %249 }
 0x1e6   :  { %v259_v10 = vsub.f32 %v4067_v60, %v250_v25  ;;  %v61_v60 = vld [vmem:[%s6193_s2 + $0x8] sm:$0xff]  ;;  %v63_v25 = vunpack.c.1.s8 %v60_v28 }
 0x1e8   :  { %v274_v9 = vmul.f32 1.442695, %v259_v10 }
 0x1e9   :  { %v684_v26 = vpop.permute.xlu1 %683 }
 0x1ea   :  { %v717_v11 = vsub.f32 %v4077_v16, %v684_v26  ;;  %v4452_v26 = vcvt.s32.f32 %v64_v42 }
 0x1ed   :  { %v689_v58 = vpop.permute.xlu1 %688 }
 0x1ee   :  { %v718_v62 = vsub.f32 %v4087_v27, %v689_v58 }
 0x1f0   :  { %v728_v58 = vmul.f32 1.442695, %v718_v62 }
 0x1fb   :  { %v1139_v57 = vpop.xlane.xlu0 %1138 }
 0x1fc   :  { %v4426_v3 = vmax.f32 %v4422_v13, %v1139_v57 }
 0x1fe   :  { %6263 = vst [vmem:[#allocation15_spill] sm:$0xff] %v4426_v3  ;;  %1514 = vst.msk [vmem:[#allocation2 + $0x18] sm:$0xff] %vm1304_vm10, %v4426_v3  ;;  %1177 = vperm.xlu1 %3610, %v4426_v3  }
 0x203   :  { %v220_v57 = vpop.permute.xlu0 %219 }
 0x204   :  { %v253_v38 = vsub.f32 %v4029_v35, %v220_v57  ;;  %v65_v35 = vunpack.c.3.s8 %v60_v28  ;;  %v4455_v28 = vcvt.s32.f32 %v63_v25 }
 0x206   :  { %v262_v13 = vmul.f32 1.442695, %v253_v38  ;;  %v4450_v57 = vcvt.s32.f32 %v65_v35 }
 0x207   :  { %v235_v3 = vpop.permute.xlu0 %234 }
 0x208   :  { %3650 = vpow2.f32 %v262_v13  ;;  %v256_v50 = vsub.f32 %v4037_v45, %v235_v3  ;;  %v699_v13 = vpop.permute.xlu1 %698  ;;  %v67_v45 = vunpack.c.1.s8 %v61_v60  ;;  %v3645_v3 = vpop.eup %3644 }
 0x209   :  { %3652 = vpow2.f32 %v270_v51  ;;  %v3647_v38 = vpop.eup %3646  ;;  %v726_v51 = vmul.f32 1.442695, %v717_v11  ;;  %v4460_v29 = vmul.f32 %v3645_v3, %v4448_v31  ;;  %v69_v11 = vunpack.c.3.s8 %v61_v60 }
 0x20a   :  { %v268_v1 = vmul.f32 1.442695, %v256_v50  ;;  %v3649_v50 = vpop.eup %3648  ;;  %v4463_v35 = vmul.f32 %v3647_v38, %v4450_v57 }
 0x20b   :  { %v245_v59 = vpop.permute.xlu0 %244 }
 0x20c   :  { %3654 = vpow2.f32 %v268_v1  ;;  %v258_v33 = vsub.f32 %v4059_v55, %v245_v59  ;;  %v66_v55 = vunpack.c.0.s8 %v61_v60  ;;  %v4457_v1 = vcvt.s32.f32 %v67_v45  ;;  %v709_v42 = vpop.permute.xlu1 %708 }
 0x20d   :  { %3656 = vpow2.f32 %v274_v9  ;;  %v4468_v45 = vmul.f32 %v3649_v50, %v4452_v26 }
 0x20e   :  { %v272_v10 = vmul.f32 1.442695, %v258_v33  ;;  %v720_v33 = vsub.f32 %v4096_v39, %v699_v13  ;;  %v4470_v62 = vcvt.s32.f32 %v66_v55  ;;  %v722_v55 = vsub.f32 %v4117_v46, %v709_v42 }
 0x20f   :  { %v422_v39 = vpack.c.bf16 %v4463_v35, %v4468_v45 }
 0x210   :  { %3658 = vpow2.f32 %v272_v10  ;;  %v679_v16 = vpop.permute.xlu0 %678  ;;  %v736_v42 = vmul.f32 1.442695, %v722_v55 }
 0x211   :  { %v716_v9 = vsub.f32 %v4073_v12, %v679_v16  ;;  %3660 = vpow2.f32 %v726_v51  ;;  %v68_v16 = vunpack.c.2.s8 %v61_v60  ;;  %v4479_v51 = vcvt.s32.f32 %v69_v11 }
 0x212   :  { %v3651_v27 = vpop.eup %3650 }
 0x213   :  { %v3653_v59 = vpop.eup %3652  ;;  %v724_v10 = vmul.f32 1.442695, %v716_v9  ;;  %v277_v12 = vmul.f32 %v3651_v27, %v4455_v28  ;;  %6264 = vst [vmem:[#allocation16_spill] sm:$0xff] %v4479_v51  ;;  %v732_v9 = vmul.f32 1.442695, %v720_v33 }
 0x214   :  { %v694_v25 = vpop.permute.xlu0 %693  ;;  %v4477_v13 = vmul.f32 %v3653_v59, %v4457_v1 }
 0x215   :  { %3662 = vpow2.f32 %v724_v10  ;;  %v719_v3 = vsub.f32 %v4083_v24, %v694_v25  ;;  %v421_v38 = vpack.c.bf16 %v277_v12, %v4460_v29  ;;  %v4489_v10 = vcvt.s32.f32 %v68_v16 }
 0x216   :  { %v3655_v52 = vpop.eup %3654  ;;  %3664 = vpow2.f32 %v728_v58  ;;  %v4485_v58 = vpop.permute.xlu1 %375 }
 0x217   :  { %v3657_v50 = vpop.eup %3656  ;;  %v730_v27 = vmul.f32 1.442695, %v719_v3  ;;  %3516 = vmatprep.mubr.msk.bf16.mxu0 %vm179_vm1, %v421_v38  ;;  %v280_v24 = vmul.f32 %v3655_v52, %v4470_v62 }
 0x218   :  { %3517 = vmatmul.mubr.msk.bf16.vlgmr.msra.gmra.mrb[0].mxu0 %vm179_vm1, %v422_v39  ;;  %v704_v60 = vpop.permute.xlu0 %703  ;;  %v4492_v46 = vmul.f32 %v3657_v50, %v4479_v51 }
 0x219   :  { %3666 = vpow2.f32 %v730_v27  ;;  %v721_v59 = vsub.f32 %v4092_v36, %v704_v60  ;;  %v423_v11 = vpack.c.bf16 %v4477_v13, %v280_v24 }
 0x21a   :  { %v3659_v33 = vpop.eup %3658  ;;  %3668 = vpow2.f32 %v732_v9  ;;  %v4498_v27 = vpop.permute.xlu1 %385 }
 0x21b   :  { %v734_v25 = vmul.f32 1.442695, %v721_v59  ;;  %3520 = vmatprep.mubr.msk.bf16.mxu0 %vm179_vm1, %v423_v11  ;;  %v282_v52 = vmul.f32 %v3659_v33, %v4489_v10  ;;  %v3661_v38 = vpop.eup %3660  ;;  %v327_v59 = vsel %vm179_vm1, %v277_v12, 0.0 }
 0x21c   :  { %v714_v3 = vpop.permute.xlu0 %713  ;;  %v4503_v55 = vmul.f32 %v3661_v38, %v4455_v28  ;;  %v336_v38 = vsel %vm179_vm1, %v280_v24, 0.0 }
 0x21d   :  { %3670 = vpow2.f32 %v734_v25  ;;  %v723_v36 = vsub.f32 %v4127_v54, %v714_v3  ;;  %v424_v39 = vpack.c.bf16 %v4492_v46, %v282_v52 }
 0x21e   :  { %3672 = vpow2.f32 %v736_v42  ;;  %v4512_v3 = vpop.permute.xlu1 %390 }
 0x21f   :  { %v3663_v16 = vpop.eup %3662  ;;  %v738_v50 = vmul.f32 1.442695, %v723_v36 }
 0x220   :  { %v3665_v60 = vpop.eup %3664  ;;  %3521 = vmatmul.mubr.msk.bf16.gmra.mrb[4].mxu0 %vm179_vm1, %v424_v39  ;;  %v740_v9 = vmul.f32 %v3663_v16, %v4448_v31 }
 0x221   :  { %3674 = vpow2.f32 %v738_v50  ;;  %v4509_v33 = vmul.f32 %v3665_v60, %v4452_v26  ;;  %v342_v60 = vsel %vm179_vm1, %v282_v52, 0.0 }
 0x222   :  { %328 = vadd.xlane.f32.xlu1 %v327_v59  ;;  %v885_v54 = vpack.c.bf16 %v4503_v55, %v740_v9 }
 0x223   :  { %v3667_v11 = vpop.eup %3666 }
 0x224   :  { %3532 = vmatprep.mubr.msk.bf16.mxu1 %vm179_vm1, %v885_v54  ;;  %v743_v42 = vmul.f32 %v3667_v11, %v4450_v57  ;;  %v3669_v25 = vpop.eup %3668  ;;  %v4523_v11 = vpop.permute.xlu1 %400 }
 0x225   :  { %v4518_v39 = vmul.f32 %v3669_v25, %v4470_v62  ;;  %v788_v25 = vsel %vm179_vm1, %v740_v9, 0.0 }
 0x226   :  { %337 = vadd.xlane.f32.xlu1 %v336_v38  ;;  %v886_v36 = vpack.c.bf16 %v743_v42, %v4509_v33 }
 0x227   :  { %v3671_v12 = vpop.eup %3670 }
 0x228   :  { %3533 = vmatmul.mubr.msk.bf16.vlgmr.msra.gmra.mrb[0].mxu1 %vm179_vm1, %v886_v36  ;;  %v745_v16 = vmul.f32 %v3671_v12, %v4457_v1  ;;  %v3673_v50 = vpop.eup %3672  ;;  %v4533_v52 = vpop.permute.xlu1 %410  ;;  %v797_v12 = vsel %vm179_vm1, %v743_v42, 0.0 }
 0x229   :  { %v4527_v24 = vmul.f32 %v3673_v50, %v4489_v10 }
 0x22a   :  { %343 = vadd.xlane.f32.xlu1 %v342_v60  ;;  %v887_v59 = vpack.c.bf16 %v745_v16, %v4518_v39  ;;  %v803_v60 = vsel %vm179_vm1, %v745_v16, 0.0 }
 0x22b   :  { %v3675_v54 = vpop.eup %3674 }
 0x22c   :  { %3536 = vmatprep.mubr.msk.bf16.mxu1 %vm179_vm1, %v887_v59  ;;  %v747_v38 = vmul.f32 %v3675_v54, %v4479_v51  ;;  %v4537_v59 = vpop.permute.xlu1 %844 }
 0x22d   :  { %6265 = vst [vmem:[#allocation17_spill] sm:$0xff] %v4537_v59 }
 0x22e   :  { %789 = vadd.xlane.f32.xlu1 %v788_v25  ;;  %v888_v36 = vpack.c.bf16 %v747_v38, %v4527_v24  ;;  %v809_v50 = vsel %vm179_vm1, %v747_v38, 0.0  ;;  %v4556_v38 = vld [vmem:[#allocation2 + $0x20] sm:$0xff] }
 0x22f   :  { %6271 = vst [vmem:[#allocation23_spill] sm:$0xff] %v4556_v38 }
 0x230   :  { %3537 = vmatmul.mubr.msk.bf16.gmra.mrb[4].mxu1 %vm179_vm1, %v888_v36  ;;  %v4540_v54 = vpop.permute.xlu1 %849  ;;  %v4546_v36 = vld [vmem:[#allocation2 + $0x28] sm:$0xff] }
 0x231   :  { %6266 = vst [vmem:[#allocation18_spill] sm:$0xff] %v4540_v54  ;;  %6269 = vst [vmem:[#allocation21_spill] sm:$0xff] %v4546_v36 }
 0x232   :  { %798 = vadd.xlane.f32.xlu1 %v797_v12 }
 0x234   :  { %v4542_v9 = vpop.permute.xlu1 %859 }
 0x235   :  { %6267 = vst [vmem:[#allocation19_spill] sm:$0xff] %v4542_v9 }
 0x236   :  { %804 = vadd.xlane.f32.xlu1 %v803_v60 }
 0x238   :  { %v4544_v25 = vpop.permute.xlu1 %869 }
 0x239   :  { %6268 = vst [vmem:[#allocation20_spill] sm:$0xff] %v4544_v25 }
 0x23a   :  { %810 = vadd.xlane.f32.xlu1 %v809_v50 }
 0x249   :  { %v1145_v51 = vpop.xlane.xlu0 %1144 }
 0x24a   :  { %v4549_v42 = vmax.f32 %v4546_v36, %v1145_v51  ;;  %v4565_v51 = vld [vmem:[#allocation2 + $0x30] sm:$0xff] }
 0x24b   :  { %6273 = vst [vmem:[#allocation25_spill] sm:$0xff] %v4565_v51 }
 0x24c   :  { %6270 = vst [vmem:[#allocation22_spill] sm:$0xff] %v4549_v42  ;;  %1516 = vst.msk [vmem:[#allocation2 + $0x28] sm:$0xff] %vm1304_vm10, %v4549_v42  ;;  %1187 = vperm.xlu1 %3610, %v4549_v42  }
 0x24d   :  { %v1142_v12 = vpop.xlane.xlu1 %1141 }
 0x24e   :  { %v4559_v60 = vmax.f32 %v4556_v38, %v1142_v12 }
 0x250   :  { %6272 = vst [vmem:[#allocation24_spill] sm:$0xff] %v4559_v60  ;;  %1515 = vst.msk [vmem:[#allocation2 + $0x20] sm:$0xff] %vm1304_vm10, %v4559_v60 }
 0x251   :  { %v1148_v16 = vpop.xlane.xlu1 %1147 }
 0x252   :  { %v4568_v25 = vmax.f32 %v4565_v51, %v1148_v16 }
 0x254   :  { %1517 = vst.msk [vmem:[#allocation2 + $0x30] sm:$0xff] %vm1304_vm10, %v4568_v25 }
 0x255   :  { %v1086_v9 = vpop.permute.xlu1 %1085 }
 0x256   :  { %v1095_v59 = vadd.f32 %v4132_v56, %v1086_v9 }
 0x258   :  { %vm1103_vm15 = vcmp.ge.f32.partialorder %v1095_v59, 0.0  ;;  %v1111_v12 = vmul.f32 0.2, %v1095_v59 }
 0x259   :  { %v4577_v38 = vpop.permute.xlu1 %1162 }
 0x25a   :  { %v4573_v54 = vsel %vm1103_vm15, %v1095_v59, %v1111_v12  ;;  %vm1986_vm15 = vcmask 654816  }
 0x25b   :  { %6274 = vst [vmem:[#allocation26_spill] sm:$0xff] %v4573_v54  ;;  %v1149_v50 = vsel %vm179_vm1, %v4573_v54, -inf }
 0x25c   :  { %1150 = vmax.xlane.f32.xlu0 %v1149_v50 }
 0x25d   :  { %v1173_v16 = vpop.permute.xlu1 %1172 }
 0x25e   :  { %v1202_v51 = vsub.f32 %v4264_v8, %v1173_v16  ;;  %v324_v8 = vsel %vm179_vm1, %v4460_v29, 0.0  ;;  %v288_v16 = vsub.f32 %v4165_v15, %v4177_v21  ;;  %v309_v21 = vld [vmem:[#allocation3 + $0x8] sm:$0xff] }
 0x260   :  { %v1212_v42 = vmul.f32 1.442695, %v1202_v51  ;;  %v300_v29 = vmul.f32 1.442695, %v288_v16 }
 0x262   :  { %3676 = vpow2.f32 %v1212_v42  ;;  %v333_v42 = vsel %vm179_vm1, %v4463_v35, 0.0  ;;  %v791_v35 = vsel %vm179_vm1, %v4503_v55, 0.0 }
 0x26c   :  { %v3677_v9 = vpop.eup %3676 }
 0x26d   :  { %v4584_v50 = vmul.f32 %v3677_v9, %v4452_v26 }
 0x272   :  { %1167 = vperm.xlu0 %3611, %v4415_v20  }
 0x276   :  { %1182 = vperm.xlu0 %3611, %v4559_v60  }
 0x27d   :  { %v1178_v36 = vpop.permute.xlu1 %1177 }
 0x27e   :  { %v1203_v56 = vsub.f32 %v4299_v41, %v1178_v36  ;;  %v330_v41 = vsel %vm179_vm1, %v4468_v45, 0.0  ;;  %v285_v36 = vsub.f32 %v4151_v63, %v4161_v6  ;;  %v290_v45 = vsub.f32 %v4181_v23, %v4193_v32 }
 0x27f   :  { %v345_v63 = vsel %vm179_vm1, %v4492_v46, 0.0 }
 0x280   :  { %v1214_v59 = vmul.f32 1.442695, %v1203_v56  ;;  %v294_v51 = vmul.f32 1.442695, %v285_v36  ;;  %v339_v56 = vsel %vm179_vm1, %v4477_v13, 0.0  ;;  %v794_v13 = vsel %vm179_vm1, %v4509_v33, 0.0 }
 0x281   :  { %v304_v6 = vmul.f32 1.442695, %v290_v45  ;;  %v314_v33 = vld [vmem:[#allocation3 + $0x30] sm:$0xff] }
 0x282   :  { %3678 = vpow2.f32 %v1214_v59  ;;  %v312_v59 = vld [vmem:[#allocation3 + $0x20] sm:$0xff] }
 0x283   :  { %3680 = vpow2.f32 %v294_v51 }
 0x284   :  { %3682 = vpow2.f32 %v300_v29 }
 0x285   :  { %3684 = vpow2.f32 %v304_v6 }
 0x28c   :  { %v3679_v12 = vpop.eup %3678 }
 0x28d   :  { %v4587_v54 = vmul.f32 %v3679_v12, %v4450_v57  ;;  %v4609_v15 = vpop.eup %3680  ;;  %v800_v12 = vsel %vm179_vm1, %v4518_v39, 0.0 }
 0x28e   :  { %v317_v23 = vmul.f32 %v4609_v15, %v309_v21  ;;  %v4614_v32 = vpop.eup %3682 }
 0x28f   :  { %v1370_v60 = vpack.c.bf16 %v4587_v54, %v4584_v50  ;;  %v320_v55 = vmul.f32 %v4614_v32, %v312_v59  ;;  %v367_v59 = vld [vmem:[#allocation4 + $0x10] sm:$0xff] }
 0x295   :  { %325 = vadd.xlane.f32.xlu0 %v324_v8  ;;  %v4620_v8 = vpop.eup %3684 }
 0x296   :  { %v322_v51 = vmul.f32 %v4620_v8, %v314_v33 }
 0x299   :  { %331 = vadd.xlane.f32.xlu0 %v330_v41 }
 0x29d   :  { %334 = vadd.xlane.f32.xlu0 %v333_v42  ;;  %v806_v42 = vsel %vm179_vm1, %v4527_v24, 0.0  ;;  %v1200_v24 = vsub.f32 %v4137_v49, %v4577_v38  ;;  %v415_v38 = vmul.f32 %v4498_v27, %v367_v59  ;;  %v1278_v27 = vsel %vm179_vm1, %v4584_v50, 0.0  ;;  %v370_v59 = vld [vmem:[#allocation4 + $0x28] sm:$0xff] }
 0x29e   :  { %v4922_v50 = vld [vmem:[#allocation2 + $0x8] sm:$0xff] }
 0x29f   :  { %v1208_v6 = vmul.f32 1.442695, %v1200_v24 }
 0x2a1   :  { %340 = vadd.xlane.f32.xlu0 %v339_v56  ;;  %3686 = vpow2.f32 %v1208_v6 }
 0x2a5   :  { %346 = vadd.xlane.f32.xlu0 %v345_v63 }
 0x2a9   :  { %792 = vadd.xlane.f32.xlu0 %v791_v35 }
 0x2ad   :  { %795 = vadd.xlane.f32.xlu0 %v794_v13 }
 0x2af   :  { %v329_v46 = vpop.xlane.xlu1 %328 }
 0x2b0   :  { %v349_v9 = vadd.f32 %v329_v46, %v317_v23  ;;  %v3687_v23 = vpop.eup %3686 }
 0x2b1   :  { %801 = vadd.xlane.f32.xlu0 %v800_v12  ;;  %v4640_v46 = vmul.f32 %v3687_v23, %v4448_v31  ;;  %v368_v12 = vld [vmem:[#allocation4 + $0x18] sm:$0xff] }
 0x2b2   :  { %358 = vst.msk [vmem:[#allocation3 + $0x8] sm:$0xff] %vm356_vm4, %v349_v9  ;;  %v365_v9 = vld [vmem:[#allocation4] sm:$0xff] }
 0x2b3   :  { %v338_v41 = vpop.xlane.xlu1 %337  ;;  %v1272_v49 = vsel %vm179_vm1, %v4640_v46, 0.0 }
 0x2b4   :  { %v352_v36 = vadd.f32 %v338_v41, %v320_v55  ;;  %v4642_v55 = vld [vmem:[#allocation2 + $0x38] sm:$0xff] }
 0x2b5   :  { %807 = vadd.xlane.f32.xlu0 %v806_v42  ;;  %v416_v42 = vmul.f32 %v4512_v3, %v368_v12 }
 0x2b6   :  { %361 = vst.msk [vmem:[#allocation3 + $0x20] sm:$0xff] %vm356_vm4, %v352_v36 }
 0x2b7   :  { %v344_v16 = vpop.xlane.xlu1 %343 }
 0x2b8   :  { %v354_v39 = vadd.f32 %v344_v16, %v322_v51 }
 0x2ba   :  { %363 = vst.msk [vmem:[#allocation3 + $0x30] sm:$0xff] %vm356_vm4, %v354_v39 }
 0x2bb   :  { %v4627_v56 = vpop.xlane.xlu1 %789 }
 0x2bf   :  { %v4629_v29 = vpop.xlane.xlu1 %798 }
 0x2c3   :  { %v4632_v45 = vpop.xlane.xlu1 %804 }
 0x2c7   :  { %v4636_v63 = vpop.xlane.xlu1 %810 }
 0x2cb   :  { %1192 = vperm.xlu0 %3611, %v4568_v25   ;;  %v1188_v35 = vpop.permute.xlu1 %1187 }
 0x2cc   :  { %v1205_v21 = vsub.f32 %v4391_v22, %v1188_v35  ;;  %v413_v22 = vmul.f32 %v4485_v58, %v365_v9  ;;  %v372_v58 = vld [vmem:[#allocation4 + $0x38] sm:$0xff] }
 0x2ce   :  { %v1218_v13 = vmul.f32 1.442695, %v1205_v21 }
 0x2d0   :  { %3688 = vpow2.f32 %v1218_v13  ;;  %v1281_v13 = vsel %vm179_vm1, %v4587_v54, 0.0 }
 0x2da   :  { %v3689_v6 = vpop.eup %3688 }
 0x2db   :  { %v4664_v23 = vmul.f32 %v3689_v6, %v4457_v1 }
 0x2e9   :  { %v1151_v41 = vpop.xlane.xlu0 %1150 }
 0x2ea   :  { %v4648_v33 = vmax.f32 %v4642_v55, %v1151_v41  ;;  %1273 = vadd.xlane.f32.xlu0 %v1272_v49  ;;  %v420_v41 = vmul.f32 %v4533_v52, %v372_v58 }
 0x2eb   :  { %v3518_v36 = vpop.f32.mrb[0].mxu0 }
 0x2ec   :  { %1518 = vst.msk [vmem:[#allocation2 + $0x38] sm:$0xff] %vm1304_vm10, %v4648_v33  ;;  %v528_v51 = vadd.f32 %v3518_v36, %v415_v38  ;;  %v495_v16 = vpop.f32.mrb[1].mxu0 }
 0x2ed   :  { %v526_v39 = vadd.f32 %v495_v16, %v413_v22  ;;  %v3519_v24 = vpop.f32.mrb[2].mxu0  ;;  %v418_v22 = vmul.f32 %v4523_v11, %v370_v59 }
 0x2ee   :  { %537 = vst.msk [vmem:[#allocation4 + $0x10] sm:$0xff] %vm534_vm0, %v528_v51  ;;  %v529_v35 = vadd.f32 %v3519_v24, %v416_v42  ;;  %v4657_v21 = vpop.f32.mrb[3].mxu0  ;;  %1279 = vadd.xlane.f32.xlu0 %v1278_v27  ;;  %v1287_v51 = vsel %vm179_vm1, %v4664_v23, 0.0  ;;  %v1233_v27 = vsub.f32 %v4412_v17, %v4415_v20 }
 0x2ef   :  { %535 = vst.msk [vmem:[#allocation4] sm:$0xff] %vm534_vm0, %v526_v39 }
 0x2f0   :  { %538 = vst.msk [vmem:[#allocation4 + $0x18] sm:$0xff] %vm534_vm0, %v529_v35  ;;  %v1242_v35 = vmul.f32 1.442695, %v1233_v27 }
 0x2f1   :  { %v1168_v3 = vpop.permute.xlu0 %1167 }
 0x2f2   :  { %v1201_v9 = vsub.f32 %v4273_v34, %v1168_v3  ;;  %1282 = vadd.xlane.f32.xlu0 %v1281_v13 }
 0x2f3   :  { %v4667_v12 = vpop.f32.mrb[4].mxu0 }
 0x2f4   :  { %v1210_v49 = vmul.f32 1.442695, %v1201_v9  ;;  %v4670_v38 = vpop.f32.mrb[5].mxu0 }
 0x2f5   :  { %v3523_v36 = vpop.f32.mrb[6].mxu0  ;;  %v1183_v42 = vpop.permute.xlu0 %1182 }
 0x2f6   :  { %3690 = vpow2.f32 %v1210_v49  ;;  %v533_v16 = vadd.f32 %v3523_v36, %v420_v41  ;;  %v1204_v39 = vsub.f32 %v4395_v40, %v1183_v42  ;;  %v514_v34 = vpop.f32.mrb[7].mxu0  ;;  %1288 = vadd.xlane.f32.xlu0 %v1287_v51 }
 0x2f7   :  { %v531_v24 = vadd.f32 %v514_v34, %v418_v22  ;;  %v308_v34 = vld [vmem:[#allocation3] sm:$0xff] }
 0x2f8   :  { %542 = vst.msk [vmem:[#allocation4 + $0x38] sm:$0xff] %vm534_vm0, %v533_v16  ;;  %v1216_v52 = vmul.f32 1.442695, %v1204_v39  ;;  %v748_v16 = vsub.f32 %v4206_v43, %v4209_v44  ;;  %v311_v44 = vld [vmem:[#allocation3 + $0x18] sm:$0xff] }
 0x2f9   :  { %540 = vst.msk [vmem:[#allocation4 + $0x28] sm:$0xff] %vm534_vm0, %v531_v24  ;;  %v316_v24 = vmul.f32 %v4332_v5, %v308_v34  ;;  %v319_v5 = vmul.f32 %v4345_v14, %v311_v44 }
 0x2fa   :  { %3692 = vpow2.f32 %v1216_v52  ;;  %v756_v39 = vmul.f32 1.442695, %v748_v16  ;;  %v751_v52 = vsub.f32 %v4222_v0, %v4225_v4 }
 0x2fb   :  { %v4680_v11 = vpop.f32.mrb[0].mxu1  ;;  %3694 = vpow2.f32 %v1242_v35  ;;  %v310_v35 = vld [vmem:[#allocation3 + $0x10] sm:$0xff] }
 0x2fc   :  { %v4682_v6 = vpop.f32.mrb[1].mxu1  ;;  %3696 = vpow2.f32 %v756_v39 }
 0x2fd   :  { %v4684_v58 = vpop.f32.mrb[2].mxu1 }
 0x2fe   :  { %v4686_v40 = vpop.f32.mrb[3].mxu1 }
 0x300   :  { %v3691_v3 = vpop.eup %3690 }
 0x301   :  { %v1225_v13 = vmul.f32 %v3691_v3, %v4455_v28 }
 0x303   :  { %v4689_v59 = vpop.f32.mrb[4].mxu1  ;;  %v1275_v17 = vsel %vm179_vm1, %v1225_v13, 0.0  ;;  %v1369_v20 = vpack.c.bf16 %v1225_v13, %v4640_v46  ;;  %v318_v13 = vmul.f32 %v4339_v2, %v310_v35 }
 0x304   :  { %v3693_v9 = vpop.eup %3692  ;;  %v4693_v41 = vpop.f32.mrb[5].mxu1  ;;  %1276 = vadd.xlane.f32.xlu1 %v1275_v17  ;;  %v762_v17 = vmul.f32 1.442695, %v751_v52 }
 0x305   :  { %v4695_v49 = vpop.f32.mrb[6].mxu1  ;;  %3548 = vmatprep.mubr.msk.bf16.mxu0 %vm179_vm1, %v1369_v20  ;;  %v4699_v22 = vmul.f32 %v3693_v9, %v4470_v62  ;;  %v4707_v46 = vpop.eup %3694  ;;  %v753_v20 = vsub.f32 %v4238_v7, %v4241_v18  ;;  %v6275_v18 = vld [vmem:[#allocation8_spill] sm:$0xff] }
 0x306   :  { %v4701_v36 = vpop.f32.mrb[7].mxu1  ;;  %3698 = vpow2.f32 %v762_v17  ;;  %v4721_v39 = vpop.eup %3696  ;;  %v773_v17 = vld [vmem:[#allocation3 + $0x8] sm:$0xff] }
 0x307   :  { %v1284_v42 = vsel %vm179_vm1, %v4699_v22, 0.0  ;;  %v1371_v51 = vpack.c.bf16 %v4664_v23, %v4699_v22  ;;  %v766_v0 = vmul.f32 1.442695, %v753_v20 }
 0x308   :  { %1285 = vadd.xlane.f32.xlu1 %v1284_v42  ;;  %v313_v42 = vld [vmem:[#allocation3 + $0x28] sm:$0xff] }
 0x309   :  { %v321_v2 = vmul.f32 %v4352_v48, %v313_v42  ;;  %3700 = vpow2.f32 %v766_v0 }
 0x30c   :  { %1328 = vperm.xlu0 %3611, %v4707_v46  }
 0x322   :  { %v326_v27 = vpop.xlane.xlu0 %325 }
 0x323   :  { %v348_v3 = vadd.f32 %v326_v27, %v316_v24  ;;  %v6276_v24 = vsub.f32 %v6275_v18, %v4284_v53  ;;  %v315_v27 = vld [vmem:[#allocation3 + $0x38] sm:$0xff]  ;;  %v781_v53 = vmul.f32 %v4366_v61, %v773_v17  ;;  %v776_v61 = vld [vmem:[#allocation3 + $0x20] sm:$0xff] }
 0x324   :  { %v6279_v17 = vld [vmem:[#allocation11_spill] sm:$0xff] }
 0x325   :  { %357 = vst.msk [vmem:[#allocation3] sm:$0xff] %vm356_vm4, %v348_v3  ;;  %v770_v52 = vmul.f32 1.442695, %v6276_v24 }
 0x326   :  { %v332_v43 = vpop.xlane.xlu0 %331 }
 0x327   :  { %v350_v9 = vadd.f32 %v332_v43, %v318_v13  ;;  %v323_v13 = vmul.f32 %v4359_v47, %v315_v27  ;;  %3702 = vpow2.f32 %v770_v52  ;;  %v4733_v43 = vpop.eup %3698  ;;  %v778_v27 = vld [vmem:[#allocation3 + $0x30] sm:$0xff] }
 0x329   :  { %359 = vst.msk [vmem:[#allocation3 + $0x10] sm:$0xff] %vm356_vm4, %v350_v9 }
 0x32a   :  { %v335_v4 = vpop.xlane.xlu0 %334 }
 0x32b   :  { %v351_v16 = vadd.f32 %v335_v4, %v319_v5  ;;  %v4739_v4 = vpop.eup %3700 }
 0x32c   :  { %v772_v34 = vld [vmem:[#allocation3] sm:$0xff]  ;;  %6277 = vst [vmem:[#allocation8_spill] sm:$0xff] %v4739_v4 }
 0x32d   :  { %360 = vst.msk [vmem:[#allocation3 + $0x18] sm:$0xff] %vm356_vm4, %v351_v16  ;;  %v780_v7 = vmul.f32 %v4721_v39, %v772_v34 }
 0x32e   :  { %v341_v14 = vpop.xlane.xlu0 %340 }
 0x32f   :  { %v353_v35 = vadd.f32 %v341_v14, %v321_v2  ;;  %v812_v3 = vadd.f32 %v4627_v56, %v780_v7 }
 0x330   :  { %v774_v5 = vld [vmem:[#allocation3 + $0x10] sm:$0xff] }
 0x331   :  { %362 = vst.msk [vmem:[#allocation3 + $0x28] sm:$0xff] %vm356_vm4, %v353_v35  ;;  %v782_v16 = vmul.f32 %v4372_v30, %v774_v5  ;;  %v4746_v24 = vpop.eup %3702 }
 0x332   :  { %821 = vst.msk [vmem:[#allocation3] sm:$0xff] %vm820_vm5, %v812_v3  ;;  %v347_v48 = vpop.xlane.xlu0 %346  ;;  %6278 = vst [vmem:[#allocation27_spill] sm:$0xff] %v4746_v24 }
 0x333   :  { %v355_v20 = vadd.f32 %v347_v48, %v323_v13 }
 0x334   :  { %v775_v44 = vld [vmem:[#allocation3 + $0x18] sm:$0xff] }
 0x335   :  { %364 = vst.msk [vmem:[#allocation3 + $0x38] sm:$0xff] %vm356_vm4, %v355_v20  ;;  %v783_v9 = vmul.f32 %v4733_v43, %v775_v44 }
 0x336   :  { %v793_v56 = vpop.xlane.xlu0 %792 }
 0x337   :  { %v813_v0 = vadd.f32 %v793_v56, %v781_v53  ;;  %v815_v47 = vadd.f32 %v4629_v29, %v783_v9  ;;  %v784_v29 = vmul.f32 %v4376_v37, %v776_v61  ;;  %v6281_v56 = vld [vmem:[#allocation9_spill] sm:$0xff]  ;;  %v6286_v61 = vld [vmem:[#allocation15_spill] sm:$0xff] }
 0x338   :  { %v777_v42 = vld [vmem:[#allocation3 + $0x28] sm:$0xff] }
 0x339   :  { %822 = vst.msk [vmem:[#allocation3 + $0x8] sm:$0xff] %vm820_vm5, %v813_v0  ;;  %824 = vst.msk [vmem:[#allocation3 + $0x18] sm:$0xff] %vm820_vm5, %v815_v47  ;;  %v785_v34 = vmul.f32 %v4739_v4, %v777_v42  ;;  %v6282_v47 = vld [vmem:[#allocation12_spill] sm:$0xff]  ;;  %v6283_v42 = vld [vmem:[#allocation13_spill] sm:$0xff] }
 0x33a   :  { %v796_v2 = vpop.xlane.xlu0 %795 }
 0x33b   :  { %v814_v7 = vadd.f32 %v796_v2, %v782_v16  ;;  %v817_v18 = vadd.f32 %v4632_v45, %v785_v34  ;;  %v786_v45 = vmul.f32 %v4380_v19, %v778_v27  ;;  %v6280_v19 = vld [vmem:[#allocation10_spill] sm:$0xff]  ;;  %v6284_v16 = vsub.f32 %v6282_v47, %v6283_v42 }
 0x33c   :  { %v779_v52 = vld [vmem:[#allocation3 + $0x38] sm:$0xff]  ;;  %v1232_v5 = vsub.f32 %v6281_v56, %v6280_v19  ;;  %v6285_v2 = vld [vmem:[#allocation14_spill] sm:$0xff]  ;;  %v1239_v27 = vsub.f32 %v4642_v55, %v4648_v33 }
 0x33d   :  { %823 = vst.msk [vmem:[#allocation3 + $0x10] sm:$0xff] %vm820_vm5, %v814_v7  ;;  %826 = vst.msk [vmem:[#allocation3 + $0x28] sm:$0xff] %vm820_vm5, %v817_v18  ;;  %v787_v30 = vmul.f32 %v4746_v24, %v779_v52  ;;  %v1244_v34 = vmul.f32 1.442695, %v6284_v16  ;;  %v6287_v7 = vsub.f32 %v6285_v2, %v6286_v61  ;;  %v6288_v52 = vld [vmem:[#allocation21_spill] sm:$0xff]  ;;  %v6291_v61 = vld [vmem:[#allocation23_spill] sm:$0xff] }
 0x33e   :  { %v802_v14 = vpop.xlane.xlu0 %801  ;;  %v1240_v0 = vmul.f32 1.442695, %v1232_v5 }
 0x33f   :  { %v816_v35 = vadd.f32 %v802_v14, %v784_v29  ;;  %v819_v3 = vadd.f32 %v4636_v63, %v787_v30  ;;  %v1246_v18 = vmul.f32 1.442695, %v6287_v7  ;;  %v6289_v29 = vld [vmem:[#allocation22_spill] sm:$0xff]  ;;  %v6292_v7 = vld [vmem:[#allocation24_spill] sm:$0xff] }
 0x340   :  { %v6290_v30 = vsub.f32 %v6288_v52, %v6289_v29  ;;  %v1259_v19 = vld [vmem:[#allocation3 + $0x18] sm:$0xff]  ;;  %v4790_v29 = vld [vmem:[%s6194_s3 + $0x8] sm:$0xff]  }
 0x341   :  { %825 = vst.msk [vmem:[#allocation3 + $0x20] sm:$0xff] %vm820_vm5, %v816_v35  ;;  %828 = vst.msk [vmem:[#allocation3 + $0x38] sm:$0xff] %vm820_vm5, %v819_v3  ;;  %v1254_v3 = vmul.f32 1.442695, %v1239_v27  ;;  %v1521_v27 = vld [vmem:[%s6192_s1 + $0x8] sm:$0xff] }
 0x342   :  { %v808_v13 = vpop.xlane.xlu0 %807  ;;  %v1250_v14 = vmul.f32 1.442695, %v6290_v30  ;;  %v6226_v30 = vmov 3  }
 0x343   :  { %v818_v48 = vadd.f32 %v808_v13, %v786_v45  ;;  %v1256_v45 = vld [vmem:[#allocation3] sm:$0xff] }
 0x345   :  { %827 = vst.msk [vmem:[#allocation3 + $0x30] sm:$0xff] %vm820_vm5, %v818_v48 }
 0x34a   :  { %v1193_v37 = vpop.permute.xlu0 %1192 }
 0x34b   :  { %v1206_v20 = vsub.f32 %v6279_v17, %v1193_v37  ;;  %v1258_v17 = vld [vmem:[#allocation3 + $0x10] sm:$0xff] }
 0x34d   :  { %v1220_v44 = vmul.f32 1.442695, %v1206_v20 }
 0x34f   :  { %3704 = vpow2.f32 %v1220_v44 }
 0x350   :  { %3706 = vpow2.f32 %v1240_v0  ;;  %v1261_v0 = vld [vmem:[#allocation3 + $0x28] sm:$0xff] }
 0x351   :  { %3708 = vpow2.f32 %v1244_v34 }
 0x352   :  { %3710 = vpow2.f32 %v1246_v18  ;;  %v6293_v18 = vsub.f32 %v6291_v61, %v6292_v7 }
 0x353   :  { %3712 = vpow2.f32 %v1250_v14  ;;  %v4798_v14 = vld [vmem:[%s6194_s3 + $0x18] sm:$0xff]  }
 0x354   :  { %3714 = vpow2.f32 %v1254_v3  ;;  %v1248_v52 = vmul.f32 1.442695, %v6293_v18  ;;  %v1522_v3 = vld [vmem:[%s6192_s1 + $0x10] sm:$0xff] }
 0x356   :  { %3716 = vpow2.f32 %v1248_v52  ;;  %v6296_v52 = vld [vmem:[#allocation16_spill] sm:$0xff] }
 0x359   :  { %v3705_v53 = vpop.eup %3704 }
 0x35a   :  { %v4759_v9 = vmul.f32 %v3705_v53, %v4489_v10  ;;  %v3707_v35 = vpop.eup %3706 }
 0x35b   :  { %v3709_v13 = vpop.eup %3708  ;;  %v1264_v48 = vmul.f32 %v3707_v35, %v1256_v45 }
 0x35c   :  { %v1290_v63 = vsel %vm179_vm1, %v4759_v9, 0.0  ;;  %v3711_v44 = vpop.eup %3710  ;;  %v1266_v53 = vmul.f32 %v3709_v13, %v1258_v17 }
 0x35d   :  { %1291 = vadd.xlane.f32.xlu1 %v1290_v63  ;;  %v1267_v56 = vmul.f32 %v3711_v44, %v1259_v19  ;;  %v1526_v19 = vld [vmem:[%s6192_s1 + $0x30] sm:$0xff] }
 0x36e   :  { %1197 = vperm.xlu1 %3610, %v4648_v33   ;;  %v3713_v33 = vpop.eup %3712 }
 0x36f   :  { %v4779_v42 = vpop.eup %3714  ;;  %v1269_v16 = vmul.f32 %v3713_v33, %v1261_v0 }
 0x370   :  { %v3717_v17 = vpop.eup %3716 }
 0x372   :  { %1323 = vperm.xlu1 %3610, %v3707_v35   ;;  %v1257_v35 = vld [vmem:[#allocation3 + $0x8] sm:$0xff] }
 0x373   :  { %v1265_v45 = vmul.f32 %v4707_v46, %v1257_v35  ;;  %v6294_v46 = vld [vmem:[#allocation25_spill] sm:$0xff] }
 0x376   :  { %1333 = vperm.xlu1 %3610, %v3709_v13  }
 0x377   :  { %v1274_v37 = vpop.xlane.xlu0 %1273 }
 0x378   :  { %v1296_v20 = vadd.f32 %v1274_v37, %v1264_v48  ;;  %v1260_v48 = vld [vmem:[#allocation3 + $0x20] sm:$0xff] }
 0x37a   :  { %1305 = vst.msk [vmem:[#allocation3] sm:$0xff] %vm1304_vm10, %v1296_v20  ;;  %1338 = vperm.xlu1 %3610, %v3711_v44   ;;  %v1524_v20 = vld [vmem:[%s6192_s1 + $0x20] sm:$0xff]  ;;  %v1268_v44 = vmul.f32 %v3717_v17, %v1260_v48 }
 0x37b   :  { %v1280_v63 = vpop.xlane.xlu0 %1279 }
 0x37c   :  { %v1298_v55 = vadd.f32 %v1280_v63, %v1266_v53 }
 0x37e   :  { %1307 = vst.msk [vmem:[#allocation3 + $0x10] sm:$0xff] %vm1304_vm10, %v1298_v55  ;;  %1348 = vperm.xlu1 %3610, %v3713_v33   ;;  %v1238_v55 = vsub.f32 %v6294_v46, %v4568_v25 }
 0x37f   :  { %v1283_v5 = vpop.xlane.xlu0 %1282 }
 0x380   :  { %v1299_v47 = vadd.f32 %v1283_v5, %v1267_v56  ;;  %v1252_v33 = vmul.f32 1.442695, %v1238_v55  ;;  %v1262_v56 = vld [vmem:[#allocation3 + $0x30] sm:$0xff]  ;;  %v4863_v55 = vld [vmem:[%s6191_s0 + $0x3] ss:$0 sm:$0xff] }
 0x382   :  { %1308 = vst.msk [vmem:[#allocation3 + $0x18] sm:$0xff] %vm1304_vm10, %v1299_v47  ;;  %1358 = vperm.xlu1 %3610, %v4779_v42   ;;  %3718 = vpow2.f32 %v1252_v33 }
 0x383   :  { %v1289_v34 = vpop.xlane.xlu0 %1288 }
 0x384   :  { %v1301_v2 = vadd.f32 %v1289_v34, %v1269_v16 }
 0x386   :  { %1310 = vst.msk [vmem:[#allocation3 + $0x28] sm:$0xff] %vm1304_vm10, %v1301_v2  ;;  %1375 = vrot.lane.b32.xlu1 %v4790_v29, %s3885_s19  ;;  %v6295_v2 = vld [vmem:[#allocation26_spill] sm:$0xff] }
 0x387   :  { %3613 = vset.pattern.permute.xlu1 %v6226_v30 }
 0x38a   :  { %1379 = vrot.lane.b32.xlu1 %v4798_v14, %s3885_s19 }
 0x38c   :  { %v3719_v5 = vpop.eup %3718 }
 0x38d   :  { %v1270_v0 = vmul.f32 %v3719_v5, %v1262_v56 }
 0x38e   :  { %1539 = vperm.xlu1 %3613, %v1521_v27  }
 0x391   :  { %v1277_v13 = vpop.xlane.xlu1 %1276 }
 0x392   :  { %v1297_v37 = vadd.f32 %v1277_v13, %v1265_v45  ;;  %1544 = vperm.xlu1 %3613, %v1522_v3   ;;  %v4835_v13 = vld [vmem:[%s6194_s3] sm:$0xff]  }
 0x394   :  { %1306 = vst.msk [vmem:[#allocation3 + $0x8] sm:$0xff] %vm1304_vm10, %v1297_v37  ;;  %v4845_v37 = vld [vmem:[%s6194_s3 + $0x10] sm:$0xff]   ;;  %s3891_s3 = smov 16  }
 0x395   :  { %v1286_v53 = vpop.xlane.xlu1 %1285 }
 0x396   :  { %v1300_v63 = vadd.f32 %v1286_v53, %v1268_v44  ;;  %1554 = vperm.xlu1 %3613, %v1524_v20   ;;  %v1523_v44 = vld [vmem:[%s6192_s1 + $0x18] sm:$0xff] }
 0x398   :  { %1309 = vst.msk [vmem:[#allocation3 + $0x20] sm:$0xff] %vm1304_vm10, %v1300_v63  ;;  %v1525_v63 = vld [vmem:[%s6192_s1 + $0x28] sm:$0xff] }
 0x39a   :  { %1564 = vperm.xlu1 %3613, %v1526_v19  }
 0x3ea   :  { %v1292_v47 = vpop.xlane.xlu1 %1291 }
 0x3eb   :  { %v1302_v16 = vadd.f32 %v1292_v47, %v1270_v0 }
 0x3ed   :  { %1311 = vst.msk [vmem:[#allocation3 + $0x30] sm:$0xff] %vm1304_vm10, %v1302_v16 }
 0x3ee   :  { %v1198_v34 = vpop.permute.xlu1 %1197 }
 0x3ef   :  { %v1207_v61 = vsub.f32 %v6295_v2, %v1198_v34 }
 0x3f1   :  { %v1222_v7 = vmul.f32 1.442695, %v1207_v61 }
 0x3f2   :  { %v4826_v35 = vpop.permute.xlu1 %1323 }
 0x3f3   :  { %3720 = vpow2.f32 %v1222_v7  ;;  %6297 = vst [vmem:[#allocation11_spill] sm:$0xff] %v4826_v35 }
 0x3f6   :  { %v4828_v3 = vpop.permute.xlu1 %1333 }
 0x3fa   :  { %v4830_v45 = vpop.permute.xlu1 %1338 }
 0x3fb   :  { %6298 = vst [vmem:[#allocation10_spill] sm:$0xff] %v4830_v45  ;;  %v6301_v45 = vld [vmem:[#allocation18_spill] sm:$0xff] }
 0x3fd   :  { %v3721_v18 = vpop.eup %3720 }
 0x3fe   :  { %v4822_v27 = vmul.f32 %v3721_v18, %v6296_v52  ;;  %v4840_v48 = vpop.permute.xlu1 %1348 }
 0x3ff   :  { %6299 = vst [vmem:[#allocation9_spill] sm:$0xff] %v4840_v48  ;;  %v831_v48 = vld [vmem:[#allocation4 + $0x10] sm:$0xff] }
 0x400   :  { %v1293_v25 = vsel %vm179_vm1, %v4822_v27, 0.0  ;;  %v879_v35 = vmul.f32 %v6301_v45, %v831_v48 }
 0x401   :  { %1294 = vadd.xlane.f32.xlu0 %v1293_v25 }
 0x402   :  { %v4852_v20 = vpop.permute.xlu1 %1358 }
 0x403   :  { %6300 = vst [vmem:[#allocation12_spill] sm:$0xff] %v4852_v20 }
 0x406   :  { %v1376_v53 = vpop.permute.xlu1 %1375 }
 0x40a   :  { %v1380_v19 = vpop.permute.xlu1 %1379 }
 0x40e   :  { %v1540_v46 = vpop.permute.xlu1 %1539 }
 0x40f   :  { %v1573_v56 = vadd.f32 %v4863_v55, %v1540_v46 }
 0x411   :  { %v1589_v0 = vmul.f32 0.2, %v1573_v56  ;;  %vm1581_vm2 = vcmp.ge.f32.partialorder %v1573_v56, 0.0 }
 0x412   :  { %v1545_v33 = vpop.permute.xlu1 %1544 }
 0x413   :  { %v1574_v47 = vadd.f32 %v4863_v55, %v1545_v33  ;;  %v4867_v34 = vsel %vm1581_vm2, %v1573_v56, %v1589_v0  ;;  %v1527_v0 = vld [vmem:[%s6192_s1 + $0x38] sm:$0xff]  ;;  %vm3378_vm2 = vcmask 23552  }
 0x414   :  { %v1615_v7 = vsel %vm179_vm1, %v4867_v34, -inf }
 0x415   :  { %v1590_v16 = vmul.f32 0.2, %v1574_v47  ;;  %vm1582_vm3 = vcmp.ge.f32.partialorder %v1574_v47, 0.0 }
 0x417   :  { %1343 = vperm.xlu0 %3611, %v3717_v17   ;;  %v1520_v17 = vld [vmem:[%s6192_s1] sm:$0xff]  ;;  %v4872_v25 = vsel %vm1582_vm3, %v1574_v47, %v1590_v16  ;;  %v4888_v47 = vpop.permute.xlu0 %1328  ;;  %v1263_v16 = vld [vmem:[#allocation3 + $0x38] sm:$0xff]  ;;  %s3887_s1 = smov 20   ;;  %vm3395_vm3 = vcmask 39936  }
 0x41b   :  { %1353 = vperm.xlu0 %3611, %v3719_v5   ;;  %v1555_v5 = vpop.permute.xlu1 %1554 }
 0x41c   :  { %v1576_v2 = vadd.f32 %v4863_v55, %v1555_v5 }
 0x41e   :  { %v1592_v18 = vmul.f32 0.2, %v1576_v2  ;;  %vm1584_vm5 = vcmp.ge.f32.partialorder %v1576_v2, 0.0 }
 0x41f   :  { %1373 = vrot.lane.b32.xlu0 %v4835_v13, %s3885_s19  ;;  %v1565_v61 = vpop.permute.xlu1 %1564 }
 0x420   :  { %3612 = vset.pattern.permute.xlu0 %v6226_v30  ;;  %v4877_v46 = vsel %vm1584_vm5, %v1576_v2, %v1592_v18  ;;  %v1271_v2 = vmul.f32 %v4779_v42, %v1263_v16  ;;  %vm3404_vm5 = vcmask 48128  }
 0x421   :  { %v1624_v33 = vsel %vm179_vm1, %v4877_v46, -inf }
 0x423   :  { %1377 = vrot.lane.b32.xlu0 %v4845_v37, %s3885_s19  ;;  %s3888_s19 = smov 40  }
 0x427   :  { %1534 = vperm.xlu0 %3612, %v1520_v17   ;;  %v1578_v17 = vadd.f32 %v4863_v55, %v1565_v61 }
 0x429   :  { %vm1586_vm6 = vcmp.ge.f32.partialorder %v1578_v17, 0.0 }
 0x42b   :  { %1549 = vperm.xlu0 %3612, %v1523_v44   ;;  %v1618_v44 = vsel %vm179_vm1, %v4872_v25, -inf }
 0x42f   :  { %1559 = vperm.xlu0 %3612, %v1525_v63   ;;  %v1594_v63 = vmul.f32 0.2, %v1578_v17 }
 0x431   :  { %v4881_v56 = vsel %vm1586_vm6, %v1578_v17, %v1594_v63  ;;  %vm3413_vm6 = vcmask 56320  }
 0x432   :  { %v1630_v5 = vsel %vm179_vm1, %v4881_v56, -inf }
 0x44e   :  { %1616 = vmax.xlane.f32.xlu0 %v1615_v7 }
 0x452   :  { %1619 = vmax.xlane.f32.xlu0 %v1618_v44 }
 0x456   :  { %1625 = vmax.xlane.f32.xlu0 %v1624_v33 }
 0x45a   :  { %1631 = vmax.xlane.f32.xlu0 %v1630_v5 }
 0x470   :  { %1569 = vperm.xlu0 %3612, %v1527_v0  }
 0x48e   :  { %v1295_v61 = vpop.xlane.xlu0 %1294 }
 0x48f   :  { %v1303_v7 = vadd.f32 %v1295_v61, %v1271_v2 }
 0x491   :  { %1312 = vst.msk [vmem:[#allocation3 + $0x38] sm:$0xff] %vm1304_vm10, %v1303_v7 }
 0x496   :  { %v4892_v18 = vpop.permute.xlu0 %1343 }
 0x49a   :  { %v4894_v17 = vpop.permute.xlu0 %1353 }
 0x49e   :  { %v1374_v44 = vpop.permute.xlu0 %1373 }
 0x49f   :  { %3540 = vmatprep.subr.bf16.mxu0 %v1374_v44 }
 0x4a0   :  { %3541 = vmatpush3.bf16.msra.mxu0 %v1374_v44 }
 0x4a1   :  { %3542 = vmatprep.subr.bf16.mxu0 %v1376_v53 }
 0x4a2   :  { %v1378_v63 = vpop.permute.xlu0 %1377 }
 0x4a4   :  { %3543 = vmatpush3.bf16.msra.mxu0 %v1376_v53 }
 0x4a5   :  { %3544 = vmatprep.subr.bf16.mxu0 %v1378_v63 }
 0x4a6   :  { %v1535_v33 = vpop.permute.xlu0 %1534 }
 0x4a7   :  { %v1572_v5 = vadd.f32 %v4863_v55, %v1535_v33 }
 0x4a8   :  { %3545 = vmatpush3.bf16.msra.mxu0 %v1378_v63 }
 0x4a9   :  { %v1588_v42 = vmul.f32 0.2, %v1572_v5  ;;  %3546 = vmatprep.subr.bf16.mxu0 %v1380_v19  ;;  %vm1580_vm8 = vcmp.ge.f32.partialorder %v1572_v5, 0.0 }
 0x4aa   :  { %v1550_v0 = vpop.permute.xlu0 %1549 }
 0x4ab   :  { %v1575_v16 = vadd.f32 %v4863_v55, %v1550_v0  ;;  %v4898_v2 = vsel %vm1580_vm8, %v1572_v5, %v1588_v42  ;;  %v4931_v42 = vld [vmem:[#allocation2 + $0x10] sm:$0xff]  ;;  %vm3422_vm8 = vcmask 64512  }
 0x4ac   :  { %3547 = vmatpush3.bf16.msra.mxu0 %v1380_v19  ;;  %v1612_v61 = vsel %vm179_vm1, %v4898_v2, -inf }
 0x4ad   :  { %v1591_v7 = vmul.f32 0.2, %v1575_v16  ;;  %1613 = vmax.xlane.f32.xlu1 %v1612_v61  ;;  %vm1583_vm9 = vcmp.ge.f32.partialorder %v1575_v16, 0.0 }
 0x4ae   :  { %v1560_v53 = vpop.permute.xlu0 %1559 }
 0x4af   :  { %v1577_v44 = vadd.f32 %v4863_v55, %v1560_v53  ;;  %3549 = vmatmul.mubr.msk.bf16.vlgmr.msra.gmra.mrb[8].mxu0 %vm179_vm1, %v1370_v60  ;;  %v4907_v63 = vsel %vm1583_vm9, %v1575_v16, %v1591_v7  ;;  %v1372_v60 = vpack.c.bf16 %v4822_v27, %v4759_v9  ;;  %v4940_v16 = vld [vmem:[#allocation2 + $0x20] sm:$0xff]  ;;  %v5011_v53 = vld [vmem:[#allocation2 + $0x38] sm:$0xff]  ;;  %vm3344_vm9 = vcmask 392192  }
 0x4b0   :  { %3552 = vmatprep.mubr.msk.bf16.mxu0 %vm179_vm1, %v1371_v51  ;;  %v1621_v19 = vsel %vm179_vm1, %v4907_v63, -inf }
 0x4b1   :  { %v1593_v33 = vmul.f32 0.2, %v1577_v44  ;;  %1622 = vmax.xlane.f32.xlu1 %v1621_v19  ;;  %vm1585_vm10 = vcmp.ge.f32.partialorder %v1577_v44, 0.0 }
 0x4b3   :  { %v4915_v5 = vsel %vm1585_vm10, %v1577_v44, %v1593_v33  ;;  %v4949_v44 = vld [vmem:[#allocation2 + $0x30] sm:$0xff] }
 0x4b4   :  { %v1627_v54 = vsel %vm179_vm1, %v4915_v5, -inf }
 0x4b5   :  { %1628 = vmax.xlane.f32.xlu1 %v1627_v54 }
 0x4b7   :  { %3553 = vmatmul.mubr.msk.bf16.gmra.mrb[12].mxu0 %vm179_vm1, %v1372_v60 }
 0x4db   :  { %v1617_v23 = vpop.xlane.xlu0 %1616 }
 0x4dc   :  { %v4925_v22 = vmax.f32 %v4922_v50, %v1617_v23 }
 0x4de   :  { %1996 = vst.msk [vmem:[#allocation2 + $0x8] sm:$0xff] %vm1788_vm11, %v4925_v22 }
 0x4df   :  { %v1620_v0 = vpop.xlane.xlu0 %1619 }
 0x4e0   :  { %v4934_v9 = vmax.f32 %v4931_v42, %v1620_v0 }
 0x4e2   :  { %1997 = vst.msk [vmem:[#allocation2 + $0x10] sm:$0xff] %vm1788_vm11, %v4934_v9 }
 0x4e3   :  { %v1626_v61 = vpop.xlane.xlu0 %1625 }
 0x4e4   :  { %v4943_v7 = vmax.f32 %v4940_v16, %v1626_v61 }
 0x4e6   :  { %1999 = vst.msk [vmem:[#allocation2 + $0x20] sm:$0xff] %vm1788_vm11, %v4943_v7 }
 0x4e7   :  { %v1632_v19 = vpop.xlane.xlu0 %1631 }
 0x4e8   :  { %v4952_v33 = vmax.f32 %v4949_v44, %v1632_v19 }
 0x4ea   :  { %2001 = vst.msk [vmem:[#allocation2 + $0x30] sm:$0xff] %vm1788_vm11, %v4952_v33 }
 0x4ef   :  { %v1570_v60 = vpop.permute.xlu0 %1569 }
 0x4f0   :  { %v1579_v23 = vadd.f32 %v4863_v55, %v1570_v60 }
 0x4f2   :  { %v1595_v0 = vmul.f32 0.2, %v1579_v23  ;;  %vm1587_vm12 = vcmp.ge.f32.partialorder %v1579_v23, 0.0 }
 0x4f4   :  { %v4959_v61 = vsel %vm1587_vm12, %v1579_v23, %v1595_v0  ;;  %v4995_v23 = vld [vmem:[#allocation2 + $0x28] sm:$0xff] }
 0x4f5   :  { %v1633_v30 = vsel %vm179_vm1, %v4959_v61, -inf }
 0x4f6   :  { %1634 = vmax.xlane.f32.xlu1 %v1633_v30  ;;  %v4975_v30 = vld [vmem:[#allocation2] sm:$0xff] }
 0x507   :  { %1651 = vperm.xlu1 %3613, %v4925_v22  }
 0x50b   :  { %1656 = vperm.xlu1 %3613, %v4934_v9  }
 0x50f   :  { %1666 = vperm.xlu1 %3613, %v4943_v7  }
 0x513   :  { %1676 = vperm.xlu1 %3613, %v4952_v33  }
 0x517   :  { %990 = vrot.lane.b32.xlu1 %v4680_v11, %s3887_s1  ;;  %v4985_v11 = vld [vmem:[#allocation2 + $0x18] sm:$0xff] }
 0x51b   :  { %986 = vrot.lane.b32.xlu1 %v4682_v6, %s3887_s1 }
 0x51f   :  { %998 = vrot.lane.b32.xlu1 %v4689_v59, %s3887_s1 }
 0x523   :  { %994 = vrot.lane.b32.xlu1 %v4693_v41, %s3887_s1 }
 0x53a   :  { %v1614_v55 = vpop.xlane.xlu1 %1613 }
 0x53b   :  { %v4978_v19 = vmax.f32 %v4975_v30, %v1614_v55 }
 0x53d   :  { %1995 = vst.msk [vmem:[#allocation2] sm:$0xff] %vm1788_vm11, %v4978_v19  ;;  %1646 = vperm.xlu0 %3612, %v4978_v19  }
 0x53e   :  { %v1623_v6 = vpop.xlane.xlu1 %1622 }
 0x53f   :  { %v4988_v59 = vmax.f32 %v4985_v11, %v1623_v6 }
 0x541   :  { %1998 = vst.msk [vmem:[#allocation2 + $0x18] sm:$0xff] %vm1788_vm11, %v4988_v59  ;;  %1661 = vperm.xlu0 %3612, %v4988_v59  }
 0x542   :  { %v1629_v0 = vpop.xlane.xlu1 %1628 }
 0x543   :  { %v4998_v55 = vmax.f32 %v4995_v23, %v1629_v0 }
 0x545   :  { %2000 = vst.msk [vmem:[#allocation2 + $0x28] sm:$0xff] %vm1788_vm11, %v4998_v55  ;;  %1671 = vperm.xlu0 %3612, %v4998_v55  }
 0x549   :  { %992 = vrot.lane.b32.xlu0 %v4684_v58, %s3887_s1 }
 0x54d   :  { %988 = vrot.lane.b32.xlu0 %v4686_v40, %s3887_s1 }
 0x551   :  { %1000 = vrot.lane.b32.xlu0 %v4695_v49, %s3887_s1 }
 0x582   :  { %v3550_v6 = vpop.f32.mrb[8].mxu0 }
 0x583   :  { %v1431_v0 = vpop.f32.mrb[9].mxu0  ;;  %1474 = vrot.lane.b32.xlu0 %v3550_v6, %s3888_s19  ;;  %v1635_v27 = vpop.xlane.xlu1 %1634 }
 0x584   :  { %v5014_v51 = vmax.f32 %v5011_v53, %v1635_v27  ;;  %v3551_v54 = vpop.f32.mrb[10].mxu0 }
 0x585   :  { %v1434_v41 = vpop.f32.mrb[11].mxu0  ;;  %1476 = vrot.lane.b32.xlu1 %v3551_v54, %s3888_s19 }
 0x586   :  { %2002 = vst.msk [vmem:[#allocation2 + $0x38] sm:$0xff] %vm1788_vm11, %v5014_v51 }
 0x587   :  { %996 = vrot.lane.b32.xlu0 %v4701_v36, %s3887_s1  ;;  %v1652_v58 = vpop.permute.xlu1 %1651 }
 0x588   :  { %v1685_v36 = vsub.f32 %v4867_v34, %v1652_v58 }
 0x589   :  { %1472 = vrot.lane.b32.xlu1 %v1434_v41, %s3888_s19 }
 0x58a   :  { %v3554_v40 = vpop.f32.mrb[12].mxu0 }
 0x58b   :  { %v1447_v49 = vpop.f32.mrb[13].mxu0  ;;  %1470 = vrot.lane.b32.xlu0 %v1431_v0, %s3888_s19  ;;  %v1657_v6 = vpop.permute.xlu1 %1656  ;;  %v1694_v0 = vmul.f32 1.442695, %v1685_v36 }
 0x58c   :  { %v3555_v60 = vpop.f32.mrb[14].mxu0  ;;  %v1686_v4 = vsub.f32 %v4872_v25, %v1657_v6 }
 0x58d   :  { %v1450_v20 = vpop.f32.mrb[15].mxu0  ;;  %1484 = vrot.lane.b32.xlu1 %v3555_v60, %s3888_s19  ;;  %3722 = vpow2.f32 %v1694_v0 }
 0x58e   :  { %v1696_v60 = vmul.f32 1.442695, %v1686_v4 }
 0x58f   :  { %1482 = vrot.lane.b32.xlu0 %v3554_v40, %s3888_s19  ;;  %v1667_v27 = vpop.permute.xlu1 %1666 }
 0x590   :  { %v1688_v40 = vsub.f32 %v4877_v46, %v1667_v27  ;;  %3724 = vpow2.f32 %v1696_v60 }
 0x591   :  { %1480 = vrot.lane.b32.xlu1 %v1450_v20, %s3888_s19 }
 0x592   :  { %v1700_v20 = vmul.f32 1.442695, %v1688_v40 }
 0x593   :  { %1478 = vrot.lane.b32.xlu0 %v1447_v49, %s3888_s19  ;;  %v1677_v54 = vpop.permute.xlu1 %1676 }
 0x594   :  { %v1690_v49 = vsub.f32 %v4881_v56, %v1677_v54  ;;  %3726 = vpow2.f32 %v1700_v20  ;;  %v6302_v20 = vsub.f32 %v4975_v30, %v4978_v19  ;;  %v6304_v30 = vsub.f32 %v4995_v23, %v4998_v55 }
 0x595   :  { %v1723_v19 = vsub.f32 %v5011_v53, %v5014_v51 }
 0x596   :  { %v1704_v45 = vmul.f32 1.442695, %v1690_v49  ;;  %v1724_v49 = vmul.f32 1.442695, %v6302_v20 }
 0x597   :  { %v991_v24 = vpop.permute.xlu1 %990  ;;  %v3723_v48 = vpop.eup %3722 }
 0x598   :  { %v1012_v41 = vadd.f32 %v991_v24, %v879_v35  ;;  %3728 = vpow2.f32 %v1704_v45  ;;  %v1709_v34 = vmul.f32 %v3723_v48, %v4455_v28  ;;  %v6303_v48 = vsub.f32 %v4985_v11, %v4988_v59 }
 0x59a   :  { %1021 = vst.msk [vmem:[#allocation4 + $0x10] sm:$0xff] %vm1018_vm13, %v1012_v41  ;;  %v3725_v24 = vpop.eup %3724  ;;  %v1759_v35 = vsel %vm179_vm1, %v1709_v34, 0.0 }
 0x59b   :  { %v5029_v58 = vmul.f32 %v3725_v24, %v4452_v26  ;;  %v1730_v24 = vmul.f32 1.442695, %v6303_v48 }
 0x59d   :  { %v1762_v4 = vsel %vm179_vm1, %v5029_v58, 0.0 }
 0x59e   :  { %v3727_v25 = vpop.eup %3726 }
 0x59f   :  { %v5034_v46 = vmul.f32 %v3727_v25, %v4470_v62 }
 0x5a1   :  { %v1768_v6 = vsel %vm179_vm1, %v5034_v46, 0.0 }
 0x5a2   :  { %v3729_v56 = vpop.eup %3728 }
 0x5a3   :  { %v5039_v28 = vmul.f32 %v3729_v56, %v4489_v10 }
 0x5a5   :  { %v1774_v54 = vsel %vm179_vm1, %v5039_v28, 0.0 }
 0x5b2   :  { %1760 = vadd.xlane.f32.xlu0 %v1759_v35 }
 0x5b6   :  { %1763 = vadd.xlane.f32.xlu0 %v1762_v4  ;;  %v1738_v4 = vmul.f32 1.442695, %v1723_v19 }
 0x5ba   :  { %1769 = vadd.xlane.f32.xlu0 %v1768_v6 }
 0x5bc   :  { %v1647_v27 = vpop.permute.xlu0 %1646 }
 0x5bd   :  { %v1684_v26 = vsub.f32 %v4898_v2, %v1647_v27  ;;  %v6305_v27 = vmov 0  }
 0x5be   :  { %1775 = vadd.xlane.f32.xlu0 %v1774_v54 }
 0x5bf   :  { %v1692_v36 = vmul.f32 1.442695, %v1684_v26 }
 0x5c0   :  { %v1662_v41 = vpop.permute.xlu0 %1661 }
 0x5c1   :  { %3730 = vpow2.f32 %v1692_v36  ;;  %v1687_v62 = vsub.f32 %v4907_v63, %v1662_v41  ;;  %v1315_v36 = vld [vmem:[#allocation4 + $0x10] sm:$0xff] }
 0x5c2   :  { %v1363_v41 = vmul.f32 %v4828_v3, %v1315_v36  ;;  %v6307_v3 = vsub.f32 %v4931_v42, %v4934_v9  ;;  %v1741_v9 = vld [vmem:[#allocation3 + $0x8] sm:$0xff] }
 0x5c3   :  { %v1698_v0 = vmul.f32 1.442695, %v1687_v62 }
 0x5c4   :  { %v1672_v60 = vpop.permute.xlu0 %1671 }
 0x5c5   :  { %3732 = vpow2.f32 %v1698_v0  ;;  %v1689_v40 = vsub.f32 %v4915_v5, %v1672_v60 }
 0x5c7   :  { %v1702_v10 = vmul.f32 1.442695, %v1689_v40  ;;  %v1728_v40 = vmul.f32 1.442695, %v6307_v3 }
 0x5c8   :  { %v5087_v6 = vpop.permute.xlu0 %992 }
 0x5c9   :  { %3734 = vpow2.f32 %v1702_v10 }
 0x5ca   :  { %3736 = vpow2.f32 %v1724_v49 }
 0x5cb   :  { %v3731_v2 = vpop.eup %3730  ;;  %3738 = vpow2.f32 %v1730_v24  ;;  %v1742_v24 = vld [vmem:[#allocation3 + $0x10] sm:$0xff] }
 0x5cc   :  { %v1708_v45 = vmul.f32 %v3731_v2, %v4448_v31  ;;  %v1734_v31 = vmul.f32 1.442695, %v6304_v30  ;;  %v5091_v26 = vpop.permute.xlu0 %988  ;;  %v1744_v30 = vld [vmem:[#allocation3 + $0x20] sm:$0xff] }
 0x5ce   :  { %v1756_v63 = vsel %vm179_vm1, %v1708_v45, 0.0  ;;  %v1853_v35 = vpack.c.bf16 %v1709_v34, %v1708_v45  ;;  %3740 = vpow2.f32 %v1734_v31 }
 0x5cf   :  { %v3733_v25 = vpop.eup %3732  ;;  %1757 = vadd.xlane.f32.xlu1 %v1756_v63  ;;  %3742 = vpow2.f32 %v1738_v4 }
 0x5d0   :  { %3564 = vmatprep.mubr.msk.bf16.mxu1 %vm179_vm1, %v1853_v35  ;;  %v5056_v5 = vmul.f32 %v3733_v25, %v4450_v57  ;;  %v5094_v54 = vpop.permute.xlu0 %1000 }
 0x5d2   :  { %v1765_v11 = vsel %vm179_vm1, %v5056_v5, 0.0  ;;  %v1854_v59 = vpack.c.bf16 %v5056_v5, %v5029_v58 }
 0x5d3   :  { %v3735_v34 = vpop.eup %3734  ;;  %1766 = vadd.xlane.f32.xlu1 %v1765_v11 }
 0x5d4   :  { %1681 = vperm.xlu0 %3612, %v5014_v51   ;;  %v5069_v57 = vmul.f32 %v3735_v34, %v4457_v1  ;;  %v5075_v55 = vpop.eup %3736 }
 0x5d5   :  { %v5078_v56 = vpop.eup %3738 }
 0x5d6   :  { %v1771_v23 = vsel %vm179_vm1, %v5069_v57, 0.0  ;;  %v1855_v53 = vpack.c.bf16 %v5069_v57, %v5034_v46 }
 0x5d7   :  { %1772 = vadd.xlane.f32.xlu1 %v1771_v23  ;;  %v1746_v23 = vld [vmem:[#allocation3 + $0x30] sm:$0xff] }
 0x5d8   :  { %1807 = vperm.xlu0 %3612, %v5075_v55   ;;  %v5081_v1 = vpop.eup %3740 }
 0x5d9   :  { %v5084_v51 = vpop.eup %3742 }
 0x5dc   :  { %1822 = vperm.xlu0 %3612, %v5078_v56  }
 0x5e0   :  { %1832 = vperm.xlu0 %3612, %v5081_v1  }
 0x5e4   :  { %1842 = vperm.xlu0 %3612, %v5084_v51  }
 0x5e8   :  { %3614 = vset.pattern.permute.xlu0 %v6305_v27 }
 0x5e9   :  { %380 = vperm.xlu0 %3614, %v4609_v15  }
 0x5ed   :  { %395 = vperm.xlu0 %3614, %v4614_v32   ;;  %v6306_v32 = vsub.f32 %v4922_v50, %v4925_v22  ;;  %v6309_v50 = vsub.f32 %v4949_v44, %v4952_v33 }
 0x5ef   :  { %v1736_v22 = vmul.f32 1.442695, %v6309_v50  ;;  %v1740_v50 = vld [vmem:[#allocation3] sm:$0xff] }
 0x5f1   :  { %405 = vperm.xlu0 %3614, %v4620_v8   ;;  %v1726_v8 = vmul.f32 1.442695, %v6306_v32 }
 0x5f3   :  { %3744 = vpow2.f32 %v1726_v8 }
 0x5f4   :  { %3746 = vpow2.f32 %v1728_v40 }
 0x5f5   :  { %v1475_v62 = vpop.permute.xlu0 %1474  ;;  %1859 = vrot.lane.b32.xlu0 %v4790_v29, %s3889_s20  ;;  %v6308_v29 = vsub.f32 %v4940_v16, %v4943_v7 }
 0x5f6   :  { %v1496_v0 = vadd.f32 %v1475_v62, %v1363_v41 }
 0x5f7   :  { %v1732_v10 = vmul.f32 1.442695, %v6308_v29 }
 0x5f8   :  { %1505 = vst.msk [vmem:[#allocation4 + $0x10] sm:$0xff] %vm1502_vm14, %v1496_v0 }
 0x5f9   :  { %1863 = vrot.lane.b32.xlu0 %v4798_v14, %s3889_s20  ;;  %v5103_v15 = vpop.permute.xlu0 %996  ;;  %v5118_v14 = vpop.permute.xlu1 %986  ;;  %3748 = vpow2.f32 %v1732_v10 }
 0x5fa   :  { %3750 = vpow2.f32 %v1736_v22 }
 0x5fd   :  { %v5108_v60 = vpop.permute.xlu0 %1470  ;;  %v5123_v49 = vpop.eup %3744 }
 0x5fe   :  { %v5127_v42 = vpop.permute.xlu1 %998  ;;  %v1749_v16 = vmul.f32 %v5123_v49, %v1741_v9  ;;  %v5130_v7 = vpop.eup %3746  ;;  %v1748_v9 = vmul.f32 %v5075_v55, %v1740_v50 }
 0x5ff   :  { %v1750_v44 = vmul.f32 %v5130_v7, %v1742_v24 }
 0x601   :  { %v5116_v20 = vpop.permute.xlu0 %1482 }
 0x602   :  { %v5132_v63 = vpop.permute.xlu1 %994 }
 0x603   :  { %v5136_v33 = vpop.eup %3748 }
 0x604   :  { %v1752_v19 = vmul.f32 %v5136_v33, %v1744_v30  ;;  %v5142_v11 = vpop.eup %3750  ;;  %v1745_v30 = vld [vmem:[#allocation3 + $0x28] sm:$0xff] }
 0x605   :  { %v5125_v2 = vpop.permute.xlu0 %1478  ;;  %v1754_v36 = vmul.f32 %v5142_v11, %v1746_v23 }
 0x606   :  { %v5138_v31 = vpop.permute.xlu1 %1476 }
 0x60a   :  { %v5146_v62 = vpop.permute.xlu1 %1472 }
 0x60e   :  { %v5149_v32 = vpop.permute.xlu1 %1484 }
 0x612   :  { %v5154_v10 = vpop.permute.xlu1 %1480 }
 0x63f   :  { %v1761_v45 = vpop.xlane.xlu0 %1760 }
 0x640   :  { %v1781_v48 = vadd.f32 %v1761_v45, %v1749_v16 }
 0x642   :  { %1790 = vst.msk [vmem:[#allocation3 + $0x8] sm:$0xff] %vm1788_vm11, %v1781_v48  ;;  %v1743_v48 = vld [vmem:[#allocation3 + $0x18] sm:$0xff] }
 0x643   :  { %v1764_v35 = vpop.xlane.xlu0 %1763 }
 0x644   :  { %v1782_v25 = vadd.f32 %v1764_v35, %v1750_v44 }
 0x646   :  { %1791 = vst.msk [vmem:[#allocation3 + $0x10] sm:$0xff] %vm1788_vm11, %v1782_v25 }
 0x647   :  { %v1770_v34 = vpop.xlane.xlu0 %1769 }
 0x648   :  { %v1784_v4 = vadd.f32 %v1770_v34, %v1752_v19  ;;  %v1753_v34 = vmul.f32 %v5081_v1, %v1745_v30 }
 0x649   :  { %v2024_v58 = vld [vmem:[#allocation3 + $0x8] sm:$0xff] }
 0x64a   :  { %1793 = vst.msk [vmem:[#allocation3 + $0x20] sm:$0xff] %vm1788_vm11, %v1784_v4 }
 0x64b   :  { %v1776_v41 = vpop.xlane.xlu0 %1775 }
 0x64c   :  { %v1786_v0 = vadd.f32 %v1776_v41, %v1754_v36 }
 0x64d   :  { %v2025_v5 = vld [vmem:[#allocation3 + $0x10] sm:$0xff] }
 0x64e   :  { %1795 = vst.msk [vmem:[#allocation3 + $0x30] sm:$0xff] %vm1788_vm11, %v1786_v0 }
 0x651   :  { %v2027_v57 = vld [vmem:[#allocation3 + $0x20] sm:$0xff] }
 0x653   :  { %v1682_v8 = vpop.permute.xlu0 %1681 }
 0x654   :  { %v1691_v3 = vsub.f32 %v4959_v61, %v1682_v8  ;;  %v1751_v61 = vmul.f32 %v5078_v56, %v1743_v48  ;;  %v366_v56 = vld [vmem:[#allocation4 + $0x8] sm:$0xff]  ;;  %v369_v8 = vld [vmem:[#allocation4 + $0x20] sm:$0xff] }
 0x656   :  { %v1706_v40 = vmul.f32 1.442695, %v1691_v3 }
 0x657   :  { %v5152_v29 = vpop.permute.xlu0 %1807 }
 0x658   :  { %3752 = vpow2.f32 %v1706_v40 }
 0x65b   :  { %v5156_v22 = vpop.permute.xlu0 %1822 }
 0x65c   :  { %v1758_v16 = vpop.xlane.xlu1 %1757 }
 0x65d   :  { %v1780_v45 = vadd.f32 %v1758_v16, %v1748_v9 }
 0x65f   :  { %1789 = vst.msk [vmem:[#allocation3] sm:$0xff] %vm1788_vm11, %v1780_v45  ;;  %v5160_v24 = vpop.permute.xlu0 %1832 }
 0x660   :  { %v1767_v44 = vpop.xlane.xlu1 %1766 }
 0x661   :  { %v1783_v35 = vadd.f32 %v1767_v44, %v1751_v61  ;;  %v6310_v61 = vld [vmem:[#allocation17_spill] sm:$0xff] }
 0x662   :  { %v3753_v25 = vpop.eup %3752 }
 0x663   :  { %1792 = vst.msk [vmem:[#allocation3 + $0x18] sm:$0xff] %vm1788_vm11, %v1783_v35  ;;  %v5164_v19 = vpop.permute.xlu0 %1842  ;;  %v5168_v55 = vmul.f32 %v3753_v25, %v6296_v52  ;;  %v371_v52 = vld [vmem:[#allocation4 + $0x30] sm:$0xff]  ;;  %v6311_v25 = vld [vmem:[#allocation19_spill] sm:$0xff] }
 0x664   :  { %v1773_v4 = vpop.xlane.xlu1 %1772 }
 0x665   :  { %v1785_v23 = vadd.f32 %v1773_v4, %v1753_v34  ;;  %v1777_v36 = vsel %vm179_vm1, %v5168_v55, 0.0 }
 0x666   :  { %1778 = vadd.xlane.f32.xlu1 %v1777_v36 }
 0x667   :  { %1794 = vst.msk [vmem:[#allocation3 + $0x28] sm:$0xff] %vm1788_vm11, %v1785_v23 }
 0x668   :  { %v381_v41 = vpop.permute.xlu0 %380 }
 0x669   :  { %v414_v0 = vmul.f32 %v381_v41, %v366_v56 }
 0x66b   :  { %v527_v3 = vadd.f32 %v4657_v21, %v414_v0 }
 0x66c   :  { %v396_v40 = vpop.permute.xlu0 %395 }
 0x66d   :  { %536 = vst.msk [vmem:[#allocation4 + $0x8] sm:$0xff] %vm534_vm0, %v527_v3  ;;  %v417_v1 = vmul.f32 %v396_v40, %v369_v8  ;;  %v1856_v8 = vpack.c.bf16 %v5168_v55, %v5039_v28  ;;  %v2026_v55 = vld [vmem:[#allocation3 + $0x18] sm:$0xff] }
 0x66f   :  { %v530_v50 = vadd.f32 %v4670_v38, %v417_v1 }
 0x670   :  { %v406_v9 = vpop.permute.xlu0 %405 }
 0x671   :  { %539 = vst.msk [vmem:[#allocation4 + $0x20] sm:$0xff] %vm534_vm0, %v530_v50  ;;  %v419_v16 = vmul.f32 %v406_v9, %v371_v52  ;;  %v2023_v50 = vld [vmem:[#allocation3] sm:$0xff]  ;;  %v2029_v9 = vld [vmem:[#allocation3 + $0x30] sm:$0xff] }
 0x672   :  { %3754 = vrcp.f32 %v2023_v50 }
 0x673   :  { %v532_v45 = vadd.f32 %v4667_v12, %v419_v16  ;;  %v6312_v12 = vld [vmem:[#allocation20_spill] sm:$0xff]  ;;  %3756 = vrcp.f32 %v2024_v58  ;;  %v2028_v16 = vld [vmem:[#allocation3 + $0x28] sm:$0xff] }
 0x674   :  { %v830_v48 = vld [vmem:[#allocation4 + $0x8] sm:$0xff]  ;;  %v1860_v0 = vpop.permute.xlu0 %1859  ;;  %3758 = vrcp.f32 %v2025_v5 }
 0x675   :  { %v878_v44 = vmul.f32 %v6310_v61, %v830_v48  ;;  %541 = vst.msk [vmem:[#allocation4 + $0x30] sm:$0xff] %vm534_vm0, %v532_v45  ;;  %3760 = vrcp.f32 %v2027_v57  ;;  %vm3369_vm0 = vcmask 15360  }
 0x676   :  { %3762 = vrcp.f32 %v2026_v55 }
 0x677   :  { %v1011_v21 = vadd.f32 %v5091_v26, %v878_v44  ;;  %1812 = vperm.xlu1 %3613, %v5123_v49   ;;  %3764 = vrcp.f32 %v2029_v9 }
 0x678   :  { %v833_v35 = vld [vmem:[#allocation4 + $0x20] sm:$0xff]  ;;  %3766 = vrcp.f32 %v2028_v16 }
 0x679   :  { %1020 = vst.msk [vmem:[#allocation4 + $0x8] sm:$0xff] %vm1018_vm13, %v1011_v21  ;;  %v881_v38 = vmul.f32 %v6311_v25, %v833_v35 }
 0x67b   :  { %v1014_v30 = vadd.f32 %v5132_v63, %v881_v38  ;;  %1817 = vperm.xlu1 %3613, %v5130_v7  }
 0x67c   :  { %v835_v34 = vld [vmem:[#allocation4 + $0x30] sm:$0xff]  ;;  %v5227_v45 = vpop.eup %3754 }
 0x67d   :  { %1023 = vst.msk [vmem:[#allocation4 + $0x20] sm:$0xff] %vm1018_vm13, %v1014_v30  ;;  %v883_v4 = vmul.f32 %v6312_v12, %v835_v34  ;;  %v5230_v48 = vpop.eup %3756  ;;  %v2006_v30 = vld [vmem:[%s6197_s6] sm:$0xff]  ;;  %v2008_v12 = vld [vmem:[%s6197_s6 + $0x10] sm:$0xff] }
 0x67e   :  { %v5233_v44 = vpop.eup %3758 }
 0x67f   :  { %v1016_v23 = vadd.f32 %v5127_v42, %v883_v4  ;;  %1827 = vperm.xlu1 %3613, %v5136_v33   ;;  %v5236_v21 = vpop.eup %3760  ;;  %v2007_v4 = vld [vmem:[%s6197_s6 + $0x8] sm:$0xff] }
 0x680   :  { %v1314_v26 = vld [vmem:[#allocation4 + $0x8] sm:$0xff]  ;;  %v5239_v35 = vpop.eup %3762 }
 0x681   :  { %v1362_v49 = vmul.f32 %v4888_v47, %v1314_v26  ;;  %1025 = vst.msk [vmem:[#allocation4 + $0x30] sm:$0xff] %vm1018_vm13, %v1016_v23  ;;  %v5242_v25 = vpop.eup %3764  ;;  %v2010_v23 = vld [vmem:[%s6197_s6 + $0x20] sm:$0xff]  ;;  %v2009_v26 = vld [vmem:[%s6197_s6 + $0x18] sm:$0xff] }
 0x682   :  { %v5245_v38 = vpop.eup %3766 }
 0x683   :  { %v1495_v36 = vadd.f32 %v5146_v62, %v1362_v49  ;;  %1837 = vperm.xlu1 %3613, %v5142_v11   ;;  %v2012_v49 = vld [vmem:[%s6197_s6 + $0x30] sm:$0xff] }
 0x684   :  { %v1317_v63 = vld [vmem:[#allocation4 + $0x20] sm:$0xff] }
 0x685   :  { %1504 = vst.msk [vmem:[#allocation4 + $0x8] sm:$0xff] %vm1502_vm14, %v1495_v36  ;;  %v1365_v7 = vmul.f32 %v4892_v18, %v1317_v63  ;;  %v1747_v18 = vld [vmem:[#allocation3 + $0x38] sm:$0xff]  ;;  %v2011_v36 = vld [vmem:[%s6197_s6 + $0x28] sm:$0xff] }
 0x686   :  { %v2013_v63 = vld [vmem:[%s6197_s6 + $0x38] sm:$0xff] }
 0x687   :  { %v1498_v56 = vadd.f32 %v5125_v2, %v1365_v7  ;;  %1857 = vrot.lane.b32.xlu1 %v4835_v13, %s3889_s20  ;;  %v1755_v2 = vmul.f32 %v5084_v51, %v1747_v18  ;;  %v1864_v51 = vpop.permute.xlu0 %1863  ;;  %v6313_v7 = vmov 1   ;;  %v5307_v18 = vld [vmem:[%s6195_s4 + $0x38] sm:$0xff] }
 0x688   :  { %v1319_v42 = vld [vmem:[#allocation4 + $0x30] sm:$0xff]  ;;  %3615 = vset.pattern.permute.xlu1 %v6305_v27 }
 0x689   :  { %1507 = vst.msk [vmem:[#allocation4 + $0x20] sm:$0xff] %vm1502_vm14, %v1498_v56  ;;  %v1367_v47 = vmul.f32 %v4894_v17, %v1319_v42  ;;  %v5280_v56 = vld [vmem:[%s6195_s4 + $0x8] sm:$0xff]  ;;  %v5287_v42 = vld [vmem:[%s6195_s4 + $0x18] sm:$0xff] }
 0x68b   :  { %v1500_v33 = vadd.f32 %v5116_v20, %v1367_v47  ;;  %1861 = vrot.lane.b32.xlu1 %v4845_v37, %s3889_s20  ;;  %v6314_v47 = vld [vmem:[#allocation8_spill] sm:$0xff] }
 0x68d   :  { %1509 = vst.msk [vmem:[#allocation4 + $0x30] sm:$0xff] %vm1502_vm14, %v1500_v33  ;;  %v5301_v33 = vld [vmem:[%s6195_s4] sm:$0xff] }
 0x690   :  { %v1801_v50 = vld [vmem:[#allocation4 + $0x20] sm:$0xff] }
 0x6f3   :  { %v1779_v11 = vpop.xlane.xlu1 %1778 }
 0x6f4   :  { %v1787_v62 = vadd.f32 %v1779_v11, %v1755_v2  ;;  %v5313_v2 = vld [vmem:[%s6195_s4 + $0x10] sm:$0xff]  ;;  %v5320_v11 = vld [vmem:[%s6195_s4 + $0x20] sm:$0xff] }
 0x6f6   :  { %1796 = vst.msk [vmem:[#allocation3 + $0x38] sm:$0xff] %vm1788_vm11, %v1787_v62  ;;  %v5326_v62 = vld [vmem:[%s6195_s4 + $0x30] sm:$0xff] }
 0x6f7   :  { %v5208_v13 = vpop.permute.xlu1 %1812 }
 0x6fb   :  { %v5210_v27 = vpop.permute.xlu1 %1817 }
 0x6fd   :  { %v2030_v61 = vld [vmem:[#allocation3 + $0x38] sm:$0xff] }
 0x6fe   :  { %3768 = vrcp.f32 %v2030_v61 }
 0x6ff   :  { %v5212_v41 = vpop.permute.xlu1 %1827 }
 0x700   :  { %v1849_v58 = vmul.f32 %v5212_v41, %v1801_v50 }
 0x703   :  { %v5214_v17 = vpop.permute.xlu1 %1837 }
 0x707   :  { %v1858_v20 = vpop.permute.xlu1 %1857 }
 0x708   :  { %3556 = vmatprep.subr.bf16.mxu1 %v1858_v20  ;;  %v5251_v34 = vpop.eup %3768 }
 0x709   :  { %3557 = vmatpush3.bf16.msra.mxu1 %v1858_v20  ;;  %v1798_v20 = vld [vmem:[#allocation4 + $0x8] sm:$0xff] }
 0x70a   :  { %3558 = vmatprep.subr.bf16.mxu1 %v1860_v0 }
 0x70b   :  { %v1862_v37 = vpop.permute.xlu1 %1861 }
 0x70d   :  { %3559 = vmatpush3.bf16.msra.mxu1 %v1860_v0 }
 0x70e   :  { %3560 = vmatprep.subr.bf16.mxu1 %v1862_v37 }
 0x711   :  { %3561 = vmatpush3.bf16.msra.mxu1 %v1862_v37  ;;  %v1846_v37 = vmul.f32 %v5208_v13, %v1798_v20 }
 0x712   :  { %3562 = vmatprep.subr.bf16.mxu1 %v1864_v51 }
 0x715   :  { %3563 = vmatpush3.bf16.msra.mxu1 %v1864_v51  ;;  %v1799_v51 = vld [vmem:[#allocation4 + $0x10] sm:$0xff] }
 0x718   :  { %3565 = vmatmul.mubr.msk.bf16.vlgmr.msra.gmra.mrb[8].mxu1 %vm179_vm1, %v1854_v59 }
 0x719   :  { %3568 = vmatprep.mubr.msk.bf16.mxu1 %vm179_vm1, %v1855_v53 }
 0x720   :  { %3569 = vmatmul.mubr.msk.bf16.gmra.mrb[12].mxu1 %vm179_vm1, %v1856_v8 }
 0x7eb   :  { %v3566_v3 = vpop.f32.mrb[8].mxu1 }
 0x7ec   :  { %v1915_v40 = vpop.f32.mrb[9].mxu1 }
 0x7ed   :  { %1954 = vrot.lane.b32.xlu1 %v1915_v40, %s3890_s21  ;;  %v3567_v1 = vpop.f32.mrb[10].mxu1 }
 0x7ee   :  { %v1918_v52 = vpop.f32.mrb[11].mxu1 }
 0x7ef   :  { %1956 = vrot.lane.b32.xlu0 %v1918_v52, %s3890_s21 }
 0x7f1   :  { %1958 = vrot.lane.b32.xlu1 %v3566_v3, %s3890_s21  ;;  %v1847_v3 = vmul.f32 %v5210_v27, %v1799_v51 }
 0x7f3   :  { %1960 = vrot.lane.b32.xlu0 %v3567_v1, %s3890_s21  ;;  %v3570_v46 = vpop.f32.mrb[12].mxu1 }
 0x7f4   :  { %v1931_v59 = vpop.f32.mrb[13].mxu1 }
 0x7f5   :  { %1962 = vrot.lane.b32.xlu1 %v1931_v59, %s3890_s21  ;;  %v3571_v28 = vpop.f32.mrb[14].mxu1  ;;  %v1803_v59 = vld [vmem:[#allocation4 + $0x30] sm:$0xff] }
 0x7f6   :  { %v1934_v53 = vpop.f32.mrb[15].mxu1  ;;  %v1851_v13 = vmul.f32 %v5214_v17, %v1803_v59 }
 0x7f7   :  { %1964 = vrot.lane.b32.xlu0 %v1934_v53, %s3890_s21 }
 0x7f9   :  { %1966 = vrot.lane.b32.xlu1 %v3570_v46, %s3890_s21 }
 0x7fb   :  { %1968 = vrot.lane.b32.xlu0 %v3571_v28, %s3890_s21 }
 0x7fd   :  { %2049 = vperm.xlu1 %3615, %v5227_v45  }
 0x7ff   :  { %2054 = vperm.xlu0 %3614, %v5230_v48  }
 0x801   :  { %2059 = vperm.xlu1 %3615, %v5233_v44  }
 0x803   :  { %2069 = vperm.xlu0 %3614, %v5236_v21  }
 0x805   :  { %2064 = vperm.xlu1 %3615, %v5239_v35  }
 0x807   :  { %2079 = vperm.xlu0 %3614, %v5242_v25  }
 0x809   :  { %2074 = vperm.xlu1 %3615, %v5245_v38  }
 0x80b   :  { %2097 = vperm.xlu0 %3614, %v2006_v30  }
 0x80d   :  { %2084 = vperm.xlu1 %3615, %v5251_v34  }
 0x80f   :  { %2107 = vperm.xlu0 %3614, %v2008_v12  }
 0x811   :  { %2102 = vperm.xlu1 %3615, %v2007_v4  }
 0x813   :  { %2117 = vperm.xlu0 %3614, %v2010_v23  }
 0x815   :  { %2112 = vperm.xlu1 %3615, %v2009_v26  }
 0x817   :  { %2127 = vperm.xlu0 %3614, %v2012_v49  }
 0x819   :  { %2122 = vperm.xlu1 %3615, %v2011_v36  }
 0x81b   :  { %3616 = vset.pattern.permute.xlu0 %v6313_v7 }
 0x81c   :  { %839 = vperm.xlu0 %3616, %v4721_v39   ;;  %v5295_v39 = vld [vmem:[%s6195_s4 + $0x28] sm:$0xff] }
 0x81d   :  { %2132 = vperm.xlu1 %3615, %v2013_v63  }
 0x820   :  { %854 = vperm.xlu0 %3616, %v4733_v43   ;;  %v6315_v43 = vld [vmem:[#allocation27_spill] sm:$0xff] }
 0x821   :  { %2161 = vrot.lane.b32.xlu1 %v5280_v56, %s3891_s3 }
 0x822   :  { %3617 = vset.pattern.permute.xlu1 %v6313_v7 }
 0x824   :  { %864 = vperm.xlu0 %3616, %v6314_v47  }
 0x825   :  { %2165 = vrot.lane.b32.xlu1 %v5287_v42, %s3891_s3 }
 0x828   :  { %874 = vperm.xlu0 %3616, %v6315_v43   ;;  %v829_v43 = vld [vmem:[#allocation4] sm:$0xff] }
 0x829   :  { %2169 = vrot.lane.b32.xlu1 %v5295_v39, %s3891_s3 }
 0x82c   :  { %2159 = vrot.lane.b32.xlu0 %v5301_v33, %s3891_s3 }
 0x82d   :  { %2173 = vrot.lane.b32.xlu1 %v5307_v18, %s3891_s3 }
 0x830   :  { %2163 = vrot.lane.b32.xlu0 %v5313_v2, %s3891_s3 }
 0x834   :  { %2167 = vrot.lane.b32.xlu0 %v5320_v11, %s3891_s3 }
 0x838   :  { %2171 = vrot.lane.b32.xlu0 %v5326_v62, %s3891_s3 }
 0x85f   :  { %v5329_v0 = vpop.permute.xlu1 %1954 }
 0x861   :  { %v1957_v8 = vpop.permute.xlu0 %1956 }
 0x862   :  { %v1979_v40 = vadd.f32 %v1957_v8, %v1846_v37 }
 0x863   :  { %v1959_v1 = vpop.permute.xlu1 %1958 }
 0x864   :  { %1988 = vst.msk [vmem:[#allocation4 + $0x8] sm:$0xff] %vm1986_vm15, %v1979_v40  ;;  %v1980_v52 = vadd.f32 %v1959_v1, %v1847_v3  ;;  %v832_v1 = vld [vmem:[#allocation4 + $0x18] sm:$0xff] }
 0x865   :  { %v5338_v27 = vpop.permute.xlu0 %1960 }
 0x866   :  { %1989 = vst.msk [vmem:[#allocation4 + $0x10] sm:$0xff] %vm1986_vm15, %v1980_v52 }
 0x867   :  { %v1963_v5 = vpop.permute.xlu1 %1962 }
 0x868   :  { %v1982_v46 = vadd.f32 %v1963_v5, %v1849_v58 }
 0x869   :  { %v5341_v53 = vpop.permute.xlu0 %1964 }
 0x86a   :  { %1991 = vst.msk [vmem:[#allocation4 + $0x20] sm:$0xff] %vm1986_vm15, %v1982_v46 }
 0x86b   :  { %v1967_v57 = vpop.permute.xlu1 %1966  ;;  %v5373_v37 = vld [vmem:[#allocation4 + $0x8] sm:$0xff] }
 0x86c   :  { %v1984_v28 = vadd.f32 %v1967_v57, %v1851_v13  ;;  %v834_v13 = vld [vmem:[#allocation4 + $0x28] sm:$0xff] }
 0x86d   :  { %v5343_v55 = vpop.permute.xlu0 %1968 }
 0x86e   :  { %1993 = vst.msk [vmem:[#allocation4 + $0x30] sm:$0xff] %vm1986_vm15, %v1984_v28 }
 0x87c   :  { %v5345_v41 = vpop.permute.xlu1 %2049 }
 0x87e   :  { %v2055_v9 = vpop.permute.xlu0 %2054 }
 0x87f   :  { %v2088_v3 = vmul.f32 %v2055_v9, %v5373_v37 }
 0x880   :  { %v5347_v16 = vpop.permute.xlu1 %2059 }
 0x882   :  { %v5349_v61 = vpop.permute.xlu0 %2069 }
 0x884   :  { %v5351_v17 = vpop.permute.xlu1 %2064 }
 0x886   :  { %v5353_v30 = vpop.permute.xlu0 %2079 }
 0x888   :  { %v5355_v12 = vpop.permute.xlu1 %2074 }
 0x88a   :  { %v5357_v4 = vpop.permute.xlu0 %2097 }
 0x88c   :  { %v5359_v23 = vpop.permute.xlu1 %2084 }
 0x88e   :  { %v5361_v26 = vpop.permute.xlu0 %2107 }
 0x890   :  { %v5363_v49 = vpop.permute.xlu1 %2102 }
 0x891   :  { %v5380_v50 = vmul.f32 %v5363_v49, %v2088_v3 }
 0x892   :  { %v5365_v36 = vpop.permute.xlu0 %2117 }
 0x893   :  { %6316 = vst [vmem:[#allocation13_spill] sm:$0xff] %v5380_v50 }
 0x894   :  { %v5367_v63 = vpop.permute.xlu1 %2112 }
 0x896   :  { %v5369_v7 = vpop.permute.xlu0 %2127 }
 0x898   :  { %v5371_v47 = vpop.permute.xlu1 %2122 }
 0x89b   :  { %v840_v20 = vpop.permute.xlu0 %839 }
 0x89c   :  { %v877_v51 = vmul.f32 %v840_v20, %v829_v43  ;;  %v5375_v8 = vpop.permute.xlu1 %2132  ;;  %v836_v43 = vld [vmem:[#allocation4 + $0x38] sm:$0xff] }
 0x89e   :  { %v1010_v40 = vadd.f32 %v5118_v14, %v877_v51  ;;  %v6317_v51 = vld [vmem:[#allocation11_spill] sm:$0xff] }
 0x89f   :  { %v855_v52 = vpop.permute.xlu0 %854 }
 0x8a0   :  { %1019 = vst.msk [vmem:[#allocation4] sm:$0xff] %vm1018_vm13, %v1010_v40  ;;  %v880_v58 = vmul.f32 %v855_v52, %v832_v1  ;;  %v2162_v5 = vpop.permute.xlu1 %2161 }
 0x8a1   :  { %v2184_v46 = vmul.f32 %v2162_v5, %v5380_v50 }
 0x8a2   :  { %v1013_v59 = vadd.f32 %v5087_v6, %v880_v58  ;;  %v6318_v58 = vld [vmem:[#allocation10_spill] sm:$0xff] }
 0x8a3   :  { %v865_v57 = vpop.permute.xlu0 %864  ;;  %2201 = vrot.lane.b32.xlu1 %v2184_v46, %s3892_s28 }
 0x8a4   :  { %1022 = vst.msk [vmem:[#allocation4 + $0x18] sm:$0xff] %vm1018_vm13, %v1013_v59  ;;  %v882_v14 = vmul.f32 %v865_v57, %v834_v13  ;;  %v6319_v59 = vld [vmem:[#allocation9_spill] sm:$0xff] }
 0x8a6   :  { %v1015_v28 = vadd.f32 %v5103_v15, %v882_v14 }
 0x8a7   :  { %v1313_v9 = vld [vmem:[#allocation4] sm:$0xff]  ;;  %v875_v20 = vpop.permute.xlu0 %874 }
 0x8a8   :  { %v1361_v3 = vmul.f32 %v6317_v51, %v1313_v9  ;;  %1024 = vst.msk [vmem:[#allocation4 + $0x28] sm:$0xff] %vm1018_vm13, %v1015_v28  ;;  %v884_v40 = vmul.f32 %v875_v20, %v836_v43  ;;  %v6320_v28 = vld [vmem:[#allocation12_spill] sm:$0xff] }
 0x8aa   :  { %v1494_v6 = vadd.f32 %v5108_v60, %v1361_v3  ;;  %v1017_v1 = vadd.f32 %v5094_v54, %v884_v40 }
 0x8ab   :  { %v1316_v52 = vld [vmem:[#allocation4 + $0x18] sm:$0xff]  ;;  %v2160_v40 = vpop.permute.xlu0 %2159 }
 0x8ac   :  { %1503 = vst.msk [vmem:[#allocation4] sm:$0xff] %vm1502_vm14, %v1494_v6  ;;  %v1364_v5 = vmul.f32 %v6318_v58, %v1316_v52 }
 0x8ad   :  { %1026 = vst.msk [vmem:[#allocation4 + $0x38] sm:$0xff] %vm1018_vm13, %v1017_v1 }
 0x8ae   :  { %v1497_v15 = vadd.f32 %v5138_v31, %v1364_v5 }
 0x8af   :  { %v1318_v46 = vld [vmem:[#allocation4 + $0x28] sm:$0xff]  ;;  %v2164_v52 = vpop.permute.xlu0 %2163 }
 0x8b0   :  { %1506 = vst.msk [vmem:[#allocation4 + $0x18] sm:$0xff] %vm1502_vm14, %v1497_v15  ;;  %v1366_v13 = vmul.f32 %v6319_v59, %v1318_v46  ;;  %v5438_v59 = vld [vmem:[#allocation4 + $0x20] sm:$0xff] }
 0x8b2   :  { %v1499_v57 = vadd.f32 %v5154_v10, %v1366_v13 }
 0x8b3   :  { %v1797_v14 = vld [vmem:[#allocation4] sm:$0xff]  ;;  %v2168_v13 = vpop.permute.xlu0 %2167 }
 0x8b4   :  { %v1320_v60 = vld [vmem:[#allocation4 + $0x38] sm:$0xff]  ;;  %v1845_v54 = vmul.f32 %v5152_v29, %v1797_v14  ;;  %1508 = vst.msk [vmem:[#allocation4 + $0x28] sm:$0xff] %vm1502_vm14, %v1499_v57  ;;  %v2091_v14 = vmul.f32 %v5349_v61, %v5438_v59 }
 0x8b5   :  { %v1368_v9 = vmul.f32 %v6320_v28, %v1320_v60 }
 0x8b6   :  { %v1978_v43 = vadd.f32 %v5329_v0, %v1845_v54  ;;  %v5449_v28 = vmul.f32 %v5365_v36, %v2091_v14 }
 0x8b7   :  { %v1501_v20 = vadd.f32 %v5149_v32, %v1368_v9  ;;  %v1800_v31 = vld [vmem:[#allocation4 + $0x18] sm:$0xff] }
 0x8b8   :  { %1987 = vst.msk [vmem:[#allocation4] sm:$0xff] %vm1986_vm15, %v1978_v43  ;;  %v1848_v51 = vmul.f32 %v5156_v22, %v1800_v31  ;;  %6324 = vst [vmem:[#allocation22_spill] sm:$0xff] %v5449_v28  ;;  %v5456_v43 = vld [vmem:[#allocation4 + $0x30] sm:$0xff]  ;;  %v2187_v31 = vmul.f32 %v2168_v13, %v5449_v28 }
 0x8b9   :  { %1510 = vst.msk [vmem:[#allocation4 + $0x38] sm:$0xff] %vm1502_vm14, %v1501_v20  ;;  %v2093_v20 = vmul.f32 %v5353_v30, %v5456_v43 }
 0x8ba   :  { %v1981_v10 = vadd.f32 %v5338_v27, %v1848_v51  ;;  %v2166_v27 = vpop.permute.xlu1 %2165 }
 0x8bb   :  { %v1802_v3 = vld [vmem:[#allocation4 + $0x28] sm:$0xff] }
 0x8bc   :  { %1990 = vst.msk [vmem:[#allocation4 + $0x18] sm:$0xff] %vm1986_vm15, %v1981_v10  ;;  %v1850_v29 = vmul.f32 %v5160_v24, %v1802_v3  ;;  %v5421_v24 = vld [vmem:[#allocation4 + $0x10] sm:$0xff]  ;;  %v2172_v10 = vpop.permute.xlu0 %2171 }
 0x8bd   :  { %v2089_v15 = vmul.f32 %v5347_v16, %v5421_v24 }
 0x8be   :  { %v1983_v6 = vadd.f32 %v5341_v53, %v1850_v29  ;;  %v2170_v16 = vpop.permute.xlu1 %2169 }
 0x8bf   :  { %v5411_v1 = vld [vmem:[#allocation4] sm:$0xff]  ;;  %v5432_v46 = vmul.f32 %v5361_v26, %v2089_v15 }
 0x8c0   :  { %v1804_v0 = vld [vmem:[#allocation4 + $0x38] sm:$0xff]  ;;  %1992 = vst.msk [vmem:[#allocation4 + $0x28] sm:$0xff] %vm1986_vm15, %v1983_v6  ;;  %v2087_v22 = vmul.f32 %v5345_v41, %v5411_v1 }
 0x8c1   :  { %v1852_v32 = vmul.f32 %v5164_v19, %v1804_v0  ;;  %6322 = vst [vmem:[#allocation15_spill] sm:$0xff] %v5432_v46  ;;  %v2185_v60 = vmul.f32 %v2164_v52, %v5432_v46 }
 0x8c2   :  { %v5419_v5 = vmul.f32 %v5357_v4, %v2087_v22  ;;  %v2174_v3 = vpop.permute.xlu1 %2173  ;;  %v2252_v22 = vmax.f32 %v5449_v28, 1e-05 }
 0x8c3   :  { %v1985_v58 = vadd.f32 %v5343_v55, %v1852_v32  ;;  %v5423_v53 = vld [vmem:[#allocation4 + $0x18] sm:$0xff]  ;;  %v2249_v32 = vmax.f32 %v5380_v50, 1e-05 }
 0x8c4   :  { %6321 = vst [vmem:[#allocation14_spill] sm:$0xff] %v5419_v5  ;;  %v2183_v19 = vmul.f32 %v2160_v40, %v5419_v5  ;;  %v2090_v41 = vmul.f32 %v5351_v17, %v5423_v53  ;;  %v5467_v40 = vmul.f32 %v5369_v7, %v2093_v20  ;;  %v2248_v30 = vmax.f32 %v5419_v5, 1e-05 }
 0x8c5   :  { %1994 = vst.msk [vmem:[#allocation4 + $0x38] sm:$0xff] %vm1986_vm15, %v1985_v58 }
 0x8c6   :  { %2199 = vrot.lane.b32.xlu0 %v2183_v19, %s3892_s28  ;;  %v5436_v55 = vmul.f32 %v5367_v63, %v2090_v41  ;;  %6326 = vst [vmem:[#allocation24_spill] sm:$0xff] %v5467_v40  ;;  %v2189_v6 = vmul.f32 %v2172_v10, %v5467_v40  ;;  %3770 = vlog2.f32 %v2248_v30  ;;  %v2254_v52 = vmax.f32 %v5467_v40, 1e-05 }
 0x8c7   :  { %v5440_v57 = vld [vmem:[#allocation4 + $0x28] sm:$0xff] }
 0x8c8   :  { %6323 = vst [vmem:[#allocation21_spill] sm:$0xff] %v5436_v55  ;;  %v2186_v17 = vmul.f32 %v2166_v27, %v5436_v55  ;;  %v2092_v54 = vmul.f32 %v5355_v12, %v5440_v57  ;;  %v2251_v27 = vmax.f32 %v5436_v55, 1e-05 }
 0x8ca   :  { %2203 = vrot.lane.b32.xlu0 %v2185_v60, %s3892_s28  ;;  %2205 = vrot.lane.b32.xlu1 %v2186_v17, %s3892_s28  ;;  %v5454_v9 = vmul.f32 %v5371_v47, %v2092_v54 }
 0x8cc   :  { %6325 = vst [vmem:[#allocation23_spill] sm:$0xff] %v5454_v9  ;;  %v5458_v61 = vld [vmem:[#allocation4 + $0x38] sm:$0xff]  ;;  %v2188_v12 = vmul.f32 %v2170_v16, %v5454_v9  ;;  %v2253_v15 = vmax.f32 %v5454_v9, 1e-05 }
 0x8cd   :  { %v2094_v51 = vmul.f32 %v5359_v23, %v5458_v61  ;;  %v2250_v23 = vmax.f32 %v5432_v46, 1e-05 }
 0x8ce   :  { %2207 = vrot.lane.b32.xlu0 %v2187_v31, %s3892_s28  ;;  %2209 = vrot.lane.b32.xlu1 %v2188_v12, %s3892_s28 }
 0x8cf   :  { %v5472_v29 = vmul.f32 %v5375_v8, %v2094_v51  ;;  %3772 = vlog2.f32 %v2250_v23 }
 0x8d0   :  { %3774 = vlog2.f32 %v2249_v32  ;;  %v3771_v58 = vpop.eup %3770 }
 0x8d1   :  { %6327 = vst [vmem:[#allocation25_spill] sm:$0xff] %v5472_v29  ;;  %v2190_v0 = vmul.f32 %v2174_v3, %v5472_v29  ;;  %3776 = vlog2.f32 %v2252_v22  ;;  %v2303_v19 = vmul.f32 0.6931472, %v3771_v58  ;;  %v2255_v13 = vmax.f32 %v5472_v29, 1e-05 }
 0x8d2   :  { %2211 = vrot.lane.b32.xlu0 %v2189_v6, %s3892_s28  ;;  %3778 = vlog2.f32 %v2254_v52 }
 0x8d3   :  { %2213 = vrot.lane.b32.xlu1 %v2190_v0, %s3892_s28  ;;  %3780 = vlog2.f32 %v2251_v27 }
 0x8d4   :  { %3782 = vlog2.f32 %v2253_v15 }
 0x8d5   :  { %3784 = vlog2.f32 %v2255_v13 }
 0x8d6   :  { %2272 = vrot.lane.b32.xlu0 %v2249_v32, %s3892_s28 }
 0x8d7   :  { %2270 = vrot.lane.b32.xlu1 %v2248_v30, %s3892_s28 }
 0x8d9   :  { %v3773_v41 = vpop.eup %3772 }
 0x8da   :  { %2278 = vrot.lane.b32.xlu0 %v2252_v22, %s3892_s28  ;;  %v3775_v16 = vpop.eup %3774  ;;  %v2307_v14 = vmul.f32 0.6931472, %v3773_v41 }
 0x8db   :  { %2274 = vrot.lane.b32.xlu1 %v2250_v23, %s3892_s28  ;;  %v3777_v60 = vpop.eup %3776  ;;  %v2305_v20 = vmul.f32 0.6931472, %v3775_v16 }
 0x8dc   :  { %v3779_v17 = vpop.eup %3778  ;;  %v2311_v54 = vmul.f32 0.6931472, %v3777_v60 }
 0x8dd   :  { %v3781_v31 = vpop.eup %3780  ;;  %v2315_v12 = vmul.f32 0.6931472, %v3779_v17 }
 0x8de   :  { %2282 = vrot.lane.b32.xlu0 %v2254_v52, %s3892_s28  ;;  %v2309_v51 = vmul.f32 0.6931472, %v3781_v31  ;;  %v3783_v10 = vpop.eup %3782 }
 0x8df   :  { %2276 = vrot.lane.b32.xlu1 %v2251_v27, %s3892_s28  ;;  %v2313_v3 = vmul.f32 0.6931472, %v3783_v10  ;;  %v3785_v30 = vpop.eup %3784  ;;  %v5513_v10 = vld [vmem:[%s6196_s5] ss:$0 sm:$0xff] }
 0x8e0   :  { %v2317_v6 = vmul.f32 0.6931472, %v3785_v30 }
 0x8e2   :  { %2326 = vrot.lane.b32.xlu0 %v2303_v19, %s3892_s28 }
 0x8e3   :  { %2280 = vrot.lane.b32.xlu1 %v2253_v15, %s3892_s28 }
 0x8e6   :  { %2330 = vrot.lane.b32.xlu0 %v2307_v14, %s3892_s28 }
 0x8e7   :  { %2284 = vrot.lane.b32.xlu1 %v2255_v13, %s3892_s28 }
 0x8ea   :  { %2334 = vrot.lane.b32.xlu0 %v2311_v54, %s3892_s28 }
 0x8eb   :  { %2328 = vrot.lane.b32.xlu1 %v2305_v20, %s3892_s28 }
 0x8ee   :  { %2338 = vrot.lane.b32.xlu0 %v2315_v12, %s3892_s28 }
 0x8ef   :  { %2332 = vrot.lane.b32.xlu1 %v2309_v51, %s3892_s28 }
 0x8f3   :  { %2336 = vrot.lane.b32.xlu1 %v2313_v3, %s3892_s28 }
 0x8f7   :  { %2340 = vrot.lane.b32.xlu1 %v2317_v6, %s3892_s28  ;;  %s3901_s28 = smov 116  }
 0x915   :  { %v2202_v0 = vpop.permute.xlu1 %2201 }
 0x916   :  { %v2227_v23 = vsel %vm34_vm7, %v2202_v0, 0.0 }
 0x91b   :  { %2228 = vadd.xlane.f32.xlu1 %v2227_v23 }
 0x938   :  { %v2200_v32 = vpop.permute.xlu0 %2199 }
 0x939   :  { %v2224_v19 = vsel %vm34_vm7, %v2200_v32, 0.0 }
 0x93c   :  { %v2204_v22 = vpop.permute.xlu0 %2203  ;;  %v2206_v52 = vpop.permute.xlu1 %2205 }
 0x93d   :  { %v2230_v27 = vsel %vm34_vm7, %v2204_v22, 0.0  ;;  %v2233_v14 = vsel %vm34_vm7, %v2206_v52, 0.0 }
 0x93e   :  { %2231 = vadd.xlane.f32.xlu0 %v2230_v27 }
 0x940   :  { %v2208_v58 = vpop.permute.xlu0 %2207  ;;  %v2210_v15 = vpop.permute.xlu1 %2209 }
 0x941   :  { %v2236_v54 = vsel %vm34_vm7, %v2208_v58, 0.0  ;;  %v2239_v51 = vsel %vm34_vm7, %v2210_v15, 0.0 }
 0x942   :  { %2225 = vadd.xlane.f32.xlu0 %v2224_v19 }
 0x944   :  { %v2212_v41 = vpop.permute.xlu0 %2211 }
 0x945   :  { %v2214_v13 = vpop.permute.xlu1 %2213  ;;  %v2242_v16 = vsel %vm34_vm7, %v2212_v41, 0.0 }
 0x946   :  { %2243 = vadd.xlane.f32.xlu1 %v2242_v16  ;;  %2234 = vadd.xlane.f32.xlu0 %v2233_v14  ;;  %v2245_v20 = vsel %vm34_vm7, %v2214_v13, 0.0 }
 0x948   :  { %v2273_v60 = vpop.permute.xlu0 %2272 }
 0x949   :  { %v2271_v17 = vpop.permute.xlu1 %2270  ;;  %v2295_v19 = vmul.f32 %v5513_v10, %v2273_v60 }
 0x94a   :  { %2237 = vadd.xlane.f32.xlu1 %v2236_v54  ;;  %2246 = vadd.xlane.f32.xlu0 %v2245_v20  ;;  %v2294_v6 = vmul.f32 %v5513_v10, %v2271_v17 }
 0x94c   :  { %v2279_v31 = vpop.permute.xlu0 %2278 }
 0x94d   :  { %v2275_v12 = vpop.permute.xlu1 %2274  ;;  %v2298_v14 = vmul.f32 %v5513_v10, %v2279_v31 }
 0x94e   :  { %2240 = vadd.xlane.f32.xlu0 %v2239_v51  ;;  %v2296_v22 = vmul.f32 %v5513_v10, %v2275_v12 }
 0x950   :  { %v2283_v3 = vpop.permute.xlu0 %2282 }
 0x951   :  { %v2277_v30 = vpop.permute.xlu1 %2276 }
 0x952   :  { %v2297_v54 = vmul.f32 %v5513_v10, %v2277_v30 }
 0x954   :  { %v2327_v0 = vpop.permute.xlu0 %2326 }
 0x955   :  { %v2281_v23 = vpop.permute.xlu1 %2280  ;;  %v2350_v32 = vmul.f32 %v2327_v0, %v2294_v6  ;;  %v2300_v0 = vmul.f32 %v5513_v10, %v2283_v3 }
 0x956   :  { %v2299_v60 = vmul.f32 %v5513_v10, %v2281_v23 }
 0x957   :  { %v2358_v52 = vsel %vm34_vm7, %v2350_v32, 0.0 }
 0x958   :  { %v2331_v27 = vpop.permute.xlu0 %2330  ;;  %2359 = vadd.xlane.f32.xlu0 %v2358_v52 }
 0x959   :  { %v2285_v58 = vpop.permute.xlu1 %2284  ;;  %v2352_v15 = vmul.f32 %v2331_v27, %v2296_v22 }
 0x95b   :  { %v2364_v41 = vsel %vm34_vm7, %v2352_v15, 0.0  ;;  %v2301_v15 = vmul.f32 %v5513_v10, %v2285_v58  ;;  %v6328_v58 = vmov 2  }
 0x95c   :  { %v2335_v13 = vpop.permute.xlu0 %2334  ;;  %2365 = vadd.xlane.f32.xlu0 %v2364_v41 }
 0x95d   :  { %v2329_v16 = vpop.permute.xlu1 %2328  ;;  %v2354_v20 = vmul.f32 %v2335_v13, %v2298_v14 }
 0x95e   :  { %v2351_v17 = vmul.f32 %v2329_v16, %v2295_v19 }
 0x95f   :  { %v2370_v52 = vsel %vm34_vm7, %v2354_v20, 0.0 }
 0x960   :  { %v2361_v12 = vsel %vm34_vm7, %v2351_v17, 0.0  ;;  %v2339_v51 = vpop.permute.xlu0 %2338 }
 0x961   :  { %2362 = vadd.xlane.f32.xlu1 %v2361_v12  ;;  %v2333_v6 = vpop.permute.xlu1 %2332  ;;  %v2356_v22 = vmul.f32 %v2339_v51, %v2300_v0 }
 0x962   :  { %v2353_v32 = vmul.f32 %v2333_v6, %v2297_v54 }
 0x963   :  { %v2376_v19 = vsel %vm34_vm7, %v2356_v22, 0.0 }
 0x964   :  { %v2367_v27 = vsel %vm34_vm7, %v2353_v32, 0.0 }
 0x965   :  { %2371 = vadd.xlane.f32.xlu1 %v2370_v52  ;;  %2368 = vadd.xlane.f32.xlu0 %v2367_v27  ;;  %v2337_v31 = vpop.permute.xlu1 %2336 }
 0x966   :  { %v2355_v30 = vmul.f32 %v2337_v31, %v2299_v60 }
 0x968   :  { %v2373_v41 = vsel %vm34_vm7, %v2355_v30, 0.0 }
 0x969   :  { %2377 = vadd.xlane.f32.xlu1 %v2376_v19  ;;  %2374 = vadd.xlane.f32.xlu0 %v2373_v41  ;;  %v2341_v3 = vpop.permute.xlu1 %2340 }
 0x96a   :  { %v2357_v13 = vmul.f32 %v2341_v3, %v2301_v15 }
 0x96c   :  { %v2379_v23 = vsel %vm34_vm7, %v2357_v13, 0.0 }
 0x96d   :  { %2380 = vadd.xlane.f32.xlu0 %v2379_v23 }
 0x97a   :  { %2391 = vperm.xlu1 %3617, %v5227_v45  }
 0x97e   :  { %2399 = vperm.xlu1 %3617, %v5233_v44  }
 0x982   :  { %2403 = vperm.xlu1 %3617, %v5239_v35  }
 0x983   :  { %2395 = vperm.xlu0 %3616, %v5230_v48  }
 0x986   :  { %2407 = vperm.xlu1 %3617, %v5236_v21  }
 0x987   :  { %2450 = vrot.lane.b32.xlu0 %v5313_v2, %s3893_s9 }
 0x988   :  { %3619 = vset.pattern.permute.xlu0 %v6328_v58 }
 0x98a   :  { %2411 = vperm.xlu1 %3617, %v5245_v38  }
 0x98b   :  { %2454 = vrot.lane.b32.xlu0 %v5320_v11, %s3893_s9 }
 0x98e   :  { %2415 = vperm.xlu1 %3617, %v5242_v25  }
 0x98f   :  { %2458 = vrot.lane.b32.xlu0 %v5326_v62, %s3893_s9 }
 0x992   :  { %2419 = vperm.xlu1 %3617, %v5251_v34  }
 0x996   :  { %2446 = vrot.lane.b32.xlu1 %v5301_v33, %s3893_s9 }
 0x997   :  { %3618 = vset.pattern.permute.xlu1 %v6328_v58 }
 0x99a   :  { %2448 = vrot.lane.b32.xlu1 %v5280_v56, %s3893_s9 }
 0x99e   :  { %2452 = vrot.lane.b32.xlu1 %v5287_v42, %s3893_s9 }
 0x9a2   :  { %2456 = vrot.lane.b32.xlu1 %v5295_v39, %s3893_s9 }
 0x9a6   :  { %2460 = vrot.lane.b32.xlu1 %v5307_v18, %s3893_s9 }
 0x9a8   :  { %v5551_v14 = vpop.xlane.xlu1 %2228 }
 0x9cb   :  { %v5549_v16 = vpop.xlane.xlu0 %2231 }
 0x9cf   :  { %v5553_v17 = vpop.xlane.xlu0 %2225 }
 0x9d3   :  { %v5555_v54 = vpop.xlane.xlu1 %2243  ;;  %v5557_v20 = vpop.xlane.xlu0 %2234 }
 0x9d4   :  { %6329 = vst [vmem:[#allocation26_spill] sm:$0xff] %v5555_v54  ;;  %6330 = vst [vmem:[#allocation16_spill] sm:$0xff] %v5557_v20 }
 0x9d7   :  { %v5559_v12 = vpop.xlane.xlu1 %2237  ;;  %v5561_v51 = vpop.xlane.xlu0 %2246 }
 0x9d8   :  { %6331 = vst [vmem:[#allocation18_spill] sm:$0xff] %v5559_v12  ;;  %6332 = vst [vmem:[#allocation17_spill] sm:$0xff] %v5561_v51 }
 0x9db   :  { %v5565_v0 = vpop.xlane.xlu0 %2240 }
 0x9dc   :  { %6333 = vst [vmem:[#allocation19_spill] sm:$0xff] %v5565_v0 }
 0x9e5   :  { %v5569_v60 = vpop.xlane.xlu0 %2359 }
 0x9e9   :  { %v5573_v27 = vpop.xlane.xlu0 %2365 }
 0x9ee   :  { %v5563_v6 = vpop.xlane.xlu1 %2362 }
 0x9f2   :  { %v5567_v32 = vpop.xlane.xlu1 %2371  ;;  %v5575_v30 = vpop.xlane.xlu0 %2368 }
 0x9f3   :  { %6334 = vst [vmem:[#allocation20_spill] sm:$0xff] %v5567_v32  ;;  %6336 = vst [vmem:[#allocation27_spill] sm:$0xff] %v5575_v30 }
 0x9f6   :  { %v5571_v22 = vpop.xlane.xlu1 %2377  ;;  %v5577_v19 = vpop.xlane.xlu0 %2374 }
 0x9f7   :  { %6335 = vst [vmem:[#allocation8_spill] sm:$0xff] %v5571_v22  ;;  %6337 = vst [vmem:[#allocation11_spill] sm:$0xff] %v5577_v19 }
 0x9fa   :  { %v2392_v52 = vpop.permute.xlu1 %2391  ;;  %v5579_v13 = vpop.xlane.xlu0 %2380 }
 0x9fb   :  { %6338 = vst [vmem:[#allocation10_spill] sm:$0xff] %v5579_v13  ;;  %v2422_v40 = vmul.f32 %v2392_v52, %v5411_v1 }
 0x9fd   :  { %v5583_v29 = vmul.f32 %v2422_v40, %v5357_v4 }
 0x9fe   :  { %v2400_v31 = vpop.permute.xlu1 %2399 }
 0x9ff   :  { %6339 = vst [vmem:[#allocation9_spill] sm:$0xff] %v5583_v29  ;;  %v2424_v46 = vmul.f32 %v2400_v31, %v5421_v24 }
 0xa01   :  { %v5590_v13 = vmul.f32 %v2424_v46, %v5361_v26 }
 0xa02   :  { %v2404_v15 = vpop.permute.xlu1 %2403  ;;  %v2396_v58 = vpop.permute.xlu0 %2395 }
 0xa03   :  { %v2423_v9 = vmul.f32 %v2396_v58, %v5373_v37  ;;  %6340 = vst [vmem:[#allocation12_spill] sm:$0xff] %v5590_v13  ;;  %v2425_v52 = vmul.f32 %v2404_v15, %v5423_v53 }
 0xa05   :  { %v5593_v19 = vmul.f32 %v2423_v9, %v5363_v49  ;;  %v5604_v51 = vmul.f32 %v2425_v52, %v5367_v63 }
 0xa06   :  { %v2408_v41 = vpop.permute.xlu1 %2407  ;;  %v2451_v55 = vpop.permute.xlu0 %2450 }
 0xa07   :  { %v2426_v50 = vmul.f32 %v2408_v41, %v5438_v59  ;;  %v2472_v31 = vmul.f32 %v2451_v55, %v5590_v13  ;;  %6342 = vst [vmem:[#allocation29_spill] sm:$0xff] %v5604_v51 }
 0xa09   :  { %v5599_v58 = vmul.f32 %v2426_v50, %v5365_v36 }
 0xa0a   :  { %v2412_v3 = vpop.permute.xlu1 %2411  ;;  %v2455_v46 = vpop.permute.xlu0 %2454 }
 0xa0b   :  { %6341 = vst [vmem:[#allocation28_spill] sm:$0xff] %v5599_v58  ;;  %v2427_v9 = vmul.f32 %v2412_v3, %v5440_v57  ;;  %v2474_v55 = vmul.f32 %v2455_v46, %v5599_v58 }
 0xa0e   :  { %v2416_v23 = vpop.permute.xlu1 %2415 }
 0xa0f   :  { %v2428_v41 = vmul.f32 %v2416_v23, %v5456_v43  ;;  %v2459_v23 = vpop.permute.xlu0 %2458 }
 0xa11   :  { %v5611_v50 = vmul.f32 %v2428_v41, %v5369_v7 }
 0xa12   :  { %v2420_v28 = vpop.permute.xlu1 %2419 }
 0xa13   :  { %6343 = vst [vmem:[#allocation30_spill] sm:$0xff] %v5611_v50  ;;  %v2429_v52 = vmul.f32 %v2420_v28, %v5458_v61 }
 0xa15   :  { %v5623_v41 = vmul.f32 %v2429_v52, %v5375_v8 }
 0xa16   :  { %v2447_v5 = vpop.permute.xlu1 %2446 }
 0xa17   :  { %v2470_v22 = vmul.f32 %v2447_v5, %v5583_v29  ;;  %6345 = vst [vmem:[#allocation32_spill] sm:$0xff] %v5623_v41 }
 0xa19   :  { %2486 = vrot.lane.b32.xlu0 %v2470_v22, %s3894_s10 }
 0xa1a   :  { %v2449_v40 = vpop.permute.xlu1 %2448 }
 0xa1b   :  { %v2471_v5 = vmul.f32 %v2449_v40, %v5593_v19  ;;  %v5615_v40 = vmul.f32 %v2427_v9, %v5371_v47 }
 0xa1d   :  { %2490 = vrot.lane.b32.xlu0 %v2472_v31, %s3894_s10  ;;  %2488 = vrot.lane.b32.xlu1 %v2471_v5, %s3894_s10  ;;  %6344 = vst [vmem:[#allocation31_spill] sm:$0xff] %v5615_v40  ;;  %v2476_v31 = vmul.f32 %v2459_v23, %v5611_v50 }
 0xa1e   :  { %v2453_v22 = vpop.permute.xlu1 %2452 }
 0xa1f   :  { %v2473_v15 = vmul.f32 %v2453_v22, %v5604_v51 }
 0xa21   :  { %2494 = vrot.lane.b32.xlu0 %v2474_v55, %s3894_s10  ;;  %2492 = vrot.lane.b32.xlu1 %v2473_v15, %s3894_s10 }
 0xa22   :  { %v2457_v3 = vpop.permute.xlu1 %2456 }
 0xa23   :  { %v2475_v5 = vmul.f32 %v2457_v3, %v5615_v40 }
 0xa25   :  { %2498 = vrot.lane.b32.xlu0 %v2476_v31, %s3894_s10  ;;  %2496 = vrot.lane.b32.xlu1 %v2475_v5, %s3894_s10 }
 0xa26   :  { %v2461_v46 = vpop.permute.xlu1 %2460 }
 0xa27   :  { %v2477_v9 = vmul.f32 %v2461_v46, %v5623_v41 }
 0xa29   :  { %2500 = vrot.lane.b32.xlu1 %v2477_v9, %s3894_s10 }
 0xa8b   :  { %v2487_v28 = vpop.permute.xlu0 %2486 }
 0xa8c   :  { %v2510_v22 = vsel %vm34_vm7, %v2487_v28, 0.0 }
 0xa8d   :  { %2511 = vadd.xlane.f32.xlu0 %v2510_v22 }
 0xa8f   :  { %v2491_v55 = vpop.permute.xlu0 %2490  ;;  %v2489_v15 = vpop.permute.xlu1 %2488 }
 0xa90   :  { %v2516_v23 = vsel %vm34_vm7, %v2491_v55, 0.0  ;;  %v2513_v52 = vsel %vm34_vm7, %v2489_v15, 0.0 }
 0xa91   :  { %2517 = vadd.xlane.f32.xlu0 %v2516_v23  ;;  %2514 = vadd.xlane.f32.xlu1 %v2513_v52  ;;  %v2534_v23 = vmax.f32 %v5583_v29, 1e-05  ;;  %v2535_v52 = vmax.f32 %v5593_v19, 1e-05 }
 0xa93   :  { %v2495_v3 = vpop.permute.xlu0 %2494  ;;  %v2493_v31 = vpop.permute.xlu1 %2492  ;;  %3786 = vlog2.f32 %v2535_v52 }
 0xa94   :  { %v2522_v5 = vsel %vm34_vm7, %v2495_v3, 0.0  ;;  %v2519_v46 = vsel %vm34_vm7, %v2493_v31, 0.0  ;;  %v2536_v3 = vmax.f32 %v5590_v13, 1e-05  ;;  %v2537_v31 = vmax.f32 %v5604_v51, 1e-05 }
 0xa95   :  { %2523 = vadd.xlane.f32.xlu1 %v2522_v5  ;;  %2520 = vadd.xlane.f32.xlu0 %v2519_v46  ;;  %3788 = vlog2.f32 %v2534_v23  ;;  %v2538_v5 = vmax.f32 %v5599_v58, 1e-05  ;;  %v2541_v46 = vmax.f32 %v5623_v41, 1e-05 }
 0xa96   :  { %3790 = vlog2.f32 %v2537_v31 }
 0xa97   :  { %v2499_v9 = vpop.permute.xlu0 %2498  ;;  %v2497_v54 = vpop.permute.xlu1 %2496  ;;  %3792 = vlog2.f32 %v2536_v3 }
 0xa98   :  { %v2528_v28 = vsel %vm34_vm7, %v2499_v9, 0.0  ;;  %v2525_v22 = vsel %vm34_vm7, %v2497_v54, 0.0  ;;  %v2539_v54 = vmax.f32 %v5615_v40, 1e-05  ;;  %v2540_v9 = vmax.f32 %v5611_v50, 1e-05 }
 0xa99   :  { %2529 = vadd.xlane.f32.xlu1 %v2528_v28  ;;  %2526 = vadd.xlane.f32.xlu0 %v2525_v22 }
 0xa9a   :  { %3794 = vlog2.f32 %v2539_v54 }
 0xa9b   :  { %v2501_v55 = vpop.permute.xlu1 %2500  ;;  %3796 = vlog2.f32 %v2538_v5 }
 0xa9c   :  { %v2531_v15 = vsel %vm34_vm7, %v2501_v55, 0.0  ;;  %3798 = vlog2.f32 %v2541_v46 }
 0xa9d   :  { %2532 = vadd.xlane.f32.xlu0 %v2531_v15  ;;  %v3787_v28 = vpop.eup %3786  ;;  %3800 = vlog2.f32 %v2540_v9 }
 0xa9e   :  { %v2585_v55 = vmul.f32 0.6931472, %v3787_v28 }
 0xa9f   :  { %v3789_v22 = vpop.eup %3788 }
 0xaa0   :  { %v3791_v15 = vpop.eup %3790 }
 0xaaa   :  { %2550 = vrot.lane.b32.xlu1 %v2534_v23, %s3894_s10  ;;  %v2583_v23 = vmul.f32 0.6931472, %v3789_v22 }
 0xaae   :  { %2554 = vrot.lane.b32.xlu1 %v2536_v3, %s3894_s10  ;;  %v2589_v3 = vmul.f32 0.6931472, %v3791_v15 }
 0xab2   :  { %2556 = vrot.lane.b32.xlu1 %v2537_v31, %s3894_s10 }
 0xab3   :  { %2552 = vrot.lane.b32.xlu0 %v2535_v52, %s3894_s10  ;;  %v3793_v52 = vpop.eup %3792 }
 0xab4   :  { %v3795_v31 = vpop.eup %3794 }
 0xab6   :  { %2560 = vrot.lane.b32.xlu1 %v2539_v54, %s3894_s10  ;;  %v2587_v54 = vmul.f32 0.6931472, %v3793_v52 }
 0xab7   :  { %2558 = vrot.lane.b32.xlu0 %v2538_v5, %s3894_s10  ;;  %v3797_v5 = vpop.eup %3796 }
 0xab8   :  { %v3799_v0 = vpop.eup %3798  ;;  %v2591_v32 = vmul.f32 0.6931472, %v3797_v5 }
 0xab9   :  { %v2597_v28 = vmul.f32 0.6931472, %v3799_v0 }
 0xaba   :  { %2564 = vrot.lane.b32.xlu1 %v2541_v46, %s3894_s10  ;;  %v2593_v46 = vmul.f32 0.6931472, %v3795_v31 }
 0xabb   :  { %2562 = vrot.lane.b32.xlu0 %v2540_v9, %s3894_s10  ;;  %v3801_v9 = vpop.eup %3800 }
 0xabc   :  { %v2595_v22 = vmul.f32 0.6931472, %v3801_v9 }
 0xabe   :  { %2608 = vrot.lane.b32.xlu1 %v2585_v55, %s3894_s10 }
 0xabf   :  { %2606 = vrot.lane.b32.xlu0 %v2583_v23, %s3894_s10 }
 0xac2   :  { %2612 = vrot.lane.b32.xlu1 %v2589_v3, %s3894_s10 }
 0xac3   :  { %2610 = vrot.lane.b32.xlu0 %v2587_v54, %s3894_s10 }
 0xac6   :  { %2616 = vrot.lane.b32.xlu1 %v2593_v46, %s3894_s10 }
 0xac7   :  { %2614 = vrot.lane.b32.xlu0 %v2591_v32, %s3894_s10 }
 0xaca   :  { %2620 = vrot.lane.b32.xlu1 %v2597_v28, %s3894_s10 }
 0xacb   :  { %2618 = vrot.lane.b32.xlu0 %v2595_v22, %s3894_s10 }
 0xb1a   :  { %v5661_v55 = vpop.xlane.xlu0 %2511 }
 0xb1e   :  { %v5663_v15 = vpop.xlane.xlu0 %2517  ;;  %v5665_v23 = vpop.xlane.xlu1 %2514 }
 0xb22   :  { %v5667_v52 = vpop.xlane.xlu0 %2520  ;;  %v5669_v3 = vpop.xlane.xlu1 %2523 }
 0xb23   :  { %6346 = vst [vmem:[#allocation33_spill] sm:$0xff] %v5667_v52  ;;  %6347 = vst [vmem:[#allocation34_spill] sm:$0xff] %v5669_v3 }
 0xb26   :  { %v5671_v31 = vpop.xlane.xlu0 %2526  ;;  %v5673_v54 = vpop.xlane.xlu1 %2529 }
 0xb27   :  { %6348 = vst [vmem:[#allocation35_spill] sm:$0xff] %v5671_v31  ;;  %6349 = vst [vmem:[#allocation36_spill] sm:$0xff] %v5673_v54 }
 0xb2a   :  { %v5675_v0 = vpop.xlane.xlu0 %2532  ;;  %v2551_v32 = vpop.permute.xlu1 %2550 }
 0xb2b   :  { %6350 = vst [vmem:[#allocation37_spill] sm:$0xff] %v5675_v0  ;;  %v2574_v12 = vmul.f32 %v5513_v10, %v2551_v32 }
 0xb2e   :  { %v2553_v5 = vpop.permute.xlu0 %2552  ;;  %v2555_v46 = vpop.permute.xlu1 %2554 }
 0xb2f   :  { %v2575_v3 = vmul.f32 %v5513_v10, %v2553_v5  ;;  %v2576_v31 = vmul.f32 %v5513_v10, %v2555_v46 }
 0xb32   :  { %v2559_v9 = vpop.permute.xlu0 %2558  ;;  %v2557_v28 = vpop.permute.xlu1 %2556 }
 0xb33   :  { %v2578_v51 = vmul.f32 %v5513_v10, %v2559_v9  ;;  %v2577_v13 = vmul.f32 %v5513_v10, %v2557_v28 }
 0xb36   :  { %v2563_v22 = vpop.permute.xlu0 %2562  ;;  %v2561_v30 = vpop.permute.xlu1 %2560 }
 0xb3a   :  { %v2607_v20 = vpop.permute.xlu0 %2606  ;;  %v2565_v41 = vpop.permute.xlu1 %2564 }
 0xb3b   :  { %v2630_v52 = vmul.f32 %v2607_v20, %v2574_v12  ;;  %v2581_v9 = vmul.f32 %v5513_v10, %v2565_v41  ;;  %v6351_v41 = vmov 3  }
 0xb3d   :  { %v2638_v54 = vsel %vm34_vm7, %v2630_v52, 0.0  ;;  %v2580_v52 = vmul.f32 %v5513_v10, %v2563_v22 }
 0xb3e   :  { %v2611_v50 = vpop.permute.xlu0 %2610  ;;  %2639 = vadd.xlane.f32.xlu0 %v2638_v54  ;;  %v2609_v0 = vpop.permute.xlu1 %2608  ;;  %v2579_v54 = vmul.f32 %v5513_v10, %v2561_v30 }
 0xb3f   :  { %v2632_v40 = vmul.f32 %v2611_v50, %v2576_v31  ;;  %v2631_v58 = vmul.f32 %v2609_v0, %v2575_v3 }
 0xb41   :  { %v2644_v32 = vsel %vm34_vm7, %v2632_v40, 0.0  ;;  %v2641_v29 = vsel %vm34_vm7, %v2631_v58, 0.0 }
 0xb42   :  { %v2615_v20 = vpop.permute.xlu0 %2614  ;;  %2645 = vadd.xlane.f32.xlu0 %v2644_v32  ;;  %2642 = vadd.xlane.f32.xlu1 %v2641_v29  ;;  %v2613_v12 = vpop.permute.xlu1 %2612 }
 0xb43   :  { %v2634_v5 = vmul.f32 %v2615_v20, %v2578_v51  ;;  %v2633_v46 = vmul.f32 %v2613_v12, %v2577_v13 }
 0xb45   :  { %v2650_v50 = vsel %vm34_vm7, %v2634_v5, 0.0  ;;  %v2647_v3 = vsel %vm34_vm7, %v2633_v46, 0.0 }
 0xb46   :  { %v2619_v31 = vpop.permute.xlu0 %2618  ;;  %2651 = vadd.xlane.f32.xlu1 %v2650_v50  ;;  %2648 = vadd.xlane.f32.xlu0 %v2647_v3  ;;  %v2617_v40 = vpop.permute.xlu1 %2616 }
 0xb47   :  { %v2636_v0 = vmul.f32 %v2619_v31, %v2580_v52  ;;  %v2635_v58 = vmul.f32 %v2617_v40, %v2579_v54 }
 0xb49   :  { %v2656_v29 = vsel %vm34_vm7, %v2636_v0, 0.0  ;;  %v2653_v51 = vsel %vm34_vm7, %v2635_v58, 0.0 }
 0xb4a   :  { %2657 = vadd.xlane.f32.xlu1 %v2656_v29  ;;  %2654 = vadd.xlane.f32.xlu0 %v2653_v51  ;;  %v2621_v13 = vpop.permute.xlu1 %2620 }
 0xb4b   :  { %v2637_v30 = vmul.f32 %v2621_v13, %v2581_v9 }
 0xb4d   :  { %v2659_v28 = vsel %vm34_vm7, %v2637_v30, 0.0 }
 0xb4e   :  { %2660 = vadd.xlane.f32.xlu0 %v2659_v28 }
 0xb5b   :  { %2671 = vperm.xlu1 %3618, %v5227_v45  }
 0xb5f   :  { %2679 = vperm.xlu1 %3618, %v5233_v44  }
 0xb63   :  { %2683 = vperm.xlu1 %3618, %v5239_v35  }
 0xb64   :  { %2675 = vperm.xlu0 %3619, %v5230_v48  }
 0xb67   :  { %2687 = vperm.xlu1 %3618, %v5236_v21  }
 0xb68   :  { %2728 = vrot.lane.b32.xlu0 %v5280_v56, %s3895_s11 }
 0xb69   :  { %3620 = vset.pattern.permute.xlu0 %v6351_v41 }
 0xb6b   :  { %2691 = vperm.xlu1 %3618, %v5245_v38  }
 0xb6c   :  { %2732 = vrot.lane.b32.xlu0 %v5287_v42, %s3895_s11 }
 0xb6f   :  { %2695 = vperm.xlu1 %3618, %v5242_v25  }
 0xb70   :  { %2736 = vrot.lane.b32.xlu0 %v5295_v39, %s3895_s11 }
 0xb73   :  { %2699 = vperm.xlu1 %3618, %v5251_v34  }
 0xb74   :  { %2740 = vrot.lane.b32.xlu0 %v5307_v18, %s3895_s11 }
 0xb77   :  { %2726 = vrot.lane.b32.xlu1 %v5301_v33, %s3895_s11 }
 0xb78   :  { %3621 = vset.pattern.permute.xlu1 %v6351_v41 }
 0xb7b   :  { %2730 = vrot.lane.b32.xlu1 %v5313_v2, %s3895_s11 }
 0xb7f   :  { %2734 = vrot.lane.b32.xlu1 %v5320_v11, %s3895_s11 }
 0xb83   :  { %2738 = vrot.lane.b32.xlu1 %v5326_v62, %s3895_s11 }
 0xbcb   :  { %v5711_v56 = vpop.xlane.xlu0 %2639 }
 0xbcf   :  { %v5713_v42 = vpop.xlane.xlu0 %2645  ;;  %v5715_v22 = vpop.xlane.xlu1 %2642 }
 0xbd3   :  { %v5717_v39 = vpop.xlane.xlu0 %2648  ;;  %v5719_v32 = vpop.xlane.xlu1 %2651 }
 0xbd4   :  { %6352 = vst [vmem:[#allocation38_spill] sm:$0xff] %v5717_v39  ;;  %6353 = vst [vmem:[#allocation39_spill] sm:$0xff] %v5719_v32 }
 0xbd7   :  { %v5721_v18 = vpop.xlane.xlu1 %2657  ;;  %v5723_v33 = vpop.xlane.xlu0 %2654 }
 0xbd8   :  { %6354 = vst [vmem:[#allocation40_spill] sm:$0xff] %v5721_v18  ;;  %6355 = vst [vmem:[#allocation41_spill] sm:$0xff] %v5723_v33 }
 0xbdb   :  { %v2672_v20 = vpop.permute.xlu1 %2671  ;;  %v5725_v2 = vpop.xlane.xlu0 %2660 }
 0xbdc   :  { %6356 = vst [vmem:[#allocation42_spill] sm:$0xff] %v5725_v2  ;;  %v2702_v13 = vmul.f32 %v2672_v20, %v5411_v1 }
 0xbdf   :  { %v2680_v11 = vpop.permute.xlu1 %2679 }
 0xbe3   :  { %v2676_v12 = vpop.permute.xlu0 %2675  ;;  %v2684_v62 = vpop.permute.xlu1 %2683 }
 0xbe4   :  { %v2703_v5 = vmul.f32 %v2676_v12, %v5373_v37  ;;  %v2705_v52 = vmul.f32 %v2684_v62, %v5423_v53  ;;  %v5748_v12 = vmul.f32 %v2702_v13, %v5357_v4 }
 0xbe6   :  { %v5729_v46 = vmul.f32 %v2703_v5, %v5363_v49  ;;  %v5734_v31 = vmul.f32 %v2705_v52, %v5367_v63 }
 0xbe7   :  { %v2729_v54 = vpop.permute.xlu0 %2728  ;;  %v2688_v50 = vpop.permute.xlu1 %2687 }
 0xbe8   :  { %v2751_v3 = vmul.f32 %v2729_v54, %v5729_v46  ;;  %v2706_v20 = vmul.f32 %v2688_v50, %v5438_v59 }
 0xbea   :  { %2768 = vrot.lane.b32.xlu0 %v2751_v3, %s3896_s12 }
 0xbeb   :  { %v2733_v40 = vpop.permute.xlu0 %2732  ;;  %v2692_v0 = vpop.permute.xlu1 %2691 }
 0xbec   :  { %v2753_v58 = vmul.f32 %v2733_v40, %v5734_v31  ;;  %v2707_v37 = vmul.f32 %v2692_v0, %v5440_v57  ;;  %v2704_v57 = vmul.f32 %v2680_v11, %v5421_v24  ;;  %v5764_v11 = vmul.f32 %v2706_v20, %v5365_v36 }
 0xbee   :  { %v5740_v9 = vmul.f32 %v2707_v37, %v5371_v47  ;;  %2772 = vrot.lane.b32.xlu0 %v2753_v58, %s3896_s12  ;;  %v5757_v1 = vmul.f32 %v2704_v57, %v5361_v26 }
 0xbef   :  { %v2737_v53 = vpop.permute.xlu0 %2736  ;;  %v2696_v29 = vpop.permute.xlu1 %2695 }
 0xbf0   :  { %v2755_v51 = vmul.f32 %v2737_v53, %v5740_v9  ;;  %v2708_v3 = vmul.f32 %v2696_v29, %v5456_v43 }
 0xbf2   :  { %2776 = vrot.lane.b32.xlu0 %v2755_v51, %s3896_s12  ;;  %v5770_v58 = vmul.f32 %v2708_v3, %v5369_v7  ;;  %v2814_v3 = vmax.f32 %v5748_v12, 1e-05 }
 0xbf3   :  { %v2700_v30 = vpop.permute.xlu1 %2699  ;;  %v2741_v41 = vpop.permute.xlu0 %2740 }
 0xbf4   :  { %v2709_v28 = vmul.f32 %v2700_v30, %v5458_v61  ;;  %3802 = vlog2.f32 %v2814_v3 }
 0xbf6   :  { %v5752_v62 = vmul.f32 %v2709_v28, %v5375_v8 }
 0xbf7   :  { %v2727_v5 = vpop.permute.xlu1 %2726 }
 0xbf8   :  { %v2757_v52 = vmul.f32 %v2741_v41, %v5752_v62  ;;  %v2750_v54 = vmul.f32 %v2727_v5, %v5748_v12 }
 0xbfa   :  { %2780 = vrot.lane.b32.xlu0 %v2757_v52, %s3896_s12  ;;  %2766 = vrot.lane.b32.xlu1 %v2750_v54, %s3896_s12 }
 0xbfb   :  { %v2731_v61 = vpop.permute.xlu1 %2730 }
 0xbfc   :  { %v2752_v24 = vmul.f32 %v2731_v61, %v5757_v1 }
 0xbfe   :  { %2770 = vrot.lane.b32.xlu1 %v2752_v24, %s3896_s12 }
 0xbff   :  { %v2735_v40 = vpop.permute.xlu1 %2734 }
 0xc00   :  { %v2754_v0 = vmul.f32 %v2735_v40, %v5764_v11  ;;  %v2815_v40 = vmax.f32 %v5729_v46, 1e-05 }
 0xc02   :  { %2774 = vrot.lane.b32.xlu1 %v2754_v0, %s3896_s12  ;;  %v2816_v0 = vmax.f32 %v5757_v1, 1e-05 }
 0xc03   :  { %v2739_v59 = vpop.permute.xlu1 %2738 }
 0xc04   :  { %v2756_v50 = vmul.f32 %v2739_v59, %v5770_v58  ;;  %3804 = vlog2.f32 %v2816_v0  ;;  %v2818_v59 = vmax.f32 %v5764_v11, 1e-05 }
 0xc05   :  { %3806 = vlog2.f32 %v2815_v40 }
 0xc06   :  { %2778 = vrot.lane.b32.xlu1 %v2756_v50, %s3896_s12  ;;  %v2817_v50 = vmax.f32 %v5734_v31, 1e-05  ;;  %3808 = vlog2.f32 %v2818_v59 }
 0xc08   :  { %3810 = vlog2.f32 %v2817_v50 }
 0xc5c   :  { %v2769_v37 = vpop.permute.xlu0 %2768 }
 0xc5d   :  { %v2793_v53 = vsel %vm34_vm7, %v2769_v37, 0.0  ;;  %v2820_v37 = vmax.f32 %v5770_v58, 1e-05 }
 0xc5e   :  { %2794 = vadd.xlane.f32.xlu0 %v2793_v53  ;;  %v2819_v53 = vmax.f32 %v5740_v9, 1e-05 }
 0xc5f   :  { %3812 = vlog2.f32 %v2820_v37 }
 0xc60   :  { %v2773_v43 = vpop.permute.xlu0 %2772  ;;  %3814 = vlog2.f32 %v2819_v53 }
 0xc61   :  { %v2799_v30 = vsel %vm34_vm7, %v2773_v43, 0.0  ;;  %v3803_v43 = vpop.eup %3802 }
 0xc64   :  { %v2777_v41 = vpop.permute.xlu0 %2776 }
 0xc65   :  { %v2805_v5 = vsel %vm34_vm7, %v2777_v41, 0.0 }
 0xc6c   :  { %v2767_v29 = vpop.permute.xlu1 %2766  ;;  %v2781_v54 = vpop.permute.xlu0 %2780 }
 0xc6d   :  { %v2790_v51 = vsel %vm34_vm7, %v2767_v29, 0.0  ;;  %v2811_v61 = vsel %vm34_vm7, %v2781_v54, 0.0  ;;  %v2863_v29 = vmul.f32 0.6931472, %v3803_v43 }
 0xc6e   :  { %2791 = vadd.xlane.f32.xlu1 %v2790_v51  ;;  %v2821_v51 = vmax.f32 %v5752_v62, 1e-05 }
 0xc70   :  { %v2771_v13 = vpop.permute.xlu1 %2770  ;;  %3816 = vlog2.f32 %v2821_v51 }
 0xc71   :  { %v2796_v28 = vsel %vm34_vm7, %v2771_v13, 0.0  ;;  %v3805_v13 = vpop.eup %3804 }
 0xc72   :  { %2800 = vadd.xlane.f32.xlu1 %v2799_v30  ;;  %2797 = vadd.xlane.f32.xlu0 %v2796_v28  ;;  %v3807_v30 = vpop.eup %3806  ;;  %v2867_v28 = vmul.f32 0.6931472, %v3805_v13 }
 0xc73   :  { %v3809_v41 = vpop.eup %3808 }
 0xc74   :  { %v2775_v57 = vpop.permute.xlu1 %2774 }
 0xc75   :  { %v2802_v52 = vsel %vm34_vm7, %v2775_v57, 0.0  ;;  %v2865_v57 = vmul.f32 0.6931472, %v3807_v30 }
 0xc76   :  { %2806 = vadd.xlane.f32.xlu1 %v2805_v5  ;;  %2803 = vadd.xlane.f32.xlu0 %v2802_v52  ;;  %v3811_v5 = vpop.eup %3810  ;;  %v2871_v52 = vmul.f32 0.6931472, %v3809_v41 }
 0xc77   :  { %v3813_v54 = vpop.eup %3812 }
 0xc78   :  { %v2779_v20 = vpop.permute.xlu1 %2778 }
 0xc79   :  { %v2808_v24 = vsel %vm34_vm7, %v2779_v20, 0.0  ;;  %v2869_v20 = vmul.f32 0.6931472, %v3811_v5 }
 0xc7a   :  { %2812 = vadd.xlane.f32.xlu1 %v2811_v61  ;;  %2809 = vadd.xlane.f32.xlu0 %v2808_v24  ;;  %v3815_v61 = vpop.eup %3814  ;;  %v2875_v24 = vmul.f32 0.6931472, %v3813_v54 }
 0xc8b   :  { %2832 = vrot.lane.b32.xlu1 %v2815_v40, %s3896_s12  ;;  %v3817_v40 = vpop.eup %3816 }
 0xc8f   :  { %2834 = vrot.lane.b32.xlu1 %v2816_v0, %s3896_s12  ;;  %v2877_v0 = vmul.f32 0.6931472, %v3817_v40 }
 0xc90   :  { %2830 = vrot.lane.b32.xlu0 %v2814_v3, %s3896_s12  ;;  %v2873_v3 = vmul.f32 0.6931472, %v3815_v61 }
 0xc93   :  { %2838 = vrot.lane.b32.xlu1 %v2818_v59, %s3896_s12 }
 0xc94   :  { %2836 = vrot.lane.b32.xlu0 %v2817_v50, %s3896_s12 }
 0xc97   :  { %2842 = vrot.lane.b32.xlu1 %v2820_v37, %s3896_s12 }
 0xc98   :  { %2840 = vrot.lane.b32.xlu0 %v2819_v53, %s3896_s12 }
 0xc9b   :  { %2886 = vrot.lane.b32.xlu1 %v2863_v29, %s3896_s12 }
 0xc9c   :  { %2844 = vrot.lane.b32.xlu0 %v2821_v51, %s3896_s12 }
 0xc9f   :  { %2890 = vrot.lane.b32.xlu1 %v2867_v28, %s3896_s12 }
 0xca0   :  { %2888 = vrot.lane.b32.xlu0 %v2865_v57, %s3896_s12 }
 0xca3   :  { %2894 = vrot.lane.b32.xlu1 %v2871_v52, %s3896_s12 }
 0xca4   :  { %2892 = vrot.lane.b32.xlu0 %v2869_v20, %s3896_s12 }
 0xca7   :  { %2898 = vrot.lane.b32.xlu1 %v2875_v24, %s3896_s12 }
 0xca8   :  { %2896 = vrot.lane.b32.xlu0 %v2873_v3, %s3896_s12 }
 0xcac   :  { %2900 = vrot.lane.b32.xlu0 %v2877_v0, %s3896_s12 }
 0xceb   :  { %v5807_v59 = vpop.xlane.xlu0 %2794 }
 0xcfb   :  { %v5809_v50 = vpop.xlane.xlu1 %2791 }
 0xcff   :  { %v5811_v37 = vpop.xlane.xlu0 %2797  ;;  %v5813_v53 = vpop.xlane.xlu1 %2800 }
 0xd03   :  { %v5815_v43 = vpop.xlane.xlu0 %2803  ;;  %v5817_v29 = vpop.xlane.xlu1 %2806 }
 0xd04   :  { %6357 = vst [vmem:[#allocation43_spill] sm:$0xff] %v5815_v43  ;;  %6358 = vst [vmem:[#allocation44_spill] sm:$0xff] %v5817_v29 }
 0xd07   :  { %v5819_v51 = vpop.xlane.xlu0 %2809  ;;  %v5821_v13 = vpop.xlane.xlu1 %2812 }
 0xd08   :  { %6359 = vst [vmem:[#allocation45_spill] sm:$0xff] %v5819_v51  ;;  %6360 = vst [vmem:[#allocation46_spill] sm:$0xff] %v5821_v13 }
 0xd0b   :  { %v2831_v30 = vpop.permute.xlu0 %2830  ;;  %v2833_v28 = vpop.permute.xlu1 %2832 }
 0xd0c   :  { %v2854_v61 = vmul.f32 %v5513_v10, %v2831_v30  ;;  %v2855_v24 = vmul.f32 %v5513_v10, %v2833_v28 }
 0xd0f   :  { %v2837_v41 = vpop.permute.xlu0 %2836  ;;  %v2835_v57 = vpop.permute.xlu1 %2834 }
 0xd10   :  { %v2857_v18 = vmul.f32 %v5513_v10, %v2837_v41  ;;  %v2856_v13 = vmul.f32 %v5513_v10, %v2835_v57 }
 0xd13   :  { %v2841_v5 = vpop.permute.xlu0 %2840  ;;  %v2839_v52 = vpop.permute.xlu1 %2838 }
 0xd14   :  { %v2859_v28 = vmul.f32 %v5513_v10, %v2841_v5  ;;  %v2858_v43 = vmul.f32 %v5513_v10, %v2839_v52 }
 0xd17   :  { %v2845_v54 = vpop.permute.xlu0 %2844  ;;  %v2843_v20 = vpop.permute.xlu1 %2842 }
 0xd1b   :  { %v2889_v3 = vpop.permute.xlu0 %2888  ;;  %v2887_v40 = vpop.permute.xlu1 %2886 }
 0xd1c   :  { %v2911_v0 = vmul.f32 %v2889_v3, %v2855_v24  ;;  %v2910_v2 = vmul.f32 %v2887_v40, %v2854_v61 }
 0xd1e   :  { %v2921_v33 = vsel %vm34_vm7, %v2911_v0, 0.0  ;;  %v2918_v51 = vsel %vm34_vm7, %v2910_v2, 0.0 }
 0xd1f   :  { %v2893_v29 = vpop.permute.xlu0 %2892  ;;  %2922 = vadd.xlane.f32.xlu0 %v2921_v33  ;;  %2919 = vadd.xlane.f32.xlu1 %v2918_v51  ;;  %v2891_v32 = vpop.permute.xlu1 %2890  ;;  %v2861_v33 = vmul.f32 %v5513_v10, %v2845_v54  ;;  %v2860_v51 = vmul.f32 %v5513_v10, %v2843_v20  ;;  %v3838_v10 = vld [vmem:[%s6195_s4 + $0x8] sm:$0xff] }
 0xd20   :  { %v2913_v39 = vmul.f32 %v2893_v29, %v2857_v18  ;;  %v2912_v30 = vmul.f32 %v2891_v32, %v2856_v13 }
 0xd22   :  { %v2927_v61 = vsel %vm34_vm7, %v2913_v39, 0.0  ;;  %v2924_v41 = vsel %vm34_vm7, %v2912_v30, 0.0 }
 0xd23   :  { %v2897_v24 = vpop.permute.xlu0 %2896  ;;  %2928 = vadd.xlane.f32.xlu1 %v2927_v61  ;;  %2925 = vadd.xlane.f32.xlu0 %v2924_v41  ;;  %v2895_v57 = vpop.permute.xlu1 %2894 }
 0xd24   :  { %v2915_v3 = vmul.f32 %v2897_v24, %v2859_v28  ;;  %v2914_v2 = vmul.f32 %v2895_v57, %v2858_v43  ;;  %v3839_v43 = vld [vmem:[%s6195_s4 + $0x18] sm:$0xff]  ;;  %v3846_v24 = vld [vmem:[#allocation4 + $0x8] sm:$0xff] }
 0xd26   :  { %v2933_v32 = vsel %vm34_vm7, %v2915_v3, 0.0  ;;  %v2930_v18 = vsel %vm34_vm7, %v2914_v2, 0.0 }
 0xd27   :  { %v2901_v29 = vpop.permute.xlu0 %2900  ;;  %2934 = vadd.xlane.f32.xlu1 %v2933_v32  ;;  %2931 = vadd.xlane.f32.xlu0 %v2930_v18  ;;  %v2899_v39 = vpop.permute.xlu1 %2898 }
 0xd28   :  { %v2917_v13 = vmul.f32 %v2901_v29, %v2861_v33  ;;  %v2916_v5 = vmul.f32 %v2899_v39, %v2860_v51  ;;  %v3847_v29 = vld [vmem:[#allocation4 + $0x18] sm:$0xff] }
 0xd2a   :  { %v2939_v52 = vsel %vm34_vm7, %v2917_v13, 0.0  ;;  %v2936_v40 = vsel %vm34_vm7, %v2916_v5, 0.0 }
 0xd2b   :  { %2940 = vadd.xlane.f32.xlu1 %v2939_v52  ;;  %2937 = vadd.xlane.f32.xlu0 %v2936_v40 }
 0xd3c   :  { %2955 = vperm.xlu1 %3621, %v5230_v48   ;;  %v3841_v48 = vld [vmem:[%s6195_s4 + $0x38] sm:$0xff] }
 0xd40   :  { %2959 = vperm.xlu1 %3621, %v5233_v44   ;;  %v3842_v44 = vld [vmem:[%s6195_s4] sm:$0xff] }
 0xd41   :  { %2951 = vperm.xlu0 %3620, %v5227_v45   ;;  %v3840_v45 = vld [vmem:[%s6195_s4 + $0x28] sm:$0xff] }
 0xd44   :  { %2963 = vperm.xlu1 %3621, %v5239_v35   ;;  %v3844_v35 = vld [vmem:[%s6195_s4 + $0x20] sm:$0xff] }
 0xd45   :  { %3008 = vrot.lane.b32.xlu0 %v3838_v10, %s3897_s15  ;;  %v3848_v10 = vld [vmem:[#allocation4 + $0x28] sm:$0xff] }
 0xd48   :  { %2967 = vperm.xlu1 %3621, %v5236_v21   ;;  %v3843_v21 = vld [vmem:[%s6195_s4 + $0x10] sm:$0xff] }
 0xd49   :  { %3012 = vrot.lane.b32.xlu0 %v3839_v43, %s3897_s15 }
 0xd4c   :  { %2971 = vperm.xlu1 %3621, %v5245_v38  }
 0xd4d   :  { %3016 = vrot.lane.b32.xlu0 %v3840_v45, %s3897_s15 }
 0xd50   :  { %2975 = vperm.xlu1 %3621, %v5242_v25   ;;  %v3845_v25 = vld [vmem:[%s6195_s4 + $0x30] sm:$0xff]  ;;  %s3898_s4 = smov 52  }
 0xd51   :  { %3020 = vrot.lane.b32.xlu0 %v3841_v48, %s3897_s15 }
 0xd54   :  { %2979 = vperm.xlu1 %3621, %v5251_v34  }
 0xd58   :  { %3006 = vrot.lane.b32.xlu1 %v3842_v44, %s3897_s15 }
 0xd5c   :  { %3010 = vrot.lane.b32.xlu1 %v3843_v21, %s3897_s15  ;;  %v3849_v21 = vld [vmem:[#allocation4] sm:$0xff] }
 0xd60   :  { %3014 = vrot.lane.b32.xlu1 %v3844_v35, %s3897_s15 }
 0xd64   :  { %3018 = vrot.lane.b32.xlu1 %v3845_v25, %s3897_s15 }
 0xdac   :  { %v5871_v38 = vpop.xlane.xlu0 %2922  ;;  %v5873_v34 = vpop.xlane.xlu1 %2919 }
 0xdb0   :  { %v5875_v54 = vpop.xlane.xlu0 %2925  ;;  %v5877_v20 = vpop.xlane.xlu1 %2928 }
 0xdb4   :  { %v5879_v0 = vpop.xlane.xlu1 %2934  ;;  %v5881_v30 = vpop.xlane.xlu0 %2931 }
 0xdb8   :  { %v5883_v28 = vpop.xlane.xlu1 %2940  ;;  %v5885_v61 = vpop.xlane.xlu0 %2937 }
 0xdbc   :  { %v2956_v41 = vpop.permute.xlu1 %2955 }
 0xdbd   :  { %v2983_v57 = vmul.f32 %v3846_v24, %v2956_v41  ;;  %v3850_v41 = vld [vmem:[#allocation4 + $0x38] sm:$0xff] }
 0xdbf   :  { %v5888_v33 = vmul.f32 %v2983_v57, %v5363_v49 }
 0xdc0   :  { %v2952_v3 = vpop.permute.xlu0 %2951  ;;  %v2960_v2 = vpop.permute.xlu1 %2959 }
 0xdc1   :  { %v2982_v35 = vmul.f32 %v3849_v21, %v2952_v3 }
 0xdc4   :  { %v3009_v51 = vpop.permute.xlu0 %3008  ;;  %v2964_v32 = vpop.permute.xlu1 %2963 }
 0xdc5   :  { %v3031_v18 = vmul.f32 %v3009_v51, %v5888_v33  ;;  %v2985_v39 = vmul.f32 %v3847_v29, %v2964_v32  ;;  %v5903_v51 = vmul.f32 %v2982_v35, %v5357_v4  ;;  %v3851_v32 = vld [vmem:[#allocation4 + $0x10] sm:$0xff] }
 0xdc7   :  { %v5892_v13 = vmul.f32 %v2985_v39, %v5367_v63  ;;  %3048 = vrot.lane.b32.xlu0 %v3031_v18, %s3898_s4  ;;  %v2984_v18 = vmul.f32 %v3851_v32, %v2960_v2 }
 0xdc8   :  { %v3013_v5 = vpop.permute.xlu0 %3012  ;;  %v2968_v52 = vpop.permute.xlu1 %2967 }
 0xdc9   :  { %v3033_v40 = vmul.f32 %v3013_v5, %v5892_v13  ;;  %v5911_v3 = vmul.f32 %v2984_v18, %v5361_v26  ;;  %v3097_v18 = vmax.f32 %v5892_v13, 1e-05 }
 0xdcb   :  { %3052 = vrot.lane.b32.xlu0 %v3033_v40, %s3898_s4  ;;  %v3852_v40 = vld [vmem:[#allocation4 + $0x20] sm:$0xff]  ;;  %v3096_v32 = vmax.f32 %v5911_v3, 1e-05 }
 0xdcc   :  { %v2972_v49 = vpop.permute.xlu1 %2971  ;;  %v3017_v45 = vpop.permute.xlu0 %3016 }
 0xdcd   :  { %v2987_v43 = vmul.f32 %v3848_v10, %v2972_v49  ;;  %v2986_v49 = vmul.f32 %v3852_v40, %v2968_v52  ;;  %v3853_v10 = vld [vmem:[#allocation4 + $0x30] sm:$0xff] }
 0xdcf   :  { %v5898_v48 = vmul.f32 %v2987_v43, %v5371_v47 }
 0xdd0   :  { %v2976_v44 = vpop.permute.xlu1 %2975  ;;  %v3021_v57 = vpop.permute.xlu0 %3020 }
 0xdd1   :  { %v3035_v63 = vmul.f32 %v3017_v45, %v5898_v48  ;;  %v2988_v43 = vmul.f32 %v3853_v10, %v2976_v44 }
 0xdd3   :  { %3056 = vrot.lane.b32.xlu0 %v3035_v63, %s3898_s4  ;;  %v5922_v63 = vmul.f32 %v2988_v43, %v5369_v7  ;;  %v3094_v7 = vmax.f32 %v5903_v51, 1e-05 }
 0xdd4   :  { %v2980_v25 = vpop.permute.xlu1 %2979 }
 0xdd5   :  { %v2989_v24 = vmul.f32 %v3850_v41, %v2980_v25  ;;  %v3100_v40 = vmax.f32 %v5922_v63, 1e-05 }
 0xdd7   :  { %v5906_v29 = vmul.f32 %v2989_v24, %v5375_v8  ;;  %v5917_v8 = vmul.f32 %v2986_v49, %v5365_v36 }
 0xdd8   :  { %v3007_v47 = vpop.permute.xlu1 %3006 }
 0xdd9   :  { %v3037_v39 = vmul.f32 %v3021_v57, %v5906_v29  ;;  %v3030_v5 = vmul.f32 %v3007_v47, %v5903_v51  ;;  %v3095_v57 = vmax.f32 %v5888_v33, 1e-05  ;;  %v3099_v47 = vmax.f32 %v5898_v48, 1e-05 }
 0xddb   :  { %3060 = vrot.lane.b32.xlu0 %v3037_v39, %s3898_s4  ;;  %3046 = vrot.lane.b32.xlu1 %v3030_v5, %s3898_s4  ;;  %3818 = vlog2.f32 %v3095_v57  ;;  %v3098_v39 = vmax.f32 %v5917_v8, 1e-05  ;;  %v3101_v5 = vmax.f32 %v5906_v29, 1e-05 }
 0xddc   :  { %v3011_v4 = vpop.permute.xlu1 %3010  ;;  %3820 = vlog2.f32 %v3094_v7 }
 0xddd   :  { %v3032_v2 = vmul.f32 %v3011_v4, %v5911_v3  ;;  %3822 = vlog2.f32 %v3097_v18 }
 0xdde   :  { %3824 = vlog2.f32 %v3096_v32 }
 0xddf   :  { %3050 = vrot.lane.b32.xlu1 %v3032_v2, %s3898_s4  ;;  %3826 = vlog2.f32 %v3099_v47 }
 0xde0   :  { %v3015_v45 = vpop.permute.xlu1 %3014  ;;  %3828 = vlog2.f32 %v3098_v39 }
 0xde1   :  { %v3034_v26 = vmul.f32 %v3015_v45, %v5917_v8  ;;  %3830 = vlog2.f32 %v3101_v5 }
 0xde2   :  { %3832 = vlog2.f32 %v3100_v40 }
 0xde3   :  { %3054 = vrot.lane.b32.xlu1 %v3034_v26, %s3898_s4 }
 0xde4   :  { %v3019_v52 = vpop.permute.xlu1 %3018 }
 0xde5   :  { %v3036_v21 = vmul.f32 %v3019_v52, %v5922_v63  ;;  %v3819_v49 = vpop.eup %3818 }
 0xde6   :  { %v3821_v4 = vpop.eup %3820  ;;  %v3145_v2 = vmul.f32 0.6931472, %v3819_v49 }
 0xde7   :  { %3058 = vrot.lane.b32.xlu1 %v3036_v21, %s3898_s4  ;;  %v3823_v10 = vpop.eup %3822  ;;  %v3143_v43 = vmul.f32 0.6931472, %v3821_v4 }
 0xde8   :  { %v3825_v45 = vpop.eup %3824  ;;  %v3149_v26 = vmul.f32 0.6931472, %v3823_v10  ;;  %v3362_v10 = vsel %vm356_vm4, %v5551_v14, %v5665_v23  ;;  %v2382_v23 = vsub.f32 0.0, %v5569_v60  ;;  %v2384_v60 = vsub.f32 0.0, %v5573_v27 }
 0xde9   :  { %v3827_v52 = vpop.eup %3826  ;;  %v3147_v21 = vmul.f32 0.6931472, %v3825_v45  ;;  %v3371_v45 = vsel %vm3369_vm0, %v3362_v10, %v5807_v59 }
 0xe39   :  { %v3049_v35 = vpop.permute.xlu0 %3048 }
 0xe3a   :  { %v3073_v36 = vsel %vm34_vm7, %v3049_v35, 0.0  ;;  %v3829_v35 = vpop.eup %3828 }
 0xe3b   :  { %3074 = vadd.xlane.f32.xlu0 %v3073_v36  ;;  %v3153_v36 = vmul.f32 0.6931472, %v3827_v52  ;;  %v2663_v52 = vsub.f32 0.0, %v5715_v22 }
 0xe4d   :  { %v3047_v44 = vpop.permute.xlu1 %3046 }
 0xe4e   :  { %v3070_v25 = vsel %vm34_vm7, %v3047_v44, 0.0  ;;  %v3831_v44 = vpop.eup %3830 }
 0xe4f   :  { %3071 = vadd.xlane.f32.xlu1 %v3070_v25  ;;  %v3151_v25 = vmul.f32 0.6931472, %v3829_v35  ;;  %v2943_v35 = vsub.f32 0.0, %v5871_v38 }
 0xe51   :  { %v3051_v41 = vpop.permute.xlu1 %3050 }
 0xe52   :  { %v3076_v24 = vsel %vm34_vm7, %v3051_v41, 0.0  ;;  %v3833_v41 = vpop.eup %3832 }
 0xe53   :  { %3077 = vadd.xlane.f32.xlu0 %v3076_v24  ;;  %v3157_v24 = vmul.f32 0.6931472, %v3831_v44 }
 0xe60   :  { %3110 = vrot.lane.b32.xlu1 %v3094_v7, %s3898_s4  ;;  %v3155_v7 = vmul.f32 0.6931472, %v3833_v41  ;;  %v2942_v41 = vsub.f32 0.0, %v5873_v34  ;;  %v2664_v34 = vsub.f32 0.0, %v5713_v42  ;;  %v3854_v42 = vld [vmem:[%s6196_s5] ss:$0 sm:$0xff] }
 0xe61   :  { %s3899_s5 = smov 124  }
 0xe64   :  { %3114 = vrot.lane.b32.xlu1 %v3096_v32, %s3898_s4  ;;  %v3055_v32 = vpop.permute.xlu1 %3054 }
 0xe68   :  { %3116 = vrot.lane.b32.xlu1 %v3097_v18, %s3898_s4  ;;  %v3059_v49 = vpop.permute.xlu1 %3058 }
 0xe69   :  { %3112 = vrot.lane.b32.xlu0 %v3095_v57, %s3898_s4  ;;  %v3053_v57 = vpop.permute.xlu0 %3052 }
 0xe6a   :  { %v3079_v18 = vsel %vm34_vm7, %v3053_v57, 0.0 }
 0xe6c   :  { %3120 = vrot.lane.b32.xlu1 %v3099_v47, %s3898_s4 }
 0xe6d   :  { %3118 = vrot.lane.b32.xlu0 %v3098_v39, %s3898_s4  ;;  %v3057_v47 = vpop.permute.xlu0 %3056 }
 0xe6e   :  { %v3085_v39 = vsel %vm34_vm7, %v3057_v47, 0.0 }
 0xe70   :  { %3124 = vrot.lane.b32.xlu1 %v3101_v5, %s3898_s4  ;;  %v3082_v5 = vsel %vm34_vm7, %v3055_v32, 0.0 }
 0xe71   :  { %3122 = vrot.lane.b32.xlu0 %v3100_v40, %s3898_s4  ;;  %v3061_v40 = vpop.permute.xlu0 %3060 }
 0xe72   :  { %v3091_v4 = vsel %vm34_vm7, %v3061_v40, 0.0 }
 0xe74   :  { %3168 = vrot.lane.b32.xlu1 %v3145_v2, %s3898_s4  ;;  %v3088_v2 = vsel %vm34_vm7, %v3059_v49, 0.0 }
 0xe75   :  { %3166 = vrot.lane.b32.xlu0 %v3143_v43, %s3898_s4  ;;  %v2383_v43 = vsub.f32 0.0, %v5563_v6  ;;  %v3361_v6 = vsel %vm356_vm4, %v5553_v17, %v5661_v55 }
 0xe76   :  { %v3370_v22 = vsel %vm3369_vm0, %v3361_v6, %v5809_v50 }
 0xe78   :  { %3172 = vrot.lane.b32.xlu1 %v3149_v26, %s3898_s4 }
 0xe79   :  { %3170 = vrot.lane.b32.xlu0 %v3147_v21, %s3898_s4 }
 0xe7c   :  { %3176 = vrot.lane.b32.xlu1 %v3153_v36, %s3898_s4 }
 0xe7d   :  { %3174 = vrot.lane.b32.xlu0 %v3151_v25, %s3898_s4  ;;  %v2662_v25 = vsub.f32 0.0, %v5711_v56 }
 0xe80   :  { %3180 = vrot.lane.b32.xlu1 %v3157_v24, %s3898_s4 }
 0xe81   :  { %3178 = vrot.lane.b32.xlu0 %v3155_v7, %s3898_s4  ;;  %v3363_v7 = vsel %vm356_vm4, %v5549_v16, %v5663_v15 }
 0xe82   :  { %v3372_v55 = vsel %vm3369_vm0, %v3363_v7, %v5811_v37 }
 0xea0   :  { %3080 = vadd.xlane.f32.xlu0 %v3079_v18  ;;  %v2944_v18 = vsub.f32 0.0, %v5875_v54 }
 0xea4   :  { %3086 = vadd.xlane.f32.xlu0 %v3085_v39  ;;  %3083 = vadd.xlane.f32.xlu1 %v3082_v5 }
 0xea8   :  { %3092 = vadd.xlane.f32.xlu1 %v3091_v4  ;;  %3089 = vadd.xlane.f32.xlu0 %v3088_v2 }
 0xec8   :  { %v3075_v26 = vpop.xlane.xlu0 %3074 }
 0xec9   :  { %v3380_v21 = vsel %vm3378_vm2, %v3371_v45, %v3075_v26 }
 0xeca   :  { %v3388_v36 = vsel %vm34_vm7, %v3380_v21, %v2383_v43 }
 0xecb   :  { %v3397_v44 = vsel %vm3395_vm3, %v3388_v36, %v2663_v52 }
 0xecc   :  { %v5971_v14 = vsel %vm3404_vm5, %v3397_v44, %v2943_v35 }
 0xedc   :  { %v3072_v59 = vpop.xlane.xlu1 %3071 }
 0xedd   :  { %v3379_v38 = vsel %vm3378_vm2, %v3370_v22, %v3072_v59 }
 0xede   :  { %v3387_v24 = vsel %vm34_vm7, %v3379_v38, %v2382_v23 }
 0xedf   :  { %v3396_v17 = vsel %vm3395_vm3, %v3387_v24, %v2662_v25 }
 0xee0   :  { %v3078_v50 = vpop.xlane.xlu0 %3077  ;;  %v3111_v57 = vpop.permute.xlu1 %3110  ;;  %v5991_v56 = vsel %vm3404_vm5, %v3396_v17, %v2942_v41 }
 0xee1   :  { %v3381_v32 = vsel %vm3378_vm2, %v3372_v55, %v3078_v50  ;;  %v3134_v4 = vmul.f32 %v3854_v42, %v3111_v57 }
 0xee2   :  { %v3389_v16 = vsel %vm34_vm7, %v3381_v32, %v2384_v60 }
 0xee3   :  { %v3398_v15 = vsel %vm3395_vm3, %v3389_v16, %v2664_v34 }
 0xee4   :  { %v3113_v47 = vpop.permute.xlu0 %3112  ;;  %v3115_v27 = vpop.permute.xlu1 %3114  ;;  %v5999_v39 = vsel %vm3404_vm5, %v3398_v15, %v2944_v18 }
 0xee5   :  { %v3135_v43 = vmul.f32 %v3854_v42, %v3113_v47  ;;  %v3136_v45 = vmul.f32 %v3854_v42, %v3115_v27 }
 0xee8   :  { %v3119_v37 = vpop.permute.xlu0 %3118  ;;  %v3117_v5 = vpop.permute.xlu1 %3116 }
 0xee9   :  { %v3138_v44 = vmul.f32 %v3854_v42, %v3119_v37  ;;  %v3137_v6 = vmul.f32 %v3854_v42, %v3117_v5  ;;  %v2439_v37 = vmax.f32 %v5593_v19, 0.0  ;;  %v6361_v5 = vld [vmem:[#allocation9_spill] sm:$0xff]  ;;  %v6367_v19 = vld [vmem:[#allocation32_spill] sm:$0xff] }
 0xeec   :  { %v3123_v40 = vpop.permute.xlu0 %3122  ;;  %v3121_v49 = vpop.permute.xlu1 %3120 }
 0xeed   :  { %v3140_v24 = vmul.f32 %v3854_v42, %v3123_v40  ;;  %v3139_v7 = vmul.f32 %v3854_v42, %v3121_v49  ;;  %v2438_v40 = vmax.f32 %v6361_v5, 0.0  ;;  %v6362_v49 = vld [vmem:[#allocation12_spill] sm:$0xff]  ;;  %v6378_v5 = vld [vmem:[#allocation26_spill] sm:$0xff] }
 0xef0   :  { %v3167_v2 = vpop.permute.xlu0 %3166  ;;  %v3125_v54 = vpop.permute.xlu1 %3124 }
 0xef1   :  { %v3190_v10 = vmul.f32 %v3167_v2, %v3134_v4  ;;  %v3141_v32 = vmul.f32 %v3854_v42, %v3125_v54  ;;  %v2440_v42 = vmax.f32 %v6362_v49, 0.0  ;;  %v6363_v4 = vld [vmem:[#allocation29_spill] sm:$0xff]  ;;  %v6364_v54 = vld [vmem:[#allocation28_spill] sm:$0xff] }
 0xef2   :  { %v2441_v2 = vmax.f32 %v6363_v4, 0.0  ;;  %v6379_v49 = vld [vmem:[#allocation37_spill] sm:$0xff] }
 0xef3   :  { %v3198_v26 = vsel %vm34_vm7, %v3190_v10, 0.0  ;;  %v2442_v10 = vmax.f32 %v6364_v54, 0.0 }
 0xef4   :  { %v3171_v52 = vpop.permute.xlu0 %3170  ;;  %3199 = vadd.xlane.f32.xlu0 %v3198_v26  ;;  %v3169_v21 = vpop.permute.xlu1 %3168  ;;  %v6366_v26 = vld [vmem:[#allocation30_spill] sm:$0xff] }
 0xef5   :  { %v3192_v35 = vmul.f32 %v3171_v52, %v3136_v45  ;;  %v3191_v36 = vmul.f32 %v3169_v21, %v3135_v43  ;;  %v6365_v43 = vld [vmem:[#allocation31_spill] sm:$0xff]  ;;  %v2444_v52 = vmax.f32 %v6366_v26, 0.0  ;;  %v2445_v21 = vmax.f32 %v6367_v19, 0.0  ;;  %v6383_v26 = vld [vmem:[#allocation44_spill] sm:$0xff]  ;;  %v6384_v19 = vld [vmem:[#allocation45_spill] sm:$0xff] }
 0xef6   :  { %v2443_v45 = vmax.f32 %v6365_v43, 0.0 }
 0xef7   :  { %v3204_v23 = vsel %vm34_vm7, %v3192_v35, 0.0  ;;  %v3201_v22 = vsel %vm34_vm7, %v3191_v36, 0.0  ;;  %v2718_v35 = vmax.f32 %v5748_v12, 0.0  ;;  %v2719_v36 = vmax.f32 %v5729_v46, 0.0 }
 0xef8   :  { %v3175_v59 = vpop.permute.xlu0 %3174  ;;  %3205 = vadd.xlane.f32.xlu0 %v3204_v23  ;;  %3202 = vadd.xlane.f32.xlu1 %v3201_v22  ;;  %v3173_v25 = vpop.permute.xlu1 %3172  ;;  %v2722_v23 = vmax.f32 %v5764_v11, 0.0  ;;  %v2723_v22 = vmax.f32 %v5740_v9, 0.0  ;;  %v2725_v12 = vmax.f32 %v5752_v62, 0.0  ;;  %v2998_v46 = vmax.f32 %v5903_v51, 0.0 }
 0xef9   :  { %v3194_v38 = vmul.f32 %v3175_v59, %v3138_v44  ;;  %v3193_v41 = vmul.f32 %v3173_v25, %v3137_v6  ;;  %v2720_v44 = vmax.f32 %v5757_v1, 0.0  ;;  %v2721_v6 = vmax.f32 %v5734_v31, 0.0 }
 0xefa   :  { %v2724_v59 = vmax.f32 %v5770_v58, 0.0  ;;  %v2999_v1 = vmax.f32 %v5888_v33, 0.0  ;;  %v3000_v31 = vmax.f32 %v5911_v3, 0.0  ;;  %v3001_v11 = vmax.f32 %v5892_v13, 0.0  ;;  %v6369_v13 = vld [vmem:[#allocation16_spill] sm:$0xff] }
 0xefb   :  { %v3210_v17 = vsel %vm34_vm7, %v3194_v38, 0.0  ;;  %v3207_v60 = vsel %vm34_vm7, %v3193_v41, 0.0  ;;  %v3002_v9 = vmax.f32 %v5917_v8, 0.0  ;;  %v3003_v58 = vmax.f32 %v5898_v48, 0.0  ;;  %v6368_v41 = vld [vmem:[#allocation33_spill] sm:$0xff]  ;;  %v6371_v8 = vld [vmem:[#allocation18_spill] sm:$0xff] }
 0xefc   :  { %v3179_v55 = vpop.permute.xlu0 %3178  ;;  %3211 = vadd.xlane.f32.xlu0 %v3210_v17  ;;  %3208 = vadd.xlane.f32.xlu1 %v3207_v60  ;;  %v3177_v50 = vpop.permute.xlu1 %3176  ;;  %v3004_v62 = vmax.f32 %v5922_v63, 0.0  ;;  %v3005_v51 = vmax.f32 %v5906_v29, 0.0  ;;  %v6372_v63 = vld [vmem:[#allocation43_spill] sm:$0xff] }
 0xefd   :  { %v3196_v57 = vmul.f32 %v3179_v55, %v3140_v24  ;;  %v3195_v34 = vmul.f32 %v3177_v50, %v3139_v7  ;;  %v3364_v24 = vsel %vm356_vm4, %v6369_v13, %v6368_v41  ;;  %v6370_v7 = vld [vmem:[#allocation34_spill] sm:$0xff]  ;;  %v2946_v41 = vsub.f32 0.0, %v5881_v30 }
 0xefe   :  { %v3365_v48 = vsel %vm356_vm4, %v6371_v8, %v6370_v7  ;;  %v3373_v17 = vsel %vm3369_vm0, %v3364_v24, %v5813_v53  ;;  %v6389_v7 = vld [vmem:[#allocation40_spill] sm:$0xff] }
 0xeff   :  { %v3216_v18 = vsel %vm34_vm7, %v3196_v57, 0.0  ;;  %v3213_v16 = vsel %vm34_vm7, %v3195_v34, 0.0  ;;  %v3374_v29 = vsel %vm3369_vm0, %v3365_v48, %v6372_v63 }
 0xf00   :  { %3217 = vadd.xlane.f32.xlu0 %v3216_v18  ;;  %3214 = vadd.xlane.f32.xlu1 %v3213_v16  ;;  %v3181_v15 = vpop.permute.xlu1 %3180  ;;  %v6374_v16 = vld [vmem:[#allocation20_spill] sm:$0xff] }
 0xf01   :  { %v3197_v47 = vmul.f32 %v3181_v15, %v3141_v32  ;;  %v6373_v32 = vld [vmem:[#allocation27_spill] sm:$0xff]  ;;  %v2386_v15 = vsub.f32 0.0, %v6374_v16 }
 0xf02   :  { %v2385_v18 = vsub.f32 0.0, %v6373_v32 }
 0xf03   :  { %v3219_v27 = vsel %vm34_vm7, %v3197_v47, 0.0  ;;  %v6375_v47 = vld [vmem:[#allocation35_spill] sm:$0xff] }
 0xf04   :  { %3220 = vadd.xlane.f32.xlu1 %v3219_v27  ;;  %v6376_v27 = vld [vmem:[#allocation19_spill] sm:$0xff] }
 0xf05   :  { %v3366_v53 = vsel %vm356_vm4, %v6376_v27, %v6375_v47  ;;  %v6391_v27 = vld [vmem:[#allocation42_spill] sm:$0xff] }
 0xf15   :  { %3240 = vrot.lane.b32.xlu1 %v2439_v37, %s3899_s5  ;;  %v6377_v37 = vld [vmem:[#allocation36_spill] sm:$0xff] }
 0xf16   :  { %3238 = vrot.lane.b32.xlu0 %v2438_v40, %s3899_s5  ;;  %v3367_v40 = vsel %vm356_vm4, %v6378_v5, %v6377_v37 }
 0xf19   :  { %3242 = vrot.lane.b32.xlu1 %v2440_v42, %s3899_s5  ;;  %v6380_v42 = vld [vmem:[#allocation17_spill] sm:$0xff] }
 0xf1a   :  { %3244 = vrot.lane.b32.xlu0 %v2441_v2, %s3899_s5  ;;  %v3368_v4 = vsel %vm356_vm4, %v6380_v42, %v6379_v49  ;;  %v6381_v2 = vld [vmem:[#allocation38_spill] sm:$0xff]  ;;  %vm3326_vm4 = vcmask 130048  }
 0xf1b   :  { %v2665_v54 = vsub.f32 0.0, %v6381_v2 }
 0xf1d   :  { %3246 = vrot.lane.b32.xlu1 %v2442_v10, %s3899_s5  ;;  %v6382_v10 = vld [vmem:[#allocation39_spill] sm:$0xff] }
 0xf1e   :  { %3248 = vrot.lane.b32.xlu0 %v2443_v45, %s3899_s5  ;;  %v2666_v43 = vsub.f32 0.0, %v6382_v10 }
 0xf21   :  { %3250 = vrot.lane.b32.xlu1 %v2444_v52, %s3899_s5  ;;  %v3375_v52 = vsel %vm3369_vm0, %v3366_v53, %v6383_v26  ;;  %v2669_v53 = vsub.f32 0.0, %v6391_v27 }
 0xf22   :  { %3252 = vrot.lane.b32.xlu0 %v2445_v21, %s3899_s5  ;;  %v3376_v21 = vsel %vm3369_vm0, %v3367_v40, %v6384_v19 }
 0xf25   :  { %3270 = vrot.lane.b32.xlu1 %v2718_v35, %s3900_s27 }
 0xf26   :  { %3272 = vrot.lane.b32.xlu0 %v2719_v36, %s3900_s27 }
 0xf29   :  { %3274 = vrot.lane.b32.xlu1 %v2720_v44, %s3900_s27 }
 0xf2a   :  { %3276 = vrot.lane.b32.xlu0 %v2721_v6, %s3900_s27 }
 0xf2d   :  { %3278 = vrot.lane.b32.xlu1 %v2722_v23, %s3900_s27  ;;  %v3081_v33 = vpop.xlane.xlu0 %3080 }
 0xf2e   :  { %3280 = vrot.lane.b32.xlu0 %v2723_v22, %s3900_s27  ;;  %v3382_v50 = vsel %vm3378_vm2, %v3373_v17, %v3081_v33  ;;  %v6390_v17 = vld [vmem:[#allocation10_spill] sm:$0xff] }
 0xf2f   :  { %v3390_v35 = vsel %vm34_vm7, %v3382_v50, %v2385_v18  ;;  %v2389_v63 = vsub.f32 0.0, %v6390_v17  ;;  %v2947_v18 = vsub.f32 0.0, %v5879_v0 }
 0xf31   :  { %3282 = vrot.lane.b32.xlu1 %v2724_v59, %s3900_s27  ;;  %v3087_v25 = vpop.xlane.xlu0 %3086  ;;  %v3084_v38 = vpop.xlane.xlu1 %3083 }
 0xf32   :  { %3284 = vrot.lane.b32.xlu0 %v2725_v12, %s3900_s27  ;;  %v3383_v57 = vsel %vm3378_vm2, %v3374_v29, %v3084_v38  ;;  %v3384_v23 = vsel %vm3378_vm2, %v3375_v52, %v3087_v25  ;;  %v6385_v12 = vld [vmem:[#allocation11_spill] sm:$0xff] }
 0xf33   :  { %v3391_v36 = vsel %vm34_vm7, %v3383_v57, %v2386_v15 }
 0xf34   :  { %v3400_v33 = vsel %vm3395_vm3, %v3391_v36, %v2666_v43 }
 0xf35   :  { %3302 = vrot.lane.b32.xlu1 %v2998_v46, %s3901_s28  ;;  %v3090_v3 = vpop.xlane.xlu0 %3089  ;;  %v3093_v60 = vpop.xlane.xlu1 %3092  ;;  %v2387_v46 = vsub.f32 0.0, %v6385_v12  ;;  %v3409_v29 = vsel %vm3404_vm5, %v3400_v33, %v2946_v41  ;;  %v6394_v33 = vld [vmem:[#allocation21_spill] sm:$0xff] }
 0xf36   :  { %3304 = vrot.lane.b32.xlu0 %v2999_v1, %s3901_s28  ;;  %v6386_v1 = vld [vmem:[#allocation8_spill] sm:$0xff] }
 0xf37   :  { %v3392_v13 = vsel %vm34_vm7, %v3384_v23, %v2387_v46  ;;  %v6392_v46 = vld [vmem:[#allocation13_spill] sm:$0xff] }
 0xf39   :  { %3306 = vrot.lane.b32.xlu1 %v3000_v31, %s3901_s28  ;;  %v2388_v31 = vsub.f32 0.0, %v6386_v1  ;;  %v2144_v1 = vmax.f32 %v6392_v46, 0.0 }
 0xf3a   :  { %3308 = vrot.lane.b32.xlu0 %v3001_v11, %s3901_s28  ;;  %v6387_v11 = vld [vmem:[#allocation41_spill] sm:$0xff] }
 0xf3d   :  { %3310 = vrot.lane.b32.xlu1 %v3002_v9, %s3901_s28  ;;  %v2667_v9 = vsub.f32 0.0, %v6387_v11 }
 0xf3e   :  { %3312 = vrot.lane.b32.xlu0 %v3003_v58, %s3901_s28  ;;  %v6388_v58 = vld [vmem:[#allocation46_spill] sm:$0xff] }
 0xf3f   :  { %v3401_v50 = vsel %vm3395_vm3, %v3392_v13, %v2667_v9 }
 0xf40   :  { %v3410_v5 = vsel %vm3404_vm5, %v3401_v50, %v2947_v18 }
 0xf41   :  { %3314 = vrot.lane.b32.xlu1 %v3004_v62, %s3901_s28  ;;  %v3377_v62 = vsel %vm3369_vm0, %v3368_v4, %v6388_v58  ;;  %v2949_v4 = vsub.f32 0.0, %v5883_v28 }
 0xf42   :  { %3316 = vrot.lane.b32.xlu0 %v3005_v51, %s3901_s28  ;;  %v3399_v51 = vsel %vm3395_vm3, %v3390_v35, %v2665_v54  ;;  %v3386_v30 = vsel %vm3378_vm2, %v3377_v62, %v3093_v60  ;;  %v2948_v60 = vsub.f32 0.0, %v5885_v61  ;;  %v6393_v62 = vld [vmem:[#allocation14_spill] sm:$0xff] }
 0xf43   :  { %v3394_v16 = vsel %vm34_vm7, %v3386_v30, %v2389_v63  ;;  %v6396_v30 = vld [vmem:[#allocation15_spill] sm:$0xff] }
 0xf44   :  { %v3403_v40 = vsel %vm3395_vm3, %v3394_v16, %v2669_v53 }
 0xf45   :  { %v3412_v43 = vsel %vm3404_vm5, %v3403_v40, %v2949_v4  ;;  %v6399_v40 = vld [vmem:[#allocation24_spill] sm:$0xff] }
 0xf81   :  { %v3200_v55 = vpop.xlane.xlu0 %3199 }
 0xf82   :  { %v3222_v34 = vsub.f32 0.0, %v3200_v55 }
 0xf84   :  { %v3414_v45 = vsel %vm3413_vm6, %v5991_v56, %v3222_v34  ;;  %v3385_v56 = vsel %vm3378_vm2, %v3376_v21, %v3090_v3  ;;  %v2945_v3 = vsub.f32 0.0, %v5877_v20  ;;  %v2668_v20 = vsub.f32 0.0, %v6389_v7  ;;  %v6395_v7 = vld [vmem:[#allocation23_spill] sm:$0xff] }
 0xf85   :  { %3423 = vst.msk [vmem:[%s6199_s8] sm:$0xff] %vm3422_vm8, %v3414_v45  ;;  %v3206_v44 = vpop.xlane.xlu0 %3205  ;;  %v3203_v6 = vpop.xlane.xlu1 %3202  ;;  %v3393_v24 = vsel %vm34_vm7, %v3385_v56, %v2388_v31  ;;  %vm3335_vm7 = vcmask 261120  }
 0xf86   :  { %v3224_v22 = vsub.f32 0.0, %v3206_v44  ;;  %v3223_v59 = vsub.f32 0.0, %v3203_v6  ;;  %v3408_v55 = vsel %vm3404_vm5, %v3399_v51, %v2945_v3  ;;  %v3402_v57 = vsel %vm3395_vm3, %v3393_v24, %v2668_v20 }
 0xf87   :  { %v3411_v61 = vsel %vm3404_vm5, %v3402_v57, %v2948_v60  ;;  %v2143_v51 = vmax.f32 %v6393_v62, 0.0  ;;  %v2148_v20 = vmax.f32 %v6395_v7, 0.0  ;;  %v6398_v60 = vld [vmem:[#allocation22_spill] sm:$0xff] }
 0xf88   :  { %v3416_v25 = vsel %vm3413_vm6, %v5999_v39, %v3224_v22  ;;  %v3415_v38 = vsel %vm3413_vm6, %v5971_v14, %v3223_v59  ;;  %v2147_v16 = vmax.f32 %v6398_v60, 0.0 }
 0xf89   :  { %3425 = vst.msk [vmem:[%s6199_s8 + $0x10] sm:$0xff] %vm3422_vm8, %v3416_v25  ;;  %3424 = vst.msk [vmem:[%s6199_s8 + $0x8] sm:$0xff] %vm3422_vm8, %v3415_v38  ;;  %v3212_v39 = vpop.xlane.xlu0 %3211  ;;  %v3209_v14 = vpop.xlane.xlu1 %3208  ;;  %v2146_v25 = vmax.f32 %v6394_v33, 0.0 }
 0xf8a   :  { %v3226_v8 = vsub.f32 0.0, %v3212_v39  ;;  %v3225_v48 = vsub.f32 0.0, %v3209_v14 }
 0xf8c   :  { %v3418_v34 = vsel %vm3413_vm6, %v3409_v29, %v3226_v8  ;;  %v3417_v32 = vsel %vm3413_vm6, %v3408_v55, %v3225_v48  ;;  %v2145_v8 = vmax.f32 %v6396_v30, 0.0 }
 0xf8d   :  { %3427 = vst.msk [vmem:[%s6199_s8 + $0x20] sm:$0xff] %vm3422_vm8, %v3418_v34  ;;  %3426 = vst.msk [vmem:[%s6199_s8 + $0x18] sm:$0xff] %vm3422_vm8, %v3417_v32  ;;  %v3218_v15 = vpop.xlane.xlu0 %3217  ;;  %v3215_v47 = vpop.xlane.xlu1 %3214  ;;  %v6397_v32 = vld [vmem:[#allocation25_spill] sm:$0xff] }
 0xf8e   :  { %v3228_v37 = vsub.f32 0.0, %v3218_v15  ;;  %v3227_v0 = vsub.f32 0.0, %v3215_v47  ;;  %v2150_v18 = vmax.f32 %v6397_v32, 0.0 }
 0xf90   :  { %v3420_v49 = vsel %vm3413_vm6, %v3411_v61, %v3228_v37  ;;  %v3419_v42 = vsel %vm3413_vm6, %v3410_v5, %v3227_v0 }
 0xf91   :  { %3429 = vst.msk [vmem:[%s6199_s8 + $0x30] sm:$0xff] %vm3422_vm8, %v3420_v49  ;;  %3428 = vst.msk [vmem:[%s6199_s8 + $0x28] sm:$0xff] %vm3422_vm8, %v3419_v42  ;;  %v3239_v2 = vpop.permute.xlu0 %3238  ;;  %v3221_v54 = vpop.xlane.xlu1 %3220  ;;  %v2149_v49 = vmax.f32 %v6399_v40, 0.0 }
 0xf92   :  { %v3229_v10 = vsub.f32 0.0, %v3221_v54  ;;  %v3327_v3 = vsel %vm3326_vm4, %v2143_v51, %v3239_v2 }
 0xf94   :  { %v3421_v45 = vsel %vm3413_vm6, %v3412_v43, %v3229_v10 }
 0xf95   :  { %3430 = vst.msk [vmem:[%s6199_s8 + $0x38] sm:$0xff] %vm3422_vm8, %v3421_v45  ;;  %v3245_v28 = vpop.permute.xlu0 %3244  ;;  %v3241_v26 = vpop.permute.xlu1 %3240  ;;  %s3902_s8 = smov [#allocation5]  }
 0xf96   :  { %v3328_v31 = vsel %vm3326_vm4, %v2144_v1, %v3241_v26  ;;  %v3330_v41 = vsel %vm3326_vm4, %v2146_v25, %v3245_v28  ;;  %s3436_s1 = sshll.u32 %s3902_s8, 4  ;;  %s3437_s1 = int_to_ptr.vmem [resolvable:$true] %s3436_s1 }
 0xf97   :  { %s3855_s19 = scalar_lea.vmem %s3437_s1, 1024  ;;  %p3860_p1 = scmp.lt.s32.totalorder %s3437_s1, %s3437_s1 }
 0xf98   :  { %p3856_p0 = scmp.ne.s32.totalorder %s3437_s1, %s3855_s19  ;;  %p3861_p2 = scmp.lt.s32.totalorder %s3855_s19, %s3855_s19 }
 0xf99   :  { %v3249_v52 = vpop.permute.xlu0 %3248  ;;  %v3243_v19 = vpop.permute.xlu1 %3242 }
 0xf9a   :  { %v3332_v63 = vsel %vm3326_vm4, %v2148_v20, %v3249_v52  ;;  %v3329_v29 = vsel %vm3326_vm4, %v2145_v8, %v3243_v19  ;;  %p3862_p3 = por %p3861_p2, %p3860_p1 }
 0xf9c   :  { %p3863_p4 = pnand %p3862_p3, %p3856_p0 }
 0xf9d   :  { %v3253_v21 = vpop.permute.xlu0 %3252  ;;  %v3247_v35 = vpop.permute.xlu1 %3246 }
 0xf9e   :  { %v3334_v27 = vsel %vm3326_vm4, %v2150_v18, %v3253_v21  ;;  %v3331_v53 = vsel %vm3326_vm4, %v2147_v16, %v3247_v35 }
 0xfa1   :  { %v3273_v36 = vpop.permute.xlu0 %3272  ;;  %v3251_v44 = vpop.permute.xlu1 %3250 }
 0xfa2   :  { %v3337_v11 = vsel %vm3335_vm7, %v3328_v31, %v3273_v36  ;;  %v3333_v2 = vsel %vm3326_vm4, %v2149_v49, %v3251_v44 }
 0xfa5   :  { %v3277_v6 = vpop.permute.xlu0 %3276  ;;  %v3271_v23 = vpop.permute.xlu1 %3270 }
 0xfa6   :  { %v3339_v13 = vsel %vm3335_vm7, %v3330_v41, %v3277_v6  ;;  %v3336_v24 = vsel %vm3335_vm7, %v3327_v3, %v3271_v23 }
 0xfa9   :  { %v3281_v56 = vpop.permute.xlu0 %3280  ;;  %v3275_v22 = vpop.permute.xlu1 %3274 }
 0xfaa   :  { %v3341_v55 = vsel %vm3335_vm7, %v3332_v63, %v3281_v56  ;;  %v3338_v50 = vsel %vm3335_vm7, %v3329_v29, %v3275_v22 }
 0xfad   :  { %v3285_v59 = vpop.permute.xlu0 %3284  ;;  %v3279_v12 = vpop.permute.xlu1 %3278 }
 0xfae   :  { %v3343_v37 = vsel %vm3335_vm7, %v3334_v27, %v3285_v59  ;;  %v3340_v0 = vsel %vm3335_vm7, %v3331_v53, %v3279_v12 }
 0xfb1   :  { %v3305_v9 = vpop.permute.xlu0 %3304  ;;  %v3283_v58 = vpop.permute.xlu1 %3282 }
 0xfb2   :  { %v3346_v38 = vsel %vm3344_vm9, %v3337_v11, %v3305_v9  ;;  %v3342_v54 = vsel %vm3335_vm7, %v3333_v2, %v3283_v58 }
 0xfb3   :  { %3354 = vst.msk [vmem:[#allocation5 + $0x8] sm:$0xff] %vm179_vm1, %v3346_v38 }
 0xfb5   :  { %v3309_v39 = vpop.permute.xlu0 %3308  ;;  %v3303_v14 = vpop.permute.xlu1 %3302 }
 0xfb6   :  { %v3348_v48 = vsel %vm3344_vm9, %v3339_v13, %v3309_v39  ;;  %v3345_v17 = vsel %vm3344_vm9, %v3336_v24, %v3303_v14 }
 0xfb7   :  { %3356 = vst.msk [vmem:[#allocation5 + $0x18] sm:$0xff] %vm179_vm1, %v3348_v48  ;;  %3353 = vst.msk [vmem:[#allocation5] sm:$0xff] %vm179_vm1, %v3345_v17 }
 0xfb9   :  { %v3313_v57 = vpop.permute.xlu0 %3312  ;;  %v3307_v34 = vpop.permute.xlu1 %3306 }
 0xfba   :  { %v3350_v15 = vsel %vm3344_vm9, %v3341_v55, %v3313_v57  ;;  %v3347_v47 = vsel %vm3344_vm9, %v3338_v50, %v3307_v34 }
 0xfbb   :  { %3358 = vst.msk [vmem:[#allocation5 + $0x28] sm:$0xff] %vm179_vm1, %v3350_v15  ;;  %3355 = vst.msk [vmem:[#allocation5 + $0x10] sm:$0xff] %vm179_vm1, %v3347_v47 }
 0xfbd   :  { %v3317_v61 = vpop.permute.xlu0 %3316  ;;  %v3311_v5 = vpop.permute.xlu1 %3310 }
 0xfbe   :  { %v3352_v42 = vsel %vm3344_vm9, %v3343_v37, %v3317_v61  ;;  %v3349_v4 = vsel %vm3344_vm9, %v3340_v0, %v3311_v5 }
 0xfbf   :  { %3360 = vst.msk [vmem:[#allocation5 + $0x38] sm:$0xff] %vm179_vm1, %v3352_v42  ;;  %3357 = vst.msk [vmem:[#allocation5 + $0x20] sm:$0xff] %vm179_vm1, %v3349_v4 }
 0xfc1   :  { %v3315_v10 = vpop.permute.xlu1 %3314 }
 0xfc2   :  { %v3351_v43 = vsel %vm3344_vm9, %v3342_v54, %v3315_v10 }
 0xfc3   :  { %3359 = vst.msk [vmem:[#allocation5 + $0x30] sm:$0xff] %vm179_vm1, %v3351_v43 }
 0xfc4   :  { %3866 = shalt.err (!%p3863_p4)
}
 0xfc5   :  { %s3867_s22 = scalar_lea.hbm %s6198_s7, 1024 }
 0xfc6   :  { %p3868_p5 = scmp.ne.s32.totalorder %s6198_s7, %s3867_s22  ;;  %p3871_p6 = scmp.lt.u32.totalorder %s3867_s22, %s6198_s7 }
 0xfc8   :  { %p3873_p7 = pnand %p3871_p6, %p3868_p5 }
 0xfca   :  { %3876 = shalt.err (!%p3873_p7)
}
 0xfcb   :  { %s3903_s26 = smov 128   ;;  %s3904_s5 = smov 8  }
 0xfcc   :  { %3442 = dma.vmem_to_hbm [thread:$0]  %s3437_s1, 1024, %s6198_s7, [#allocation6], %s3903_s26, %s3903_s26, %s3904_s5  }
 0xfcd   :  { %3877 = dma.done.wait [#allocation6], 1024  }
 0xfce   :  { %3878 = vsyncadd [#allocation6], 4294966272 }
 0xfcf   :  { %3450 = vsyncpa [#allocation6], 1 }

</bundles_post_ra>
